<compile_context>
chip_gen: v7x
topology: tpu7x:2x2x1
jax: 0.10.0
libtpu: 0.0.40
codegen_flags: <defaults>
</compile_context>

<pallas_src>
import functools

import numpy as np
import jax
import jax.numpy as jnp
from jax.experimental import pallas as pl
from jax.experimental.pallas import tpu as pltpu


# ------------------------- host-built constants (all tiny) ------------------------- #

def _border_masks(H, W, step):
    """(9, H*W) 0/1 masks: tap (dh,dw) valid at (h,w) iff (h+step*dh, w+step*dw) in-image."""
    M = H * W
    m = np.arange(M)
    h, w = m // W, m % W
    masks = np.zeros((9, M), np.float32)
    t = 0
    for dh in (-1, 0, 1):
        for dw in (-1, 0, 1):
            valid = ((h + step * dh >= 0) & (h + step * dh < H) &
                     (w + step * dw >= 0) & (w + step * dw < W))
            masks[t] = valid.astype(np.float32)
            t += 1
    return masks


def _pool_select(H, W):
    """(H*W, Hh*Wh) 0/1 matrix selecting the even-(h,w) positions (stride-2 subsample)."""
    Hh, Wh = H // 2, W // 2
    S = np.zeros((H * W, Hh * Wh), np.float32)
    j = np.arange(Hh * Wh)
    hh, wh = j // Wh, j % Wh
    S[(2 * hh) * W + (2 * wh), j] = 1.0
    return S


def _upsample_mat(H, W):
    """(Hh*Wh, H*W) 0/1 nearest 2x upsample: out[c, h*W+w] = in[c, (h//2)*Wh + w//2]."""
    Hh, Wh = H // 2, W // 2
    m = np.arange(H * W)
    h, w = m // W, m % W
    U = np.zeros((Hh * Wh, H * W), np.float32)
    U[(h // 2) * Wh + (w // 2), m] = 1.0
    return U


# ----------------------------------- Pallas kernel ---------------------------------- #

def _fused_kernel(x_ref,
                  m1_ref, m2_ref,
                  wu_ref, su_ref, bu_ref,
                  we_ref, se_ref, be_ref,
                  wd1_ref, sd1_ref, bd1_ref,
                  wd2_ref, sd2_ref, bd2_ref,
                  pool_ref, ups_ref,
                  w1_ref, b1_ref, w2_ref, b2_ref,
                  dec_ref, pred_ref,
                  enc_s, flat_s,
                  *, W, M, Mh, c2):
    """One grid step == one image.  Layout: channels on sublanes, flattened h*W+w on lanes."""

    offs1 = [dh * W + dw for dh in (-1, 0, 1) for dw in (-1, 0, 1)]   # full-res 3x3 taps
    offs2 = [2 * o for o in offs1]                                    # stride-2 (pooled) taps

    def shift_stack(x, mask_ref, offs):
        # x: (Cin, M) f32, Cin a multiple of 8 -> tile-aligned sublane concatenation.
        parts = []
        for t, off in enumerate(offs):
            if off == 0:
                parts.append(x)                               # center tap: mask is all ones
            else:
                s = pltpu.roll(x, (-off) % M, axis=1)         # dest p <- src p+off (XLU)
                parts.append(s * mask_ref[pl.ds(t, 1), :])    # zero-pad semantics (VPU)
        return jnp.concatenate(parts, axis=0)                 # (9*Cin, M) f32

    def conv3x3(x, w_ref, mask_ref, offs, scale_ref, shift_ref):
        # One MXU matmul per conv; conv bias / inference-BatchNorm folded to scale/shift.
        stacked = shift_stack(x, mask_ref, offs).astype(jnp.bfloat16)
        y = jnp.dot(w_ref[...], stacked, preferred_element_type=jnp.float32)
        return y * scale_ref[...] + shift_ref[...]

    x = x_ref[...]                                                     # (Cin_pad, M) f32

    # --- upstream_layers: Conv2d(in_ch -> num_ch, 3x3, pad=1) + bias ---
    up = conv3x3(x, wu_ref, m1_ref, offs1, su_ref, bu_ref)             # (num_ch, M)

    # --- encoder 'B': Dropout(id) -> MaxPool2d(2,2) -> Conv -> BN -> LeakyReLU(True)(id) ---
    mx = jnp.maximum(up, pltpu.roll(up, (-1) % M, axis=1))             # max over (w, w+1)
    mx = jnp.maximum(mx, pltpu.roll(mx, (-W) % M, axis=1))             # max over 2x2 window
    stacked_e = shift_stack(mx, m2_ref, offs2).astype(jnp.bfloat16)    # (9*num_ch, M)
    tmp = jnp.dot(we_ref[...], stacked_e, preferred_element_type=jnp.float32)   # (c2, M)
    enc = jnp.dot(tmp.astype(jnp.bfloat16), pool_ref[...],
                  preferred_element_type=jnp.float32)                  # (c2, Mh) subsample
    enc = enc * se_ref[...] + be_ref[...]

    # --- supervision head: FCView -> Linear(fc,512) -> ReLU(True) -> Dropout(id) -> Linear ---
    # Row-major (C, Hh, Wh) flatten via a tiny VMEM scratch (avoids a vector reshape),
    # then two lane-dense GEMMs with the head weights resident in VMEM.
    enc_s[...] = enc
    for c in range(c2):
        flat_s[pl.ds(0, 1), pl.ds(c * Mh, Mh)] = enc_s[pl.ds(c, 1), :]
    h = jnp.dot(flat_s[...].astype(jnp.bfloat16), w1_ref[...],
                preferred_element_type=jnp.float32) + b1_ref[...]      # (1, 512)
    h = jnp.maximum(h, 0.0)
    pred = jnp.dot(h.astype(jnp.bfloat16), w2_ref[...],
                   preferred_element_type=jnp.float32) + b2_ref[...]   # (1, ncls_pad)
    pred_ref[...] = pred.astype(pred_ref.dtype)

    # --- decoder 'B': Interpolate(2x nearest) -> Conv+BN(+id) -> Conv+BN -> Sigmoid ---
    dup = jnp.dot(enc.astype(jnp.bfloat16), ups_ref[...],
                  preferred_element_type=jnp.float32)                  # (c2, M)
    d1 = conv3x3(dup, wd1_ref, m1_ref, offs1, sd1_ref, bd1_ref)        # (num_ch, M)
    dec = conv3x3(d1, wd2_ref, m1_ref, offs1, sd2_ref, bd2_ref)        # (in_ch, M)
    dec_ref[...] = jax.nn.sigmoid(dec).astype(dec_ref.dtype)


# ----------------------------- parameter prep + forward ------------------------------ #

def _prep_conv(w_hwio, bias, bn, cin_pad=None, eps=1e-5):
    """HWIO conv weight -> (Cout, 9*Cin) bf16 (rows ordered tap-major, t = kh*3+kw);
    conv bias / inference BatchNorm folded to per-channel scale/shift columns."""
    k, _, cin, cout = w_hwio.shape
    if cin_pad is not None and cin_pad > cin:
        w_hwio = jnp.pad(w_hwio, ((0, 0), (0, 0), (0, cin_pad - cin), (0, 0)))
        cin = cin_pad
    w_mat = jnp.transpose(w_hwio, (3, 0, 1, 2)).reshape(cout, k * k * cin).astype(jnp.bfloat16)
    if bn is None:
        scale = jnp.ones((cout, 1), jnp.float32)
        shift = bias.reshape(cout, 1).astype(jnp.float32)
    else:
        gamma, beta, mean, var = bn
        s = gamma / jnp.sqrt(var + eps)                     # BatchNorm2d default eps
        scale = s.reshape(cout, 1).astype(jnp.float32)
        shift = ((bias - mean) * s + beta).reshape(cout, 1).astype(jnp.float32)
    return w_mat, scale, shift


def make_forward(params, batch, in_ch, num_ch, img, num_classes):
    H = W = img
    M = H * W
    Hh, Wh = H // 2, W // 2
    Mh = Hh * Wh
    c2 = num_ch * 2
    assert H % 2 == 0 and W % 2 == 0
    # f32 sublane-tile alignment for the in-kernel tap stacking.
    assert num_ch % 8 == 0 and c2 % 8 == 0, "num_ch must be a multiple of 8"
    in_pad = ((in_ch + 7) // 8) * 8

    # Host-built tiny constants (resident in VMEM across the whole grid).
    m1 = jnp.asarray(_border_masks(H, W, 1), jnp.float32)        # (9, M)
    m2 = jnp.asarray(_border_masks(H, W, 2), jnp.float32)        # (9, M)
    pool_sel = jnp.asarray(_pool_select(H, W), jnp.bfloat16)     # (M, Mh)
    ups = jnp.asarray(_upsample_mat(H, W), jnp.bfloat16)         # (Mh, M)

    wu, su, bu = _prep_conv(params["w_up"], params["b_up"], None, cin_pad=in_pad)
    we, se, be = _prep_conv(params["w_e"], params["b_e"], params["bn_e"])
    wd1, sd1, bd1 = _prep_conv(params["w_d1"], params["b_d1"], params["bn_d1"])
    wd2, sd2, bd2 = _prep_conv(params["w_d2"], params["b_d2"], params["bn_d2"])

    # Supervision-head operands; classes padded to 128 lanes for an unmasked store.
    ncls_pad = num_classes + (-num_classes) % 128
    w1 = params["w1"].astype(jnp.bfloat16)                                   # (c2*Mh, 512)
    b1 = params["b1"].reshape(1, -1).astype(jnp.float32)
    w2p = jnp.pad(params["w2"], ((0, 0), (0, ncls_pad - num_classes))).astype(jnp.bfloat16)
    b2p = jnp.pad(params["b2"], (0, ncls_pad - num_classes)).reshape(1, -1).astype(jnp.float32)
    assert w1.shape[0] == c2 * Mh

    consts = (m1, m2, wu, su, bu, we, se, be, wd1, sd1, bd1, wd2, sd2, bd2,
              pool_sel, ups, w1, b1, w2p, b2p)

    def _const_spec(a):
        assert a.ndim == 2
        return pl.BlockSpec(a.shape, lambda n: (0, 0))

    kernel = functools.partial(_fused_kernel, W=W, M=M, Mh=Mh, c2=c2)

    fused = pl.pallas_call(
        kernel,
        grid=(batch,),
        in_specs=[pl.BlockSpec((None, in_pad, M), lambda n: (n, 0, 0))]
                 + [_const_spec(a) for a in consts],
        out_specs=(pl.BlockSpec((None, in_ch, M), lambda n: (n, 0, 0)),
                   pl.BlockSpec((None, 1, ncls_pad), lambda n: (n, 0, 0))),
        out_shape=(jax.ShapeDtypeStruct((batch, in_ch, M), jnp.float32),
                   jax.ShapeDtypeStruct((batch, 1, ncls_pad), jnp.float32)),
        scratch_shapes=[pltpu.VMEM((c2, Mh), jnp.float32),        # encoder feature map
                        pltpu.VMEM((1, c2 * Mh), jnp.float32)],   # FCView flatten buffer
        compiler_params=pltpu.CompilerParams(
            dimension_semantics=("parallel",),       # v7x megacore: images split across TCs
            vmem_limit_bytes=32 * 1024 * 1024),      # ~1.3 MB constants + tiny per-step blocks
    )

    def forward(x_nchw):
        # NCHW -> (N, C_pad, H*W) f32; channel padding keeps the in-kernel tap stack aligned.
        x_b = jnp.pad(x_nchw.reshape(batch, in_ch, M).astype(jnp.float32),
                      ((0, 0), (0, in_pad - in_ch), (0, 0)))
        dec_b, pred_pad = fused(x_b, *consts)
        decoding = dec_b.reshape(batch, in_ch, H, W)              # already NCHW order
        prediction = pred_pad[:, 0, :num_classes]
        return decoding, prediction

    return forward


# ------------------------------- deterministic params -------------------------------- #

def init_params(key, in_ch, num_ch, img_size, k, num_classes):
    channel_mult = 2
    c2 = num_ch * channel_mult
    fc = (img_size // 2) ** 2 * c2                    # bottleneck_size() for type 'B'
    keys = jax.random.split(key, 12)

    def nrm(kk, shape, s=0.1):
        return jax.random.normal(kk, shape, jnp.float32) * s

    return dict(
        # upstream Conv2d(in_ch -> num_ch)   (HWIO layout)
        w_up=nrm(keys[0], (k, k, in_ch, num_ch)), b_up=nrm(keys[1], (num_ch,)),
        # encoder Conv2d(num_ch -> 2*num_ch) + BN
        w_e=nrm(keys[2], (k, k, num_ch, c2)), b_e=nrm(keys[3], (c2,)),
        bn_e=(jnp.ones((c2,), jnp.float32), jnp.zeros((c2,), jnp.float32),
              nrm(keys[4], (c2,), 0.05), jnp.ones((c2,), jnp.float32)),
        # decoder Conv2d(2*num_ch -> num_ch) + BN
        w_d1=nrm(keys[5], (k, k, c2, num_ch)), b_d1=nrm(keys[6], (num_ch,)),
        bn_d1=(jnp.ones((num_ch,), jnp.float32), jnp.zeros((num_ch,), jnp.float32),
               nrm(keys[7], (num_ch,), 0.05), jnp.ones((num_ch,), jnp.float32)),
        # decoder Conv2d(num_ch -> in_ch) + BN (+ Sigmoid)
        w_d2=nrm(keys[8], (k, k, num_ch, in_ch)), b_d2=nrm(keys[9], (in_ch,)),
        bn_d2=(jnp.ones((in_ch,), jnp.float32), jnp.zeros((in_ch,), jnp.float32),
               jnp.zeros((in_ch,), jnp.float32), jnp.ones((in_ch,), jnp.float32)),
        # supervision head (w1 stored as (fc, 512), i.e. transposed PyTorch Linear weight)
        w1=nrm(keys[10], (fc, 512), 0.02), b1=jnp.zeros((512,), jnp.float32),
        w2=nrm(keys[11], (512, num_classes), 0.05), b2=jnp.zeros((num_classes,), jnp.float32),
    )


if __name__ == "__main__":
    key = jax.random.PRNGKey(0)
    kx, kp = jax.random.split(key)

    # Small shapes consistent with the module: channels=(4, 8), img_size=16,
    # kernel_size=3, encoder_type='B', num_classes=10, dropout=0.0.
    N, in_ch, num_ch, img, ksz, ncls = 2, 4, 8, 16, 3, 10
    x = jax.random.normal(kx, (N, in_ch, img, img), jnp.float32)
    params = init_params(kp, in_ch, num_ch, img, ksz, ncls)

    forward = make_forward(params, N, in_ch, num_ch, img, ncls)
    fwd = jax.jit(forward)
    decoding, prediction = fwd(x)
    jax.block_until_ready((decoding, prediction))

    assert decoding.shape == (N, in_ch, img, img)
    assert prediction.shape == (N, ncls)
    assert bool(jnp.all((decoding >= 0.0) & (decoding <= 1.0)))  # sigmoid output
    assert bool(jnp.all(jnp.isfinite(prediction)))
    print("KERNEL_OK")
</pallas_src>

<mosaic_0001>
module attributes {stable_mosaic.version = 11 : i64} {
  func.func @_fused_kernel(%arg0: i32, %arg1: memref<1x8x256xf32, #tpu.memory_space<vmem>>, %arg2: memref<9x256xf32, #tpu.memory_space<vmem>>, %arg3: memref<9x256xf32, #tpu.memory_space<vmem>>, %arg4: memref<8x72xbf16, #tpu.memory_space<vmem>>, %arg5: memref<8x1xf32, #tpu.memory_space<vmem>>, %arg6: memref<8x1xf32, #tpu.memory_space<vmem>>, %arg7: memref<16x72xbf16, #tpu.memory_space<vmem>>, %arg8: memref<16x1xf32, #tpu.memory_space<vmem>>, %arg9: memref<16x1xf32, #tpu.memory_space<vmem>>, %arg10: memref<8x144xbf16, #tpu.memory_space<vmem>>, %arg11: memref<8x1xf32, #tpu.memory_space<vmem>>, %arg12: memref<8x1xf32, #tpu.memory_space<vmem>>, %arg13: memref<4x72xbf16, #tpu.memory_space<vmem>>, %arg14: memref<4x1xf32, #tpu.memory_space<vmem>>, %arg15: memref<4x1xf32, #tpu.memory_space<vmem>>, %arg16: memref<256x64xbf16, #tpu.memory_space<vmem>>, %arg17: memref<64x256xbf16, #tpu.memory_space<vmem>>, %arg18: memref<1024x512xbf16, #tpu.memory_space<vmem>>, %arg19: memref<1x512xf32, #tpu.memory_space<vmem>>, %arg20: memref<512x128xbf16, #tpu.memory_space<vmem>>, %arg21: memref<1x128xf32, #tpu.memory_space<vmem>>, %arg22: memref<1x4x256xf32, #tpu.memory_space<vmem>>, %arg23: memref<1x1x128xf32, #tpu.memory_space<vmem>>, %arg24: memref<16x64xf32, #tpu.memory_space<vmem>>, %arg25: memref<1x1024xf32, #tpu.memory_space<vmem>>) attributes {dimension_semantics = [#tpu.dimension_semantics<parallel>], iteration_bounds = array<i64: 2>, scalar_prefetch = 0 : i64, scratch_operands = 2 : i64, tpu.core_type = #tpu.core_type<tc>, window_params = [{transform_indices = @transform_0, window_bounds = array<i64: 1, 8, 256>}, {pipeline_mode = #tpu.pipeline_mode<synchronous>, transform_indices = @transform_1, window_bounds = array<i64: 9, 256>}, {pipeline_mode = #tpu.pipeline_mode<synchronous>, transform_indices = @transform_2, window_bounds = array<i64: 9, 256>}, {pipeline_mode = #tpu.pipeline_mode<synchronous>, transform_indices = @transform_3, window_bounds = array<i64: 8, 72>}, {pipeline_mode = #tpu.pipeline_mode<synchronous>, transform_indices = @transform_4, window_bounds = array<i64: 8, 1>}, {pipeline_mode = #tpu.pipeline_mode<synchronous>, transform_indices = @transform_5, window_bounds = array<i64: 8, 1>}, {pipeline_mode = #tpu.pipeline_mode<synchronous>, transform_indices = @transform_6, window_bounds = array<i64: 16, 72>}, {pipeline_mode = #tpu.pipeline_mode<synchronous>, transform_indices = @transform_7, window_bounds = array<i64: 16, 1>}, {pipeline_mode = #tpu.pipeline_mode<synchronous>, transform_indices = @transform_8, window_bounds = array<i64: 16, 1>}, {pipeline_mode = #tpu.pipeline_mode<synchronous>, transform_indices = @transform_9, window_bounds = array<i64: 8, 144>}, {pipeline_mode = #tpu.pipeline_mode<synchronous>, transform_indices = @transform_10, window_bounds = array<i64: 8, 1>}, {pipeline_mode = #tpu.pipeline_mode<synchronous>, transform_indices = @transform_11, window_bounds = array<i64: 8, 1>}, {pipeline_mode = #tpu.pipeline_mode<synchronous>, transform_indices = @transform_12, window_bounds = array<i64: 4, 72>}, {pipeline_mode = #tpu.pipeline_mode<synchronous>, transform_indices = @transform_13, window_bounds = array<i64: 4, 1>}, {pipeline_mode = #tpu.pipeline_mode<synchronous>, transform_indices = @transform_14, window_bounds = array<i64: 4, 1>}, {pipeline_mode = #tpu.pipeline_mode<synchronous>, transform_indices = @transform_15, window_bounds = array<i64: 256, 64>}, {pipeline_mode = #tpu.pipeline_mode<synchronous>, transform_indices = @transform_16, window_bounds = array<i64: 64, 256>}, {pipeline_mode = #tpu.pipeline_mode<synchronous>, transform_indices = @transform_17, window_bounds = array<i64: 1024, 512>}, {pipeline_mode = #tpu.pipeline_mode<synchronous>, transform_indices = @transform_18, window_bounds = array<i64: 1, 512>}, {pipeline_mode = #tpu.pipeline_mode<synchronous>, transform_indices = @transform_19, window_bounds = array<i64: 512, 128>}, {pipeline_mode = #tpu.pipeline_mode<synchronous>, transform_indices = @transform_20, window_bounds = array<i64: 1, 128>}, {transform_indices = @transform_21, window_bounds = array<i64: 1, 4, 256>}, {transform_indices = @transform_22, window_bounds = array<i64: 1, 1, 128>}]} {
    %c0 = arith.constant 0 : index
    %c0_0 = arith.constant 0 : index
    %c0_1 = arith.constant 0 : index
    %0 = vector.load %arg1[%c0, %c0_0, %c0_1] : memref<1x8x256xf32, #tpu.memory_space<vmem>>, vector<1x8x256xf32>
    %1 = vector.shape_cast %0 : vector<1x8x256xf32> to vector<8x256xf32>
    %c17_i32 = arith.constant 17 : i32
    %2 = tpu.dynamic_rotate %1 by %c17_i32 dim 1 : vector<8x256xf32>, i32 -> vector<8x256xf32>
    %c0_2 = arith.constant 0 : index
    %c0_3 = arith.constant 0 : index
    %3 = vector.load %arg2[%c0_2, %c0_3] : memref<9x256xf32, #tpu.memory_space<vmem>>, vector<1x256xf32>
    %4 = vector.broadcast %3 : vector<1x256xf32> to vector<8x256xf32>
    %5 = arith.mulf %2, %4 : vector<8x256xf32>
    %c16_i32 = arith.constant 16 : i32
    %6 = tpu.dynamic_rotate %1 by %c16_i32 dim 1 : vector<8x256xf32>, i32 -> vector<8x256xf32>
    %c1 = arith.constant 1 : index
    %c0_4 = arith.constant 0 : index
    %7 = vector.load %arg2[%c1, %c0_4] : memref<9x256xf32, #tpu.memory_space<vmem>>, vector<1x256xf32>
    %8 = vector.broadcast %7 : vector<1x256xf32> to vector<8x256xf32>
    %9 = arith.mulf %6, %8 : vector<8x256xf32>
    %c15_i32 = arith.constant 15 : i32
    %10 = tpu.dynamic_rotate %1 by %c15_i32 dim 1 : vector<8x256xf32>, i32 -> vector<8x256xf32>
    %c2 = arith.constant 2 : index
    %c0_5 = arith.constant 0 : index
    %11 = vector.load %arg2[%c2, %c0_5] : memref<9x256xf32, #tpu.memory_space<vmem>>, vector<1x256xf32>
    %12 = vector.broadcast %11 : vector<1x256xf32> to vector<8x256xf32>
    %13 = arith.mulf %10, %12 : vector<8x256xf32>
    %c1_i32 = arith.constant 1 : i32
    %14 = tpu.dynamic_rotate %1 by %c1_i32 dim 1 : vector<8x256xf32>, i32 -> vector<8x256xf32>
    %c3 = arith.constant 3 : index
    %c0_6 = arith.constant 0 : index
    %15 = vector.load %arg2[%c3, %c0_6] : memref<9x256xf32, #tpu.memory_space<vmem>>, vector<1x256xf32>
    %16 = vector.broadcast %15 : vector<1x256xf32> to vector<8x256xf32>
    %17 = arith.mulf %14, %16 : vector<8x256xf32>
    %c255_i32 = arith.constant 255 : i32
    %18 = tpu.dynamic_rotate %1 by %c255_i32 dim 1 : vector<8x256xf32>, i32 -> vector<8x256xf32>
    %c5 = arith.constant 5 : index
    %c0_7 = arith.constant 0 : index
    %19 = vector.load %arg2[%c5, %c0_7] : memref<9x256xf32, #tpu.memory_space<vmem>>, vector<1x256xf32>
    %20 = vector.broadcast %19 : vector<1x256xf32> to vector<8x256xf32>
    %21 = arith.mulf %18, %20 : vector<8x256xf32>
    %c241_i32 = arith.constant 241 : i32
    %22 = tpu.dynamic_rotate %1 by %c241_i32 dim 1 : vector<8x256xf32>, i32 -> vector<8x256xf32>
    %c6 = arith.constant 6 : index
    %c0_8 = arith.constant 0 : index
    %23 = vector.load %arg2[%c6, %c0_8] : memref<9x256xf32, #tpu.memory_space<vmem>>, vector<1x256xf32>
    %24 = vector.broadcast %23 : vector<1x256xf32> to vector<8x256xf32>
    %25 = arith.mulf %22, %24 : vector<8x256xf32>
    %c240_i32 = arith.constant 240 : i32
    %26 = tpu.dynamic_rotate %1 by %c240_i32 dim 1 : vector<8x256xf32>, i32 -> vector<8x256xf32>
    %c7 = arith.constant 7 : index
    %c0_9 = arith.constant 0 : index
    %27 = vector.load %arg2[%c7, %c0_9] : memref<9x256xf32, #tpu.memory_space<vmem>>, vector<1x256xf32>
    %28 = vector.broadcast %27 : vector<1x256xf32> to vector<8x256xf32>
    %29 = arith.mulf %26, %28 : vector<8x256xf32>
    %c239_i32 = arith.constant 239 : i32
    %30 = tpu.dynamic_rotate %1 by %c239_i32 dim 1 : vector<8x256xf32>, i32 -> vector<8x256xf32>
    %c8 = arith.constant 8 : index
    %c0_10 = arith.constant 0 : index
    %31 = vector.load %arg2[%c8, %c0_10] : memref<9x256xf32, #tpu.memory_space<vmem>>, vector<1x256xf32>
    %32 = vector.broadcast %31 : vector<1x256xf32> to vector<8x256xf32>
    %33 = arith.mulf %30, %32 : vector<8x256xf32>
    %34 = tpu.concatenate %5, %9, %13, %17, %1, %21, %25, %29, %33 in 0 : vector<8x256xf32>, vector<8x256xf32>, vector<8x256xf32>, vector<8x256xf32>, vector<8x256xf32>, vector<8x256xf32>, vector<8x256xf32>, vector<8x256xf32>, vector<8x256xf32> -> vector<72x256xf32>
    %35 = arith.truncf %34 : vector<72x256xf32> to vector<72x256xbf16>
    %c0_11 = arith.constant 0 : index
    %c0_12 = arith.constant 0 : index
    %36 = vector.load %arg4[%c0_11, %c0_12] : memref<8x72xbf16, #tpu.memory_space<vmem>>, vector<8x72xbf16>
    %cst = arith.constant dense<0.000000e+00> : vector<8x256xf32>
    %37 = tpu.matmul %36, %35, %cst {dimension_numbers = #tpu.dot_dimension_numbers<[1], [0], [0], [1], [0, 0, 1, 1], [], []>} : vector<8x72xbf16>, vector<72x256xbf16>, vector<8x256xf32> -> vector<8x256xf32>
    %c0_13 = arith.constant 0 : index
    %c0_14 = arith.constant 0 : index
    %38 = vector.load %arg5[%c0_13, %c0_14] : memref<8x1xf32, #tpu.memory_space<vmem>>, vector<8x1xf32>
    %39 = vector.broadcast %38 : vector<8x1xf32> to vector<8x256xf32>
    %40 = arith.mulf %37, %39 : vector<8x256xf32>
    %c0_15 = arith.constant 0 : index
    %c0_16 = arith.constant 0 : index
    %41 = vector.load %arg6[%c0_15, %c0_16] : memref<8x1xf32, #tpu.memory_space<vmem>>, vector<8x1xf32>
    %42 = vector.broadcast %41 : vector<8x1xf32> to vector<8x256xf32>
    %43 = arith.addf %40, %42 : vector<8x256xf32>
    %c255_i32_17 = arith.constant 255 : i32
    %44 = tpu.dynamic_rotate %43 by %c255_i32_17 dim 1 : vector<8x256xf32>, i32 -> vector<8x256xf32>
    %45 = arith.maximumf %43, %44 : vector<8x256xf32>
    %c240_i32_18 = arith.constant 240 : i32
    %46 = tpu.dynamic_rotate %45 by %c240_i32_18 dim 1 : vector<8x256xf32>, i32 -> vector<8x256xf32>
    %47 = arith.maximumf %45, %46 : vector<8x256xf32>
    %c34_i32 = arith.constant 34 : i32
    %48 = tpu.dynamic_rotate %47 by %c34_i32 dim 1 : vector<8x256xf32>, i32 -> vector<8x256xf32>
    %c0_19 = arith.constant 0 : index
    %c0_20 = arith.constant 0 : index
    %49 = vector.load %arg3[%c0_19, %c0_20] : memref<9x256xf32, #tpu.memory_space<vmem>>, vector<1x256xf32>
    %50 = vector.broadcast %49 : vector<1x256xf32> to vector<8x256xf32>
    %51 = arith.mulf %48, %50 : vector<8x256xf32>
    %c32_i32 = arith.constant 32 : i32
    %52 = tpu.dynamic_rotate %47 by %c32_i32 dim 1 : vector<8x256xf32>, i32 -> vector<8x256xf32>
    %c1_21 = arith.constant 1 : index
    %c0_22 = arith.constant 0 : index
    %53 = vector.load %arg3[%c1_21, %c0_22] : memref<9x256xf32, #tpu.memory_space<vmem>>, vector<1x256xf32>
    %54 = vector.broadcast %53 : vector<1x256xf32> to vector<8x256xf32>
    %55 = arith.mulf %52, %54 : vector<8x256xf32>
    %c30_i32 = arith.constant 30 : i32
    %56 = tpu.dynamic_rotate %47 by %c30_i32 dim 1 : vector<8x256xf32>, i32 -> vector<8x256xf32>
    %c2_23 = arith.constant 2 : index
    %c0_24 = arith.constant 0 : index
    %57 = vector.load %arg3[%c2_23, %c0_24] : memref<9x256xf32, #tpu.memory_space<vmem>>, vector<1x256xf32>
    %58 = vector.broadcast %57 : vector<1x256xf32> to vector<8x256xf32>
    %59 = arith.mulf %56, %58 : vector<8x256xf32>
    %c2_i32 = arith.constant 2 : i32
    %60 = tpu.dynamic_rotate %47 by %c2_i32 dim 1 : vector<8x256xf32>, i32 -> vector<8x256xf32>
    %c3_25 = arith.constant 3 : index
    %c0_26 = arith.constant 0 : index
    %61 = vector.load %arg3[%c3_25, %c0_26] : memref<9x256xf32, #tpu.memory_space<vmem>>, vector<1x256xf32>
    %62 = vector.broadcast %61 : vector<1x256xf32> to vector<8x256xf32>
    %63 = arith.mulf %60, %62 : vector<8x256xf32>
    %c254_i32 = arith.constant 254 : i32
    %64 = tpu.dynamic_rotate %47 by %c254_i32 dim 1 : vector<8x256xf32>, i32 -> vector<8x256xf32>
    %c5_27 = arith.constant 5 : index
    %c0_28 = arith.constant 0 : index
    %65 = vector.load %arg3[%c5_27, %c0_28] : memref<9x256xf32, #tpu.memory_space<vmem>>, vector<1x256xf32>
    %66 = vector.broadcast %65 : vector<1x256xf32> to vector<8x256xf32>
    %67 = arith.mulf %64, %66 : vector<8x256xf32>
    %c226_i32 = arith.constant 226 : i32
    %68 = tpu.dynamic_rotate %47 by %c226_i32 dim 1 : vector<8x256xf32>, i32 -> vector<8x256xf32>
    %c6_29 = arith.constant 6 : index
    %c0_30 = arith.constant 0 : index
    %69 = vector.load %arg3[%c6_29, %c0_30] : memref<9x256xf32, #tpu.memory_space<vmem>>, vector<1x256xf32>
    %70 = vector.broadcast %69 : vector<1x256xf32> to vector<8x256xf32>
    %71 = arith.mulf %68, %70 : vector<8x256xf32>
    %c224_i32 = arith.constant 224 : i32
    %72 = tpu.dynamic_rotate %47 by %c224_i32 dim 1 : vector<8x256xf32>, i32 -> vector<8x256xf32>
    %c7_31 = arith.constant 7 : index
    %c0_32 = arith.constant 0 : index
    %73 = vector.load %arg3[%c7_31, %c0_32] : memref<9x256xf32, #tpu.memory_space<vmem>>, vector<1x256xf32>
    %74 = vector.broadcast %73 : vector<1x256xf32> to vector<8x256xf32>
    %75 = arith.mulf %72, %74 : vector<8x256xf32>
    %c222_i32 = arith.constant 222 : i32
    %76 = tpu.dynamic_rotate %47 by %c222_i32 dim 1 : vector<8x256xf32>, i32 -> vector<8x256xf32>
    %c8_33 = arith.constant 8 : index
    %c0_34 = arith.constant 0 : index
    %77 = vector.load %arg3[%c8_33, %c0_34] : memref<9x256xf32, #tpu.memory_space<vmem>>, vector<1x256xf32>
    %78 = vector.broadcast %77 : vector<1x256xf32> to vector<8x256xf32>
    %79 = arith.mulf %76, %78 : vector<8x256xf32>
    %80 = tpu.concatenate %51, %55, %59, %63, %47, %67, %71, %75, %79 in 0 : vector<8x256xf32>, vector<8x256xf32>, vector<8x256xf32>, vector<8x256xf32>, vector<8x256xf32>, vector<8x256xf32>, vector<8x256xf32>, vector<8x256xf32>, vector<8x256xf32> -> vector<72x256xf32>
    %81 = arith.truncf %80 : vector<72x256xf32> to vector<72x256xbf16>
    %c0_35 = arith.constant 0 : index
    %c0_36 = arith.constant 0 : index
    %82 = vector.load %arg7[%c0_35, %c0_36] : memref<16x72xbf16, #tpu.memory_space<vmem>>, vector<16x72xbf16>
    %cst_37 = arith.constant dense<0.000000e+00> : vector<16x256xf32>
    %83 = tpu.matmul %82, %81, %cst_37 {dimension_numbers = #tpu.dot_dimension_numbers<[1], [0], [0], [1], [0, 0, 1, 1], [], []>} : vector<16x72xbf16>, vector<72x256xbf16>, vector<16x256xf32> -> vector<16x256xf32>
    %84 = arith.truncf %83 : vector<16x256xf32> to vector<16x256xbf16>
    %c0_38 = arith.constant 0 : index
    %c0_39 = arith.constant 0 : index
    %85 = vector.load %arg16[%c0_38, %c0_39] : memref<256x64xbf16, #tpu.memory_space<vmem>>, vector<256x64xbf16>
    %cst_40 = arith.constant dense<0.000000e+00> : vector<16x64xf32>
    %86 = tpu.matmul %84, %85, %cst_40 {dimension_numbers = #tpu.dot_dimension_numbers<[1], [0], [0], [1], [0, 0, 1, 1], [], []>} : vector<16x256xbf16>, vector<256x64xbf16>, vector<16x64xf32> -> vector<16x64xf32>
    %c0_41 = arith.constant 0 : index
    %c0_42 = arith.constant 0 : index
    %87 = vector.load %arg8[%c0_41, %c0_42] : memref<16x1xf32, #tpu.memory_space<vmem>>, vector<16x1xf32>
    %88 = vector.broadcast %87 : vector<16x1xf32> to vector<16x64xf32>
    %89 = arith.mulf %86, %88 : vector<16x64xf32>
    %c0_43 = arith.constant 0 : index
    %c0_44 = arith.constant 0 : index
    %90 = vector.load %arg9[%c0_43, %c0_44] : memref<16x1xf32, #tpu.memory_space<vmem>>, vector<16x1xf32>
    %91 = vector.broadcast %90 : vector<16x1xf32> to vector<16x64xf32>
    %92 = arith.addf %89, %91 : vector<16x64xf32>
    %c0_45 = arith.constant 0 : index
    %c0_46 = arith.constant 0 : index
    %93 = vector.load %arg24[%c0_45, %c0_46] : memref<16x64xf32, #tpu.memory_space<vmem>>, vector<16x64xf32>
    tpu.vector_store %arg24[%c0_45, %c0_46], %92 {strides = array<i32>} : memref<16x64xf32, #tpu.memory_space<vmem>>, vector<16x64xf32>,
    %c0_47 = arith.constant 0 : index
    %c0_48 = arith.constant 0 : index
    %94 = vector.load %arg24[%c0_47, %c0_48] : memref<16x64xf32, #tpu.memory_space<vmem>>, vector<1x64xf32>
    %c0_49 = arith.constant 0 : index
    %c0_50 = arith.constant 0 : index
    %95 = vector.load %arg25[%c0_49, %c0_50] : memref<1x1024xf32, #tpu.memory_space<vmem>>, vector<1x64xf32>
    tpu.vector_store %arg25[%c0_49, %c0_50], %94 {strides = array<i32>} : memref<1x1024xf32, #tpu.memory_space<vmem>>, vector<1x64xf32>,
    %c1_51 = arith.constant 1 : index
    %c0_52 = arith.constant 0 : index
    %96 = vector.load %arg24[%c1_51, %c0_52] : memref<16x64xf32, #tpu.memory_space<vmem>>, vector<1x64xf32>
    %c0_53 = arith.constant 0 : index
    %c64 = arith.constant 64 : index
    %97 = vector.load %arg25[%c0_53, %c64] : memref<1x1024xf32, #tpu.memory_space<vmem>>, vector<1x64xf32>
    tpu.vector_store %arg25[%c0_53, %c64], %96 {strides = array<i32>} : memref<1x1024xf32, #tpu.memory_space<vmem>>, vector<1x64xf32>,
    %c2_54 = arith.constant 2 : index
    %c0_55 = arith.constant 0 : index
    %98 = vector.load %arg24[%c2_54, %c0_55] : memref<16x64xf32, #tpu.memory_space<vmem>>, vector<1x64xf32>
    %c0_56 = arith.constant 0 : index
    %c128 = arith.constant 128 : index
    %99 = vector.load %arg25[%c0_56, %c128] : memref<1x1024xf32, #tpu.memory_space<vmem>>, vector<1x64xf32>
    tpu.vector_store %arg25[%c0_56, %c128], %98 {strides = array<i32>} : memref<1x1024xf32, #tpu.memory_space<vmem>>, vector<1x64xf32>,
    %c3_57 = arith.constant 3 : index
    %c0_58 = arith.constant 0 : index
    %100 = vector.load %arg24[%c3_57, %c0_58] : memref<16x64xf32, #tpu.memory_space<vmem>>, vector<1x64xf32>
    %c0_59 = arith.constant 0 : index
    %c192 = arith.constant 192 : index
    %101 = vector.load %arg25[%c0_59, %c192] : memref<1x1024xf32, #tpu.memory_space<vmem>>, vector<1x64xf32>
    tpu.vector_store %arg25[%c0_59, %c192], %100 {strides = array<i32>} : memref<1x1024xf32, #tpu.memory_space<vmem>>, vector<1x64xf32>,
    %c4 = arith.constant 4 : index
    %c0_60 = arith.constant 0 : index
    %102 = vector.load %arg24[%c4, %c0_60] : memref<16x64xf32, #tpu.memory_space<vmem>>, vector<1x64xf32>
    %c0_61 = arith.constant 0 : index
    %c256 = arith.constant 256 : index
    %103 = vector.load %arg25[%c0_61, %c256] : memref<1x1024xf32, #tpu.memory_space<vmem>>, vector<1x64xf32>
    tpu.vector_store %arg25[%c0_61, %c256], %102 {strides = array<i32>} : memref<1x1024xf32, #tpu.memory_space<vmem>>, vector<1x64xf32>,
    %c5_62 = arith.constant 5 : index
    %c0_63 = arith.constant 0 : index
    %104 = vector.load %arg24[%c5_62, %c0_63] : memref<16x64xf32, #tpu.memory_space<vmem>>, vector<1x64xf32>
    %c0_64 = arith.constant 0 : index
    %c320 = arith.constant 320 : index
    %105 = vector.load %arg25[%c0_64, %c320] : memref<1x1024xf32, #tpu.memory_space<vmem>>, vector<1x64xf32>
    tpu.vector_store %arg25[%c0_64, %c320], %104 {strides = array<i32>} : memref<1x1024xf32, #tpu.memory_space<vmem>>, vector<1x64xf32>,
    %c6_65 = arith.constant 6 : index
    %c0_66 = arith.constant 0 : index
    %106 = vector.load %arg24[%c6_65, %c0_66] : memref<16x64xf32, #tpu.memory_space<vmem>>, vector<1x64xf32>
    %c0_67 = arith.constant 0 : index
    %c384 = arith.constant 384 : index
    %107 = vector.load %arg25[%c0_67, %c384] : memref<1x1024xf32, #tpu.memory_space<vmem>>, vector<1x64xf32>
    tpu.vector_store %arg25[%c0_67, %c384], %106 {strides = array<i32>} : memref<1x1024xf32, #tpu.memory_space<vmem>>, vector<1x64xf32>,
    %c7_68 = arith.constant 7 : index
    %c0_69 = arith.constant 0 : index
    %108 = vector.load %arg24[%c7_68, %c0_69] : memref<16x64xf32, #tpu.memory_space<vmem>>, vector<1x64xf32>
    %c0_70 = arith.constant 0 : index
    %c448 = arith.constant 448 : index
    %109 = vector.load %arg25[%c0_70, %c448] : memref<1x1024xf32, #tpu.memory_space<vmem>>, vector<1x64xf32>
    tpu.vector_store %arg25[%c0_70, %c448], %108 {strides = array<i32>} : memref<1x1024xf32, #tpu.memory_space<vmem>>, vector<1x64xf32>,
    %c8_71 = arith.constant 8 : index
    %c0_72 = arith.constant 0 : index
    %110 = vector.load %arg24[%c8_71, %c0_72] : memref<16x64xf32, #tpu.memory_space<vmem>>, vector<1x64xf32>
    %c0_73 = arith.constant 0 : index
    %c512 = arith.constant 512 : index
    %111 = vector.load %arg25[%c0_73, %c512] : memref<1x1024xf32, #tpu.memory_space<vmem>>, vector<1x64xf32>
    tpu.vector_store %arg25[%c0_73, %c512], %110 {strides = array<i32>} : memref<1x1024xf32, #tpu.memory_space<vmem>>, vector<1x64xf32>,
    %c9 = arith.constant 9 : index
    %c0_74 = arith.constant 0 : index
    %112 = vector.load %arg24[%c9, %c0_74] : memref<16x64xf32, #tpu.memory_space<vmem>>, vector<1x64xf32>
    %c0_75 = arith.constant 0 : index
    %c576 = arith.constant 576 : index
    %113 = vector.load %arg25[%c0_75, %c576] : memref<1x1024xf32, #tpu.memory_space<vmem>>, vector<1x64xf32>
    tpu.vector_store %arg25[%c0_75, %c576], %112 {strides = array<i32>} : memref<1x1024xf32, #tpu.memory_space<vmem>>, vector<1x64xf32>,
    %c10 = arith.constant 10 : index
    %c0_76 = arith.constant 0 : index
    %114 = vector.load %arg24[%c10, %c0_76] : memref<16x64xf32, #tpu.memory_space<vmem>>, vector<1x64xf32>
    %c0_77 = arith.constant 0 : index
    %c640 = arith.constant 640 : index
    %115 = vector.load %arg25[%c0_77, %c640] : memref<1x1024xf32, #tpu.memory_space<vmem>>, vector<1x64xf32>
    tpu.vector_store %arg25[%c0_77, %c640], %114 {strides = array<i32>} : memref<1x1024xf32, #tpu.memory_space<vmem>>, vector<1x64xf32>,
    %c11 = arith.constant 11 : index
    %c0_78 = arith.constant 0 : index
    %116 = vector.load %arg24[%c11, %c0_78] : memref<16x64xf32, #tpu.memory_space<vmem>>, vector<1x64xf32>
    %c0_79 = arith.constant 0 : index
    %c704 = arith.constant 704 : index
    %117 = vector.load %arg25[%c0_79, %c704] : memref<1x1024xf32, #tpu.memory_space<vmem>>, vector<1x64xf32>
    tpu.vector_store %arg25[%c0_79, %c704], %116 {strides = array<i32>} : memref<1x1024xf32, #tpu.memory_space<vmem>>, vector<1x64xf32>,
    %c12 = arith.constant 12 : index
    %c0_80 = arith.constant 0 : index
    %118 = vector.load %arg24[%c12, %c0_80] : memref<16x64xf32, #tpu.memory_space<vmem>>, vector<1x64xf32>
    %c0_81 = arith.constant 0 : index
    %c768 = arith.constant 768 : index
    %119 = vector.load %arg25[%c0_81, %c768] : memref<1x1024xf32, #tpu.memory_space<vmem>>, vector<1x64xf32>
    tpu.vector_store %arg25[%c0_81, %c768], %118 {strides = array<i32>} : memref<1x1024xf32, #tpu.memory_space<vmem>>, vector<1x64xf32>,
    %c13 = arith.constant 13 : index
    %c0_82 = arith.constant 0 : index
    %120 = vector.load %arg24[%c13, %c0_82] : memref<16x64xf32, #tpu.memory_space<vmem>>, vector<1x64xf32>
    %c0_83 = arith.constant 0 : index
    %c832 = arith.constant 832 : index
    %121 = vector.load %arg25[%c0_83, %c832] : memref<1x1024xf32, #tpu.memory_space<vmem>>, vector<1x64xf32>
    tpu.vector_store %arg25[%c0_83, %c832], %120 {strides = array<i32>} : memref<1x1024xf32, #tpu.memory_space<vmem>>, vector<1x64xf32>,
    %c14 = arith.constant 14 : index
    %c0_84 = arith.constant 0 : index
    %122 = vector.load %arg24[%c14, %c0_84] : memref<16x64xf32, #tpu.memory_space<vmem>>, vector<1x64xf32>
    %c0_85 = arith.constant 0 : index
    %c896 = arith.constant 896 : index
    %123 = vector.load %arg25[%c0_85, %c896] : memref<1x1024xf32, #tpu.memory_space<vmem>>, vector<1x64xf32>
    tpu.vector_store %arg25[%c0_85, %c896], %122 {strides = array<i32>} : memref<1x1024xf32, #tpu.memory_space<vmem>>, vector<1x64xf32>,
    %c15 = arith.constant 15 : index
    %c0_86 = arith.constant 0 : index
    %124 = vector.load %arg24[%c15, %c0_86] : memref<16x64xf32, #tpu.memory_space<vmem>>, vector<1x64xf32>
    %c0_87 = arith.constant 0 : index
    %c960 = arith.constant 960 : index
    %125 = vector.load %arg25[%c0_87, %c960] : memref<1x1024xf32, #tpu.memory_space<vmem>>, vector<1x64xf32>
    tpu.vector_store %arg25[%c0_87, %c960], %124 {strides = array<i32>} : memref<1x1024xf32, #tpu.memory_space<vmem>>, vector<1x64xf32>,
    %c0_88 = arith.constant 0 : index
    %c0_89 = arith.constant 0 : index
    %126 = vector.load %arg25[%c0_88, %c0_89] : memref<1x1024xf32, #tpu.memory_space<vmem>>, vector<1x1024xf32>
    %127 = arith.truncf %126 : vector<1x1024xf32> to vector<1x1024xbf16>
    %c0_90 = arith.constant 0 : index
    %c0_91 = arith.constant 0 : index
    %128 = vector.load %arg18[%c0_90, %c0_91] : memref<1024x512xbf16, #tpu.memory_space<vmem>>, vector<1024x512xbf16>
    %cst_92 = arith.constant dense<0.000000e+00> : vector<1x512xf32>
    %129 = tpu.matmul %127, %128, %cst_92 {dimension_numbers = #tpu.dot_dimension_numbers<[1], [0], [0], [1], [0, 0, 1, 1], [], []>} : vector<1x1024xbf16>, vector<1024x512xbf16>, vector<1x512xf32> -> vector<1x512xf32>
    %c0_93 = arith.constant 0 : index
    %c0_94 = arith.constant 0 : index
    %130 = vector.load %arg19[%c0_93, %c0_94] : memref<1x512xf32, #tpu.memory_space<vmem>>, vector<1x512xf32>
    %131 = arith.addf %129, %130 : vector<1x512xf32>
    %cst_95 = arith.constant 0.000000e+00 : f32
    %132 = vector.broadcast %cst_95 : f32 to vector<1x512xf32>
    %133 = arith.maximumf %131, %132 : vector<1x512xf32>
    %134 = arith.truncf %133 : vector<1x512xf32> to vector<1x512xbf16>
    %c0_96 = arith.constant 0 : index
    %c0_97 = arith.constant 0 : index
    %135 = vector.load %arg20[%c0_96, %c0_97] : memref<512x128xbf16, #tpu.memory_space<vmem>>, vector<512x128xbf16>
    %cst_98 = arith.constant dense<0.000000e+00> : vector<1x128xf32>
    %136 = tpu.matmul %134, %135, %cst_98 {dimension_numbers = #tpu.dot_dimension_numbers<[1], [0], [0], [1], [0, 0, 1, 1], [], []>} : vector<1x512xbf16>, vector<512x128xbf16>, vector<1x128xf32> -> vector<1x128xf32>
    %c0_99 = arith.constant 0 : index
    %c0_100 = arith.constant 0 : index
    %137 = vector.load %arg21[%c0_99, %c0_100] : memref<1x128xf32, #tpu.memory_space<vmem>>, vector<1x128xf32>
    %138 = arith.addf %136, %137 : vector<1x128xf32>
    %c0_101 = arith.constant 0 : index
    %c0_102 = arith.constant 0 : index
    %c0_103 = arith.constant 0 : index
    %139 = vector.load %arg23[%c0_101, %c0_102, %c0_103] : memref<1x1x128xf32, #tpu.memory_space<vmem>>, vector<1x1x128xf32>
    %140 = vector.shape_cast %139 : vector<1x1x128xf32> to vector<1x128xf32>
    %141 = vector.shape_cast %138 : vector<1x128xf32> to vector<1x1x128xf32>
    tpu.vector_store %arg23[%c0_101, %c0_102, %c0_103], %141 {strides = array<i32>} : memref<1x1x128xf32, #tpu.memory_space<vmem>>, vector<1x1x128xf32>,
    %142 = arith.truncf %92 : vector<16x64xf32> to vector<16x64xbf16>
    %c0_104 = arith.constant 0 : index
    %c0_105 = arith.constant 0 : index
    %143 = vector.load %arg17[%c0_104, %c0_105] : memref<64x256xbf16, #tpu.memory_space<vmem>>, vector<64x256xbf16>
    %cst_106 = arith.constant dense<0.000000e+00> : vector<16x256xf32>
    %144 = tpu.matmul %142, %143, %cst_106 {dimension_numbers = #tpu.dot_dimension_numbers<[1], [0], [0], [1], [0, 0, 1, 1], [], []>} : vector<16x64xbf16>, vector<64x256xbf16>, vector<16x256xf32> -> vector<16x256xf32>
    %c17_i32_107 = arith.constant 17 : i32
    %145 = tpu.dynamic_rotate %144 by %c17_i32_107 dim 1 : vector<16x256xf32>, i32 -> vector<16x256xf32>
    %c0_108 = arith.constant 0 : index
    %c0_109 = arith.constant 0 : index
    %146 = vector.load %arg2[%c0_108, %c0_109] : memref<9x256xf32, #tpu.memory_space<vmem>>, vector<1x256xf32>
    %147 = vector.broadcast %146 : vector<1x256xf32> to vector<16x256xf32>
    %148 = arith.mulf %145, %147 : vector<16x256xf32>
    %c16_i32_110 = arith.constant 16 : i32
    %149 = tpu.dynamic_rotate %144 by %c16_i32_110 dim 1 : vector<16x256xf32>, i32 -> vector<16x256xf32>
    %c1_111 = arith.constant 1 : index
    %c0_112 = arith.constant 0 : index
    %150 = vector.load %arg2[%c1_111, %c0_112] : memref<9x256xf32, #tpu.memory_space<vmem>>, vector<1x256xf32>
    %151 = vector.broadcast %150 : vector<1x256xf32> to vector<16x256xf32>
    %152 = arith.mulf %149, %151 : vector<16x256xf32>
    %c15_i32_113 = arith.constant 15 : i32
    %153 = tpu.dynamic_rotate %144 by %c15_i32_113 dim 1 : vector<16x256xf32>, i32 -> vector<16x256xf32>
    %c2_114 = arith.constant 2 : index
    %c0_115 = arith.constant 0 : index
    %154 = vector.load %arg2[%c2_114, %c0_115] : memref<9x256xf32, #tpu.memory_space<vmem>>, vector<1x256xf32>
    %155 = vector.broadcast %154 : vector<1x256xf32> to vector<16x256xf32>
    %156 = arith.mulf %153, %155 : vector<16x256xf32>
    %c1_i32_116 = arith.constant 1 : i32
    %157 = tpu.dynamic_rotate %144 by %c1_i32_116 dim 1 : vector<16x256xf32>, i32 -> vector<16x256xf32>
    %c3_117 = arith.constant 3 : index
    %c0_118 = arith.constant 0 : index
    %158 = vector.load %arg2[%c3_117, %c0_118] : memref<9x256xf32, #tpu.memory_space<vmem>>, vector<1x256xf32>
    %159 = vector.broadcast %158 : vector<1x256xf32> to vector<16x256xf32>
    %160 = arith.mulf %157, %159 : vector<16x256xf32>
    %c255_i32_119 = arith.constant 255 : i32
    %161 = tpu.dynamic_rotate %144 by %c255_i32_119 dim 1 : vector<16x256xf32>, i32 -> vector<16x256xf32>
    %c5_120 = arith.constant 5 : index
    %c0_121 = arith.constant 0 : index
    %162 = vector.load %arg2[%c5_120, %c0_121] : memref<9x256xf32, #tpu.memory_space<vmem>>, vector<1x256xf32>
    %163 = vector.broadcast %162 : vector<1x256xf32> to vector<16x256xf32>
    %164 = arith.mulf %161, %163 : vector<16x256xf32>
    %c241_i32_122 = arith.constant 241 : i32
    %165 = tpu.dynamic_rotate %144 by %c241_i32_122 dim 1 : vector<16x256xf32>, i32 -> vector<16x256xf32>
    %c6_123 = arith.constant 6 : index
    %c0_124 = arith.constant 0 : index
    %166 = vector.load %arg2[%c6_123, %c0_124] : memref<9x256xf32, #tpu.memory_space<vmem>>, vector<1x256xf32>
    %167 = vector.broadcast %166 : vector<1x256xf32> to vector<16x256xf32>
    %168 = arith.mulf %165, %167 : vector<16x256xf32>
    %c240_i32_125 = arith.constant 240 : i32
    %169 = tpu.dynamic_rotate %144 by %c240_i32_125 dim 1 : vector<16x256xf32>, i32 -> vector<16x256xf32>
    %c7_126 = arith.constant 7 : index
    %c0_127 = arith.constant 0 : index
    %170 = vector.load %arg2[%c7_126, %c0_127] : memref<9x256xf32, #tpu.memory_space<vmem>>, vector<1x256xf32>
    %171 = vector.broadcast %170 : vector<1x256xf32> to vector<16x256xf32>
    %172 = arith.mulf %169, %171 : vector<16x256xf32>
    %c239_i32_128 = arith.constant 239 : i32
    %173 = tpu.dynamic_rotate %144 by %c239_i32_128 dim 1 : vector<16x256xf32>, i32 -> vector<16x256xf32>
    %c8_129 = arith.constant 8 : index
    %c0_130 = arith.constant 0 : index
    %174 = vector.load %arg2[%c8_129, %c0_130] : memref<9x256xf32, #tpu.memory_space<vmem>>, vector<1x256xf32>
    %175 = vector.broadcast %174 : vector<1x256xf32> to vector<16x256xf32>
    %176 = arith.mulf %173, %175 : vector<16x256xf32>
    %177 = tpu.concatenate %148, %152, %156, %160, %144, %164, %168, %172, %176 in 0 : vector<16x256xf32>, vector<16x256xf32>, vector<16x256xf32>, vector<16x256xf32>, vector<16x256xf32>, vector<16x256xf32>, vector<16x256xf32>, vector<16x256xf32>, vector<16x256xf32> -> vector<144x256xf32>
    %178 = arith.truncf %177 : vector<144x256xf32> to vector<144x256xbf16>
    %c0_131 = arith.constant 0 : index
    %c0_132 = arith.constant 0 : index
    %179 = vector.load %arg10[%c0_131, %c0_132] : memref<8x144xbf16, #tpu.memory_space<vmem>>, vector<8x144xbf16>
    %cst_133 = arith.constant dense<0.000000e+00> : vector<8x256xf32>
    %180 = tpu.matmul %179, %178, %cst_133 {dimension_numbers = #tpu.dot_dimension_numbers<[1], [0], [0], [1], [0, 0, 1, 1], [], []>} : vector<8x144xbf16>, vector<144x256xbf16>, vector<8x256xf32> -> vector<8x256xf32>
    %c0_134 = arith.constant 0 : index
    %c0_135 = arith.constant 0 : index
    %181 = vector.load %arg11[%c0_134, %c0_135] : memref<8x1xf32, #tpu.memory_space<vmem>>, vector<8x1xf32>
    %182 = vector.broadcast %181 : vector<8x1xf32> to vector<8x256xf32>
    %183 = arith.mulf %180, %182 : vector<8x256xf32>
    %c0_136 = arith.constant 0 : index
    %c0_137 = arith.constant 0 : index
    %184 = vector.load %arg12[%c0_136, %c0_137] : memref<8x1xf32, #tpu.memory_space<vmem>>, vector<8x1xf32>
    %185 = vector.broadcast %184 : vector<8x1xf32> to vector<8x256xf32>
    %186 = arith.addf %183, %185 : vector<8x256xf32>
    %c17_i32_138 = arith.constant 17 : i32
    %187 = tpu.dynamic_rotate %186 by %c17_i32_138 dim 1 : vector<8x256xf32>, i32 -> vector<8x256xf32>
    %c0_139 = arith.constant 0 : index
    %c0_140 = arith.constant 0 : index
    %188 = vector.load %arg2[%c0_139, %c0_140] : memref<9x256xf32, #tpu.memory_space<vmem>>, vector<1x256xf32>
    %189 = vector.broadcast %188 : vector<1x256xf32> to vector<8x256xf32>
    %190 = arith.mulf %187, %189 : vector<8x256xf32>
    %c16_i32_141 = arith.constant 16 : i32
    %191 = tpu.dynamic_rotate %186 by %c16_i32_141 dim 1 : vector<8x256xf32>, i32 -> vector<8x256xf32>
    %c1_142 = arith.constant 1 : index
    %c0_143 = arith.constant 0 : index
    %192 = vector.load %arg2[%c1_142, %c0_143] : memref<9x256xf32, #tpu.memory_space<vmem>>, vector<1x256xf32>
    %193 = vector.broadcast %192 : vector<1x256xf32> to vector<8x256xf32>
    %194 = arith.mulf %191, %193 : vector<8x256xf32>
    %c15_i32_144 = arith.constant 15 : i32
    %195 = tpu.dynamic_rotate %186 by %c15_i32_144 dim 1 : vector<8x256xf32>, i32 -> vector<8x256xf32>
    %c2_145 = arith.constant 2 : index
    %c0_146 = arith.constant 0 : index
    %196 = vector.load %arg2[%c2_145, %c0_146] : memref<9x256xf32, #tpu.memory_space<vmem>>, vector<1x256xf32>
    %197 = vector.broadcast %196 : vector<1x256xf32> to vector<8x256xf32>
    %198 = arith.mulf %195, %197 : vector<8x256xf32>
    %c1_i32_147 = arith.constant 1 : i32
    %199 = tpu.dynamic_rotate %186 by %c1_i32_147 dim 1 : vector<8x256xf32>, i32 -> vector<8x256xf32>
    %c3_148 = arith.constant 3 : index
    %c0_149 = arith.constant 0 : index
    %200 = vector.load %arg2[%c3_148, %c0_149] : memref<9x256xf32, #tpu.memory_space<vmem>>, vector<1x256xf32>
    %201 = vector.broadcast %200 : vector<1x256xf32> to vector<8x256xf32>
    %202 = arith.mulf %199, %201 : vector<8x256xf32>
    %c255_i32_150 = arith.constant 255 : i32
    %203 = tpu.dynamic_rotate %186 by %c255_i32_150 dim 1 : vector<8x256xf32>, i32 -> vector<8x256xf32>
    %c5_151 = arith.constant 5 : index
    %c0_152 = arith.constant 0 : index
    %204 = vector.load %arg2[%c5_151, %c0_152] : memref<9x256xf32, #tpu.memory_space<vmem>>, vector<1x256xf32>
    %205 = vector.broadcast %204 : vector<1x256xf32> to vector<8x256xf32>
    %206 = arith.mulf %203, %205 : vector<8x256xf32>
    %c241_i32_153 = arith.constant 241 : i32
    %207 = tpu.dynamic_rotate %186 by %c241_i32_153 dim 1 : vector<8x256xf32>, i32 -> vector<8x256xf32>
    %c6_154 = arith.constant 6 : index
    %c0_155 = arith.constant 0 : index
    %208 = vector.load %arg2[%c6_154, %c0_155] : memref<9x256xf32, #tpu.memory_space<vmem>>, vector<1x256xf32>
    %209 = vector.broadcast %208 : vector<1x256xf32> to vector<8x256xf32>
    %210 = arith.mulf %207, %209 : vector<8x256xf32>
    %c240_i32_156 = arith.constant 240 : i32
    %211 = tpu.dynamic_rotate %186 by %c240_i32_156 dim 1 : vector<8x256xf32>, i32 -> vector<8x256xf32>
    %c7_157 = arith.constant 7 : index
    %c0_158 = arith.constant 0 : index
    %212 = vector.load %arg2[%c7_157, %c0_158] : memref<9x256xf32, #tpu.memory_space<vmem>>, vector<1x256xf32>
    %213 = vector.broadcast %212 : vector<1x256xf32> to vector<8x256xf32>
    %214 = arith.mulf %211, %213 : vector<8x256xf32>
    %c239_i32_159 = arith.constant 239 : i32
    %215 = tpu.dynamic_rotate %186 by %c239_i32_159 dim 1 : vector<8x256xf32>, i32 -> vector<8x256xf32>
    %c8_160 = arith.constant 8 : index
    %c0_161 = arith.constant 0 : index
    %216 = vector.load %arg2[%c8_160, %c0_161] : memref<9x256xf32, #tpu.memory_space<vmem>>, vector<1x256xf32>
    %217 = vector.broadcast %216 : vector<1x256xf32> to vector<8x256xf32>
    %218 = arith.mulf %215, %217 : vector<8x256xf32>
    %219 = tpu.concatenate %190, %194, %198, %202, %186, %206, %210, %214, %218 in 0 : vector<8x256xf32>, vector<8x256xf32>, vector<8x256xf32>, vector<8x256xf32>, vector<8x256xf32>, vector<8x256xf32>, vector<8x256xf32>, vector<8x256xf32>, vector<8x256xf32> -> vector<72x256xf32>
    %220 = arith.truncf %219 : vector<72x256xf32> to vector<72x256xbf16>
    %c0_162 = arith.constant 0 : index
    %c0_163 = arith.constant 0 : index
    %221 = vector.load %arg13[%c0_162, %c0_163] : memref<4x72xbf16, #tpu.memory_space<vmem>>, vector<4x72xbf16>
    %cst_164 = arith.constant dense<0.000000e+00> : vector<4x256xf32>
    %222 = tpu.matmul %221, %220, %cst_164 {dimension_numbers = #tpu.dot_dimension_numbers<[1], [0], [0], [1], [0, 0, 1, 1], [], []>} : vector<4x72xbf16>, vector<72x256xbf16>, vector<4x256xf32> -> vector<4x256xf32>
    %c0_165 = arith.constant 0 : index
    %c0_166 = arith.constant 0 : index
    %223 = vector.load %arg14[%c0_165, %c0_166] : memref<4x1xf32, #tpu.memory_space<vmem>>, vector<4x1xf32>
    %224 = vector.broadcast %223 : vector<4x1xf32> to vector<4x256xf32>
    %225 = arith.mulf %222, %224 : vector<4x256xf32>
    %c0_167 = arith.constant 0 : index
    %c0_168 = arith.constant 0 : index
    %226 = vector.load %arg15[%c0_167, %c0_168] : memref<4x1xf32, #tpu.memory_space<vmem>>, vector<4x1xf32>
    %227 = vector.broadcast %226 : vector<4x1xf32> to vector<4x256xf32>
    %228 = arith.addf %225, %227 : vector<4x256xf32>
    %229 = arith.negf %228 : vector<4x256xf32>
    %230 = math.exp %229 : vector<4x256xf32>
    %cst_169 = arith.constant 1.000000e+00 : f32
    %231 = vector.broadcast %cst_169 : f32 to vector<4x256xf32>
    %232 = arith.addf %231, %230 : vector<4x256xf32>
    %233 = arith.divf %231, %232 : vector<4x256xf32>
    %c0_170 = arith.constant 0 : index
    %c0_171 = arith.constant 0 : index
    %c0_172 = arith.constant 0 : index
    %234 = vector.load %arg22[%c0_170, %c0_171, %c0_172] : memref<1x4x256xf32, #tpu.memory_space<vmem>>, vector<1x4x256xf32>
    %235 = vector.shape_cast %234 : vector<1x4x256xf32> to vector<4x256xf32>
    %236 = vector.shape_cast %233 : vector<4x256xf32> to vector<1x4x256xf32>
    tpu.vector_store %arg22[%c0_170, %c0_171, %c0_172], %236 {strides = array<i32>} : memref<1x4x256xf32, #tpu.memory_space<vmem>>, vector<1x4x256xf32>,
    return
  }
  func.func @transform_0(%arg0: i32) -> (i32, i32, i32) {
    %c0_i32 = arith.constant 0 : i32
    %c0_i32_0 = arith.constant 0 : i32
    %c0_i32_1 = arith.constant 0 : i32
    return %arg0, %c0_i32, %c0_i32_0 : i32, i32, i32
  }
  func.func @transform_1(%arg0: i32) -> (i32, i32) {
    %c0_i32 = arith.constant 0 : i32
    %c0_i32_0 = arith.constant 0 : i32
    %c0_i32_1 = arith.constant 0 : i32
    return %c0_i32, %c0_i32_0 : i32, i32
  }
  func.func @transform_2(%arg0: i32) -> (i32, i32) {
    %c0_i32 = arith.constant 0 : i32
    %c0_i32_0 = arith.constant 0 : i32
    %c0_i32_1 = arith.constant 0 : i32
    return %c0_i32, %c0_i32_0 : i32, i32
  }
  func.func @transform_3(%arg0: i32) -> (i32, i32) {
    %c0_i32 = arith.constant 0 : i32
    %c0_i32_0 = arith.constant 0 : i32
    %c0_i32_1 = arith.constant 0 : i32
    return %c0_i32, %c0_i32_0 : i32, i32
  }
  func.func @transform_4(%arg0: i32) -> (i32, i32) {
    %c0_i32 = arith.constant 0 : i32
    %c0_i32_0 = arith.constant 0 : i32
    %c0_i32_1 = arith.constant 0 : i32
    return %c0_i32, %c0_i32_0 : i32, i32
  }
  func.func @transform_5(%arg0: i32) -> (i32, i32) {
    %c0_i32 = arith.constant 0 : i32
    %c0_i32_0 = arith.constant 0 : i32
    %c0_i32_1 = arith.constant 0 : i32
    return %c0_i32, %c0_i32_0 : i32, i32
  }
  func.func @transform_6(%arg0: i32) -> (i32, i32) {
    %c0_i32 = arith.constant 0 : i32
    %c0_i32_0 = arith.constant 0 : i32
    %c0_i32_1 = arith.constant 0 : i32
    return %c0_i32, %c0_i32_0 : i32, i32
  }
  func.func @transform_7(%arg0: i32) -> (i32, i32) {
    %c0_i32 = arith.constant 0 : i32
    %c0_i32_0 = arith.constant 0 : i32
    %c0_i32_1 = arith.constant 0 : i32
    return %c0_i32, %c0_i32_0 : i32, i32
  }
  func.func @transform_8(%arg0: i32) -> (i32, i32) {
    %c0_i32 = arith.constant 0 : i32
    %c0_i32_0 = arith.constant 0 : i32
    %c0_i32_1 = arith.constant 0 : i32
    return %c0_i32, %c0_i32_0 : i32, i32
  }
  func.func @transform_9(%arg0: i32) -> (i32, i32) {
    %c0_i32 = arith.constant 0 : i32
    %c0_i32_0 = arith.constant 0 : i32
    %c0_i32_1 = arith.constant 0 : i32
    return %c0_i32, %c0_i32_0 : i32, i32
  }
  func.func @transform_10(%arg0: i32) -> (i32, i32) {
    %c0_i32 = arith.constant 0 : i32
    %c0_i32_0 = arith.constant 0 : i32
    %c0_i32_1 = arith.constant 0 : i32
    return %c0_i32, %c0_i32_0 : i32, i32
  }
  func.func @transform_11(%arg0: i32) -> (i32, i32) {
    %c0_i32 = arith.constant 0 : i32
    %c0_i32_0 = arith.constant 0 : i32
    %c0_i32_1 = arith.constant 0 : i32
    return %c0_i32, %c0_i32_0 : i32, i32
  }
  func.func @transform_12(%arg0: i32) -> (i32, i32) {
    %c0_i32 = arith.constant 0 : i32
    %c0_i32_0 = arith.constant 0 : i32
    %c0_i32_1 = arith.constant 0 : i32
    return %c0_i32, %c0_i32_0 : i32, i32
  }
  func.func @transform_13(%arg0: i32) -> (i32, i32) {
    %c0_i32 = arith.constant 0 : i32
    %c0_i32_0 = arith.constant 0 : i32
    %c0_i32_1 = arith.constant 0 : i32
    return %c0_i32, %c0_i32_0 : i32, i32
  }
  func.func @transform_14(%arg0: i32) -> (i32, i32) {
    %c0_i32 = arith.constant 0 : i32
    %c0_i32_0 = arith.constant 0 : i32
    %c0_i32_1 = arith.constant 0 : i32
    return %c0_i32, %c0_i32_0 : i32, i32
  }
  func.func @transform_15(%arg0: i32) -> (i32, i32) {
    %c0_i32 = arith.constant 0 : i32
    %c0_i32_0 = arith.constant 0 : i32
    %c0_i32_1 = arith.constant 0 : i32
    return %c0_i32, %c0_i32_0 : i32, i32
  }
  func.func @transform_16(%arg0: i32) -> (i32, i32) {
    %c0_i32 = arith.constant 0 : i32
    %c0_i32_0 = arith.constant 0 : i32
    %c0_i32_1 = arith.constant 0 : i32
    return %c0_i32, %c0_i32_0 : i32, i32
  }
  func.func @transform_17(%arg0: i32) -> (i32, i32) {
    %c0_i32 = arith.constant 0 : i32
    %c0_i32_0 = arith.constant 0 : i32
    %c0_i32_1 = arith.constant 0 : i32
    return %c0_i32, %c0_i32_0 : i32, i32
  }
  func.func @transform_18(%arg0: i32) -> (i32, i32) {
    %c0_i32 = arith.constant 0 : i32
    %c0_i32_0 = arith.constant 0 : i32
    %c0_i32_1 = arith.constant 0 : i32
    return %c0_i32, %c0_i32_0 : i32, i32
  }
  func.func @transform_19(%arg0: i32) -> (i32, i32) {
    %c0_i32 = arith.constant 0 : i32
    %c0_i32_0 = arith.constant 0 : i32
    %c0_i32_1 = arith.constant 0 : i32
    return %c0_i32, %c0_i32_0 : i32, i32
  }
  func.func @transform_20(%arg0: i32) -> (i32, i32) {
    %c0_i32 = arith.constant 0 : i32
    %c0_i32_0 = arith.constant 0 : i32
    %c0_i32_1 = arith.constant 0 : i32
    return %c0_i32, %c0_i32_0 : i32, i32
  }
  func.func @transform_21(%arg0: i32) -> (i32, i32, i32) {
    %c0_i32 = arith.constant 0 : i32
    %c0_i32_0 = arith.constant 0 : i32
    %c0_i32_1 = arith.constant 0 : i32
    return %arg0, %c0_i32, %c0_i32_0 : i32, i32, i32
  }
  func.func @transform_22(%arg0: i32) -> (i32, i32, i32) {
    %c0_i32 = arith.constant 0 : i32
    %c0_i32_0 = arith.constant 0 : i32
    %c0_i32_1 = arith.constant 0 : i32
    return %arg0, %c0_i32, %c0_i32_0 : i32, i32, i32
  }
}

</mosaic_0001>

<bundles_post_ra>
// kernel: forward.1
= control target key start
LH: loop header
LB: loop body
LE: loop exit
PB: predicated region body
PF: predicated region fallthrough
CT: control target
= control target key end

     0   :  { %s7517_s0 = inlined_call_operand.vmem [shape: f32[2,8,256], index: 0, kind: input, shape index: {}]   ;;  %s7518_s1 = inlined_call_operand.vmem [shape: f32[9,256], index: 1, kind: input, shape index: {}]   ;;  %s7519_s2 = inlined_call_operand.vmem [shape: f32[9,256], index: 2, kind: input, shape index: {}]   ;;  %s7520_s3 = inlined_call_operand.vmem [shape: bf16[8,72], index: 3, kind: input, shape index: {}]   ;;  %s7521_s4 = inlined_call_operand.vmem [shape: f32[8,1], index: 4, kind: input, shape index: {}]   ;;  %s7522_s5 = inlined_call_operand.vmem [shape: f32[8,1], index: 5, kind: input, shape index: {}]   ;;  %s7523_s6 = inlined_call_operand.vmem [shape: bf16[16,72], index: 6, kind: input, shape index: {}]   ;;  %s7524_s7 = inlined_call_operand.vmem [shape: f32[16,1], index: 7, kind: input, shape index: {}]   ;;  %s7525_s8 = inlined_call_operand.vmem [shape: f32[16,1], index: 8, kind: input, shape index: {}]   ;;  %s7526_s9 = inlined_call_operand.vmem [shape: bf16[8,144], index: 9, kind: input, shape index: {}]   ;;  %s7527_s10 = inlined_call_operand.vmem [shape: f32[8,1], index: 10, kind: input, shape index: {}]   ;;  %s7528_s11 = inlined_call_operand.vmem [shape: f32[8,1], index: 11, kind: input, shape index: {}]   ;;  %s7529_s12 = inlined_call_operand.vmem [shape: bf16[4,72], index: 12, kind: input, shape index: {}]   ;;  %s7530_s13 = inlined_call_operand.vmem [shape: f32[4,1], index: 13, kind: input, shape index: {}]   ;;  %s7531_s14 = inlined_call_operand.vmem [shape: f32[4,1], index: 14, kind: input, shape index: {}]   ;;  %s7532_s15 = inlined_call_operand.vmem [shape: bf16[256,64], index: 15, kind: input, shape index: {}]   ;;  %s7533_s16 = inlined_call_operand.vmem [shape: bf16[64,256], index: 16, kind: input, shape index: {}]   ;;  %s7534_s17 = inlined_call_operand.vmem [shape: bf16[1024,512], index: 17, kind: input, shape index: {}]   ;;  %s7535_s18 = inlined_call_operand.vmem [shape: f32[1,512], index: 18, kind: input, shape index: {}]   ;;  %s7536_s19 = inlined_call_operand.vmem [shape: bf16[512,128], index: 19, kind: input, shape index: {}]   ;;  %s7537_s20 = inlined_call_operand.vmem [shape: f32[1,128], index: 20, kind: input, shape index: {}]   ;;  %s7538_s21 = inlined_call_operand.vmem [shape: f32[2,4,256], index: 21, kind: output, shape index: {0}]   ;;  %s7539_s22 = inlined_call_operand.hbm [shape: f32[2,1,128], index: 22, kind: output, shape index: {1}]  }
   0x1   :  { %7565 = sst [smem:[#allocation13_spill]] %s7517_s0 }
   0x2   :  { %7566 = sst [smem:[#allocation14_spill]] %s7518_s1 }
   0x3   :  { %7567 = sst [smem:[#allocation15_spill]] %s7519_s2 }
   0x4   :  { %7568 = sst [smem:[#allocation16_spill]] %s7520_s3 }
   0x5   :  { %7569 = sst [smem:[#allocation17_spill]] %s7521_s4 }
   0x6   :  { %7570 = sst [smem:[#allocation18_spill]] %s7522_s5 }
   0x7   :  { %7571 = sst [smem:[#allocation19_spill]] %s7523_s6 }
   0x8   :  { %7572 = sst [smem:[#allocation20_spill]] %s7524_s7 }
   0x9   :  { %7573 = sst [smem:[#allocation21_spill]] %s7525_s8 }
   0xa   :  { %7574 = sst [smem:[#allocation22_spill]] %s7532_s15 }
   0xb   :  { %7575 = sst [smem:[#allocation23_spill]] %s7538_s21 }
   0xc   :  { %28 = vsyncpa [#allocation5], 0 }
   0xd   :  { %30 = vsyncpa [#allocation5 + $0x1], 0  ;;  %s5719_s3 = smov 0   ;;  %s5721_s28 = smov 0  }
   0xe   :  { %s5723_s29 = smov 0   ;;  %s5725_s30 = smov 0  }
   0xf LB: > { %7576 = sst [smem:[#allocation7_spill]] %s5570_s3  ;;  %s5740_s4 = sadd.s32 4294967295, %s5582_s30   ;;  %s5582_s30 = sphi %s5725_s30, %s7612_s30   ;;  %s5578_s29 = sphi %s5723_s29, %s7614_s29   ;;  %s5574_s28 = sphi %s5721_s28, %s7616_s28   ;;  %s5570_s3 = sphi %s5719_s3, %s7615_s3  }
  0x10   : > { %7577 = sst [smem:[#allocation8_spill]] %s5578_s29  ;;  %s4544_s0 = sadd.s32 4294967294, %s5582_s30  }
  0x11   : > { %7578 = sst [smem:[#allocation9_spill]] %s5582_s30  ;;  %s5744_s23 = sadd.s32 1, %s5582_s30  }
  0x12   : > { %7579 = sst [smem:[#allocation10_spill]] %s5744_s23  ;;  %s515_s1 = sadd.s32 1, %s5578_s29 }
  0x13   : > { %s512_s5 = ssub.s32 %s5582_s30, %s5744_s23  ;;  %p525_p0 = scmp.ne.s32.totalorder %s5578_s29, %s5574_s28 }
  0x14   : > { %p513_p1 = scmp.eq.s32.totalorder %s512_s5, 0  ;;  %p526_p2 = scmp.eq.s32.totalorder %s5740_s4, 1 }
  0x15   : > { %p531_p3 = scmp.ne.s32.totalorder %s5574_s28, %s5570_s3  ;;  %p532_p4 = scmp.eq.s32.totalorder %s4544_s0, 1 }
  0x16   : > { %s5755_s24 = scalar_select %p513_p1, %s5578_s29, %s515_s1  }
  0x17   : > { %p5757_p5 = por %p526_p2, %p525_p0  ;;  %p5761_p6 = por %p532_p4, %p531_p3 }
  0x18   : > { %7580 = sst [smem:[#allocation11_spill]] %s5755_s24  ;;  %p4547_p7 = scmp.ge.s32.totalorder %s5582_s30, 1 }
  0x19   : > { %s7582_s25 = scalar_select %p5761_p6, 1, 0 }
  0x1a   : > { %p618_p8 = scmp.lt.s32.totalorder %s5582_s30, 3 }
  0x1b   : > { %7583 = sst [smem:[#allocation12_spill]] %s7582_s25 }
  0x1c   : > { %p619_p9 = pnand %p4547_p7, %p618_p8 }
  0x1d   : > { %p684_p10 = scmp.lt.s32.totalorder (!%p619_p9), %s5740_s4, 1  ;;  %s7584_s1 = sld [smem:[#allocation13_spill]] (!%p619_p9)  ;;  %v5590_v2 = vmov (!%p619_p9), 0   ;;  %v701_v5 = vlaneseq (!%p619_p9)  ;;  %vm889_vm8 = vcmask (!%p619_p9), 1043456   ;;  %vm885_vm9 = vcmask (!%p619_p9), 588800  }
  0x1e   : > { %622 = sbr.rel (%p619_p9) target bundleno = 2828 (0xb0c), region = 104  ;;  %s7547_s24 = smov (!%p619_p9), 16   ;;  %928 = vmatprep.mubr.bf16.mxu0 (!%p619_p9), %v5590_v2  ;;  %5063 = vset.pattern.permute.xlu0 (!%p619_p9), %v5590_v2 }
  0x1f   : > { %s7551_s29 = smov (!%p619_p9), 17   ;;  %s7545_s27 = smov (!%p619_p9), 15   ;;  %5064 = vset.pattern.permute.xlu1 (!%p619_p9), %v5590_v2  ;;  %1202 = vmatprep.mubr.bf16.mxu1 (!%p619_p9), %v5590_v2  ;;  %v5822_v6 = vshrl.u32 (!%p619_p9), %v701_v5, 7  ;;  %v5825_v7 = vand.u32 (!%p619_p9), 127, %v701_v5 }
  0x20   : > { %s7553_s0 = smov (!%p619_p9), 127   ;;  %s7557_s23 = smov (!%p619_p9), 111  }
  0x21   : > { %v5828_v8 = vsub.s32 (!%p619_p9), 0, %v5822_v6  ;;  %v5831_v9 = vsub.s32 (!%p619_p9), 1, %v5822_v6  ;;  %vm724_vm0 = vcmp.lt.s32.totalorder (!%p619_p9), %v5825_v7, 16  ;;  %vm703_vm1 = vcmp.lt.s32.totalorder (!%p619_p9), %v5825_v7, 17  ;;  %s7590_s7 = sld [smem:[#allocation20_spill]] (!%p619_p9)  ;;  %s7591_s8 = sld [smem:[#allocation21_spill]] (!%p619_p9) }
  0x22   : > { %vm746_vm2 = vcmp.lt.s32.totalorder (!%p619_p9), %v5825_v7, 15  ;;  %vm768_vm3 = vcmp.lt.s32.totalorder (!%p619_p9), %v5825_v7, 1  ;;  %vm790_vm4 = vcmp.lt.s32.totalorder (!%p619_p9), %v5825_v7, 127  ;;  %vm812_vm5 = vcmp.lt.s32.totalorder (!%p619_p9), %v5825_v7, 113  ;;  %s7592_s15 = sld [smem:[#allocation22_spill]] (!%p619_p9)  ;;  %s7593_s30 = sld [smem:[#allocation15_spill]] (!%p619_p9) }
  0x23   : > { %vm834_vm6 = vcmp.lt.s32.totalorder (!%p619_p9), %v5825_v7, 112  ;;  %vm856_vm7 = vcmp.lt.s32.totalorder (!%p619_p9), %v5825_v7, 111  ;;  %vm973_vm10 = vcmp.lt.s32.totalorder (!%p619_p9), %v5825_v7, 34  ;;  %vm994_vm11 = vcmp.lt.s32.totalorder (!%p619_p9), %v5825_v7, 32  ;;  %s7600_s25 = smov (!%p619_p9), 17   ;;  %s7602_s3 = smov (!%p619_p9), 15  }
  0x24   : > { %vm1016_vm12 = vcmp.lt.s32.totalorder (!%p619_p9), %v5825_v7, 30  ;;  %vm1038_vm13 = vcmp.lt.s32.totalorder (!%p619_p9), %v5825_v7, 2  ;;  %vm1060_vm14 = vcmp.lt.s32.totalorder (!%p619_p9), %v5825_v7, 126  ;;  %vm1082_vm15 = vcmp.lt.s32.totalorder (!%p619_p9), %v5825_v7, 98 }
  0x25   : > { %s5769_s26 = scalar_select %p684_p10, %s5740_s4, 1 }
  0x27   : > { %s4909_s2 = sshll.u32 %s5769_s26, 4 }
  0x28   : > { %s688_s5 = scalar_lea.vmem %s7584_s1, %s4909_s2  ;;  %s7543_s2 = smov 1  }
  0x29   : > { %v5775_v0 = vld [vmem:[%s688_s5] sm:$0xff]  ;;  %v5781_v1 = vld [vmem:[%s688_s5 + $0x8] sm:$0xff]  ;;  %s7549_s1 = smov 113   ;;  %s7559_s5 = smov 112  }
  0x2a   : > { %720 = vrot.lane.b32.xlu1 %v5775_v0, %s7547_s24  ;;  %697 = vrot.lane.b32.xlu0 %v5775_v0, %s7551_s29  ;;  %s7594_s21 = smov %s7593_s30 }
  0x2e   : > { %722 = vrot.lane.b32.xlu1 %v5781_v1, %s7547_s24  ;;  %699 = vrot.lane.b32.xlu0 %v5781_v1, %s7551_s29  ;;  %s7585_s24 = sld [smem:[#allocation17_spill]]  ;;  %s5593_s29 = smov 34  }
  0x32   : > { %744 = vrot.lane.b32.xlu1 %v5781_v1, %s7545_s27  ;;  %742 = vrot.lane.b32.xlu0 %v5775_v0, %s7545_s27  ;;  %s7587_s27 = sld [smem:[#allocation14_spill]] }
  0x34   : > { %v937_v3 = vld [vmem:[%s7585_s24] sm:$0xff]  ;;  %s5594_s24 = smov 32  }
  0x36   : > { %766 = vrot.lane.b32.xlu1 %v5781_v1, %s7543_s2  ;;  %764 = vrot.lane.b32.xlu0 %v5775_v0, %s7543_s2  ;;  %s5595_s2 = smov 30  }
  0x38   : > { %v706_v10 = vld [vmem:[%s7587_s27] ss:$8 sm:$0x3]  ;;  %v4552_v11 = vld [vmem:[%s7587_s27 + $0x1] ss:$8 sm:$0x3] }
  0x39   : > { %v715_v14 = vrot.slane %v706_v10, %v5831_v9  ;;  %v737_v15 = vrot.slane %v4552_v11, %v5831_v9  ;;  %v711_v16 = vrot.slane %v706_v10, %v5828_v8  ;;  %v733_v17 = vrot.slane %v4552_v11, %v5828_v8  ;;  %v4553_v22 = vld [vmem:[%s7587_s27 + $0x2] ss:$8 sm:$0x3]  ;;  %v4554_v25 = vld [vmem:[%s7587_s27 + $0x3] ss:$8 sm:$0x3] }
  0x3a   : > { %788 = vrot.lane.b32.xlu1 %v5781_v1, %s7553_s0  ;;  %786 = vrot.lane.b32.xlu0 %v5775_v0, %s7553_s0  ;;  %s7586_s0 = sld [smem:[#allocation18_spill]]  ;;  %v755_v34 = vrot.slane %v4553_v22, %v5828_v8  ;;  %v759_v35 = vrot.slane %v4553_v22, %v5831_v9  ;;  %v777_v36 = vrot.slane %v4554_v25, %v5828_v8  ;;  %v4555_v38 = vld [vmem:[%s7587_s27 + $0x5] ss:$8 sm:$0x3] }
  0x3b   : > { %v781_v37 = vrot.slane %v4554_v25, %v5831_v9  ;;  %v799_v45 = vrot.slane %v4555_v38, %v5828_v8  ;;  %v803_v46 = vrot.slane %v4555_v38, %v5831_v9  ;;  %v4556_v59 = vld [vmem:[%s7587_s27 + $0x6] ss:$8 sm:$0x3]  ;;  %v4557_v60 = vld [vmem:[%s7587_s27 + $0x7] ss:$8 sm:$0x3] }
  0x3c   : > { %v825_v10 = vrot.slane %v4556_v59, %v5831_v9  ;;  %v843_v11 = vrot.slane %v4557_v60, %v5828_v8 }
  0x3e   : > { %810 = vrot.lane.b32.xlu1 %v5781_v1, %s7549_s1  ;;  %808 = vrot.lane.b32.xlu0 %v5775_v0, %s7549_s1  ;;  %s7589_s1 = smov 127  }
  0x40   : > { %v945_v4 = vld [vmem:[%s7586_s0] sm:$0xff]  ;;  %s7588_s0 = sld [smem:[#allocation16_spill]] }
  0x42   : > { %832 = vrot.lane.b32.xlu1 %v5781_v1, %s7559_s5  ;;  %830 = vrot.lane.b32.xlu0 %v5775_v0, %s7559_s5 }
  0x46   : > { %854 = vrot.lane.b32.xlu1 %v5781_v1, %s7557_s23  ;;  %852 = vrot.lane.b32.xlu0 %v5775_v0, %s7557_s23  ;;  %s5597_s23 = smov 126  }
  0x4a   : > { %940 = vperm.xlu0 %5063, %v937_v3   ;;  %948 = vperm.xlu1 %5064, %v945_v4   ;;  %v821_v4 = vrot.slane %v4556_v59, %v5828_v8  ;;  %v1384_v59 = vld [vmem:[%s7590_s7] sm:$0xff] }
  0x9c   : > { %v721_v12 = vpop.permute.xlu1 %720  ;;  %v698_v13 = vpop.permute.xlu0 %697 }
  0xa0   : > { %v723_v18 = vpop.permute.xlu1 %722  ;;  %v700_v19 = vpop.permute.xlu0 %699 }
  0xa1   : > { %v726_v20 = vsel %vm724_vm0, %v723_v18, %v721_v12  ;;  %v705_v21 = vsel %vm703_vm1, %v700_v19, %v698_v13  ;;  %v704_v23 = vsel %vm703_vm1, %v698_v13, %v700_v19  ;;  %v725_v24 = vsel %vm724_vm0, %v721_v12, %v723_v18  ;;  %v4558_v13 = vld [vmem:[%s7587_s27 + $0x10] ss:$8 sm:$0x3] }
  0xa2   : > { %v719_v26 = vmul.f32 %v715_v14, %v704_v23  ;;  %v741_v27 = vmul.f32 %v737_v15, %v725_v24  ;;  %v718_v28 = vmul.f32 %v711_v16, %v705_v21  ;;  %v740_v29 = vmul.f32 %v733_v17, %v726_v20 }
  0xa3   : > { %v847_v12 = vrot.slane %v4557_v60, %v5831_v9  ;;  %v865_v18 = vrot.slane %v4558_v13, %v5828_v8  ;;  %v869_v19 = vrot.slane %v4558_v13, %v5831_v9  ;;  %v1399_v60 = vld [vmem:[%s7591_s8 + $0x8] sm:$0xff]  ;;  %v5073_v13 = vld [vmem:[%s7592_s15 + $0x18] sm:$0xff]  }
  0xa4   : > { %v745_v30 = vpop.permute.xlu1 %744  ;;  %v743_v31 = vpop.permute.xlu0 %742  ;;  %v875_v32 = vpack.c.bf16 %v741_v27, %v719_v26  ;;  %v874_v33 = vpack.c.bf16 %v740_v29, %v718_v28 }
  0xa5   : > { %v747_v39 = vsel %vm746_vm2, %v743_v31, %v745_v30  ;;  %v748_v40 = vsel %vm746_vm2, %v745_v30, %v743_v31 }
  0xa6   : > { %896 = vmatprep.subr.bf16.mxu0 %v875_v32  ;;  %v762_v47 = vmul.f32 %v755_v34, %v748_v40  ;;  %v763_v48 = vmul.f32 %v759_v35, %v747_v39  ;;  %v884_v35 = vld [vmem:[%s7588_s0] sm:$0xf]  ;;  %s5596_s0 = smov 2  }
  0xa7   : > { %897 = vmatpush1.bf16.msra.mxu0 %v874_v33 }
  0xa8   : > { %v767_v41 = vpop.permute.xlu1 %766  ;;  %v765_v42 = vpop.permute.xlu0 %764 }
  0xa9   : > { %v769_v43 = vsel %vm768_vm3, %v765_v42, %v767_v41  ;;  %v770_v44 = vsel %vm768_vm3, %v767_v41, %v765_v42 }
  0xaa   : > { %v784_v49 = vmul.f32 %v777_v36, %v770_v44  ;;  %v785_v50 = vmul.f32 %v781_v37, %v769_v43 }
  0xac   : > { %v789_v51 = vpop.permute.xlu1 %788  ;;  %v787_v52 = vpop.permute.xlu0 %786  ;;  %v877_v53 = vpack.c.bf16 %v785_v50, %v763_v48  ;;  %v876_v54 = vpack.c.bf16 %v784_v49, %v762_v47 }
  0xad   : > { %v791_v55 = vsel %vm790_vm4, %v787_v52, %v789_v51  ;;  %v792_v56 = vsel %vm790_vm4, %v789_v51, %v787_v52 }
  0xae   : > { %v806_v57 = vmul.f32 %v799_v45, %v791_v55  ;;  %v807_v58 = vmul.f32 %v803_v46, %v792_v56  ;;  %898 = vmatprep.subr.bf16.mxu0 %v877_v53 }
  0xaf   : > { %899 = vmatpush1.bf16.msra.mxu0 %v876_v54 }
  0xb0   : > { %v811_v61 = vpop.permute.xlu1 %810  ;;  %v809_v62 = vpop.permute.xlu0 %808  ;;  %v879_v63 = vpack.c.bf16 %v807_v58, %v5781_v1  ;;  %v878_v3 = vpack.c.bf16 %v806_v57, %v5775_v0  ;;  %v1385_v58 = vld [vmem:[%s7590_s7 + $0x8] sm:$0xff]  ;;  %s5602_s7 = smov 64  }
  0xb1   : > { %v813_v1 = vsel %vm812_vm5, %v809_v62, %v811_v61  ;;  %v814_v0 = vsel %vm812_vm5, %v811_v61, %v809_v62  ;;  %v1398_v61 = vld [vmem:[%s7591_s8] sm:$0xff]  ;;  %s7605_s8 = smov 112  }
  0xb2   : > { %900 = vmatprep.subr.bf16.mxu0 %v879_v63  ;;  %v828_v20 = vmul.f32 %v821_v4, %v813_v1  ;;  %v829_v21 = vmul.f32 %v825_v10, %v814_v0  ;;  %v5066_v62 = vld [vmem:[%s7592_s15 + $0x40] sm:$0xff]   ;;  %v5069_v4 = vld [vmem:[%s7592_s15 + $0x8] sm:$0xff]   ;;  %v5070_v10 = vld [vmem:[%s7592_s15 + $0x50] sm:$0xff]  }
  0xb3   : > { %901 = vmatpush1.bf16.msra.mxu0 %v878_v3  ;;  %v5067_v63 = vld [vmem:[%s7592_s15] sm:$0xff]   ;;  %v5068_v3 = vld [vmem:[%s7592_s15 + $0x48] sm:$0xff]  }
  0xb4   : > { %v833_v14 = vpop.permute.xlu1 %832  ;;  %v831_v15 = vpop.permute.xlu0 %830  ;;  %v5074_v1 = vld [vmem:[%s7592_s15 + $0x60] sm:$0xff]  }
  0xb5   : > { %v835_v16 = vsel %vm834_vm6, %v831_v15, %v833_v14  ;;  %v836_v17 = vsel %vm834_vm6, %v833_v14, %v831_v15  ;;  %v5075_v0 = vld [vmem:[%s7592_s15 + $0x20] sm:$0xff]   ;;  %v5076_v14 = vld [vmem:[%s7592_s15 + $0x68] sm:$0xff]  }
  0xb6   : > { %v850_v22 = vmul.f32 %v843_v11, %v835_v16  ;;  %v851_v23 = vmul.f32 %v847_v12, %v836_v17  ;;  %v5071_v11 = vld [vmem:[%s7592_s15 + $0x10] sm:$0xff]   ;;  %v5072_v12 = vld [vmem:[%s7592_s15 + $0x58] sm:$0xff]   ;;  %v5077_v15 = vld [vmem:[%s7592_s15 + $0x28] sm:$0xff]  }
  0xb7   : > { %v5078_v16 = vld [vmem:[%s7592_s15 + $0x70] sm:$0xff]   ;;  %v976_v17 = vld [vmem:[%s7593_s30] ss:$8 sm:$0x3]  ;;  %s7604_s30 = smov 113  }
  0xb8   : > { %v855_v24 = vpop.permute.xlu1 %854  ;;  %v853_v25 = vpop.permute.xlu0 %852  ;;  %v881_v26 = vpack.c.bf16 %v851_v23, %v829_v21  ;;  %v880_v27 = vpack.c.bf16 %v850_v22, %v828_v20  ;;  %v981_v21 = vrot.slane %v976_v17, %v5828_v8  ;;  %v985_v23 = vrot.slane %v976_v17, %v5831_v9 }
  0xb9   : > { %v857_v28 = vsel %vm856_vm7, %v853_v25, %v855_v24  ;;  %v858_v29 = vsel %vm856_vm7, %v855_v24, %v853_v25 }
  0xba   : > { %v872_v30 = vmul.f32 %v865_v18, %v857_v28  ;;  %v873_v31 = vmul.f32 %v869_v19, %v858_v29  ;;  %902 = vmatprep.subr.bf16.mxu0 %v881_v26  ;;  %v4561_v18 = vld [vmem:[%s7594_s21 + $0x1] ss:$8 sm:$0x3] }
  0xbb   : > { %903 = vmatpush1.bf16.msra.mxu0 %v880_v27  ;;  %v1003_v22 = vrot.slane %v4561_v18, %v5828_v8  ;;  %v1007_v24 = vrot.slane %v4561_v18, %v5831_v9 }
  0xbc   : > { %v882_v32 = vpack.c.bf16 %v872_v30, %v872_v30  ;;  %v883_v33 = vpack.c.bf16 %v873_v31, %v873_v31 }
  0xbe   : > { %4559 = vmatprep.subr.msk.bf16.mxu0 %vm889_vm8, %v883_v33  ;;  %v891_v34 = vsel %vm889_vm8, %v882_v32, 0  ;;  %v4562_v33 = vld [vmem:[%s7594_s21 + $0x2] ss:$8 sm:$0x3] }
  0xbf   : > { %905 = vmatpush1.bf16.msra.mxu0 %v891_v34 }
  0xc0   : > { %4911 = vmatprep.subr.bf16.mxu0 %v5066_v62 }
  0xc2   : > { %4560 = vmatmul.mubr.msk.bf16.vlgmr.msra.gmra.mrb[0].mxu0 %vm885_vm9, %v884_v35 }
  0xc3   : > { %4912 = vmatpush3.bf16.msra.mxu0 %v5067_v63 }
  0xc4   : > { %4913 = vmatprep.subr.bf16.mxu0 %v5068_v3 }
  0xc7   : > { %4914 = vmatpush3.bf16.msra.mxu0 %v5069_v4 }
  0xc8   : > { %4915 = vmatprep.subr.bf16.mxu0 %v5070_v10 }
  0xc9   : > { %v941_v36 = vpop.permute.xlu0 %940  ;;  %v949_v38 = vpop.permute.xlu1 %948 }
  0xcb   : > { %4916 = vmatpush3.bf16.msra.mxu0 %v5071_v11 }
  0xcc   : > { %4917 = vmatprep.subr.bf16.mxu0 %v5072_v12  ;;  %v4565_v12 = vld [vmem:[%s7594_s21 + $0x6] ss:$8 sm:$0x3] }
  0xcd   : > { %v1095_v17 = vrot.slane %v4565_v12, %v5831_v9 }
  0xcf   : > { %4918 = vmatpush3.bf16.msra.mxu0 %v5073_v13  ;;  %v4566_v13 = vld [vmem:[%s7594_s21 + $0x7] ss:$8 sm:$0x3] }
  0xd0   : > { %4919 = vmatprep.subr.bf16.mxu0 %v5074_v1  ;;  %v1113_v18 = vrot.slane %v4566_v13, %v5828_v8 }
  0xd3   : > { %4920 = vmatpush3.bf16.msra.mxu0 %v5075_v0 }
  0xd4   : > { %4921 = vmatprep.subr.bf16.mxu0 %v5076_v14 }
  0xd7   : > { %4922 = vmatpush3.bf16.msra.mxu0 %v5077_v15 }
  0xd8   : > { %4923 = vmatprep.subr.bf16.mxu0 %v5078_v16  ;;  %v1091_v16 = vrot.slane %v4565_v12, %v5828_v8  ;;  %v5100_v12 = vld [vmem:[%s7534_s17 + $0x60] ss:$16 sps:$4 sm:$0xff]  }
 0x195   : > { %v930_v37 = vpop.f32.mrb[0].mxu0 }
 0x196   : > { %v943_v39 = vmul.f32 %v941_v36, %v930_v37  ;;  %v932_v40 = vpop.f32.mrb[1].mxu0 }
 0x197   : > { %v944_v41 = vmul.f32 %v941_v36, %v932_v40  ;;  %v934_v42 = vpop.f32.mrb[2].mxu0  ;;  %v4563_v36 = vld [vmem:[%s7594_s21 + $0x3] ss:$8 sm:$0x3] }
 0x198   : > { %v951_v43 = vadd.f32 %v949_v38, %v943_v39  ;;  %v935_v44 = vpop.f32.mrb[3].mxu0  ;;  %v1029_v42 = vrot.slane %v4562_v33, %v5831_v9 }
 0x199   : > { %v952_v45 = vadd.f32 %v949_v38, %v944_v41  ;;  %v1025_v41 = vrot.slane %v4562_v33, %v5828_v8  ;;  %v1051_v44 = vrot.slane %v4563_v36, %v5831_v9 }
 0x19a   : > { %953 = vrot.lane.b32.xlu1 %v951_v43, %s7589_s1 }
 0x19b   : > { %955 = vrot.lane.b32.xlu0 %v952_v45, %s7589_s1 }
 0x20c   : > { %v954_v46 = vpop.permute.xlu1 %953 }
 0x20d   : > { %v956_v47 = vpop.permute.xlu0 %955 }
 0x20e   : > { %v957_v48 = vsel %vm790_vm4, %v954_v46, %v956_v47  ;;  %v958_v49 = vsel %vm790_vm4, %v956_v47, %v954_v46 }
 0x20f   : > { %v959_v50 = vmax.f32 %v951_v43, %v957_v48  ;;  %v960_v51 = vmax.f32 %v952_v45, %v958_v49  ;;  %v1047_v43 = vrot.slane %v4563_v36, %v5828_v8  ;;  %v4564_v45 = vld [vmem:[%s7594_s21 + $0x5] ss:$8 sm:$0x3] }
 0x211   : > { %963 = vrot.lane.b32.xlu0 %v960_v51, %s7559_s5  ;;  %961 = vrot.lane.b32.xlu1 %v959_v50, %s7559_s5  ;;  %s7564_s5 = sand.u32 1, %s5574_s28  }
 0x283   : > { %v964_v52 = vpop.permute.xlu0 %963  ;;  %v962_v53 = vpop.permute.xlu1 %961 }
 0x284   : > { %v965_v54 = vsel %vm834_vm6, %v962_v53, %v964_v52  ;;  %v966_v55 = vsel %vm834_vm6, %v964_v52, %v962_v53  ;;  %v1069_v52 = vrot.slane %v4564_v45, %v5828_v8  ;;  %v1073_v53 = vrot.slane %v4564_v45, %v5831_v9  ;;  %v5081_v45 = vld [vmem:[%s7592_s15 + $0x38] sm:$0xff]  }
 0x285   : > { %v5933_v56 = vmax.f32 %v959_v50, %v965_v54  ;;  %v5935_v57 = vmax.f32 %v960_v51, %v966_v55 }
 0x287   : > { %971 = vrot.lane.b32.xlu0 %v5935_v57, %s5593_s29  ;;  %969 = vrot.lane.b32.xlu1 %v5933_v56, %s5593_s29  ;;  %s5598_s29 = smov 98  }
 0x28b   : > { %992 = vrot.lane.b32.xlu0 %v5935_v57, %s5594_s24  ;;  %990 = vrot.lane.b32.xlu1 %v5933_v56, %s5594_s24  ;;  %s5599_s24 = smov 96  }
 0x28f   : > { %1014 = vrot.lane.b32.xlu0 %v5935_v57, %s5595_s2  ;;  %1012 = vrot.lane.b32.xlu1 %v5933_v56, %s5595_s2  ;;  %s5600_s2 = smov 94  }
 0x293   : > { %1036 = vrot.lane.b32.xlu0 %v5935_v57, %s5596_s0  ;;  %1034 = vrot.lane.b32.xlu1 %v5933_v56, %s5596_s0  ;;  %s7072_s0 = scalar_lea.vmem [#allocation4], %s7564_s5 }
 0x297   : > { %1058 = vrot.lane.b32.xlu0 %v5935_v57, %s5597_s23  ;;  %1056 = vrot.lane.b32.xlu1 %v5933_v56, %s5597_s23  ;;  %s7601_s23 = smov 16  }
 0x29b   : > { %1080 = vrot.lane.b32.xlu0 %v5935_v57, %s5598_s29  ;;  %1078 = vrot.lane.b32.xlu1 %v5933_v56, %s5598_s29  ;;  %s7603_s29 = smov 1  }
 0x29f   : > { %1102 = vrot.lane.b32.xlu0 %v5935_v57, %s5599_s24  ;;  %1100 = vrot.lane.b32.xlu1 %v5933_v56, %s5599_s24  ;;  %s7606_s24 = smov 111  }
 0x2a3   : > { %1124 = vrot.lane.b32.xlu0 %v5935_v57, %s5600_s2  ;;  %1122 = vrot.lane.b32.xlu1 %v5933_v56, %s5600_s2  ;;  %s7595_s2 = sld [smem:[#allocation19_spill]] }
 0x2a7   : > { %1393 = vperm.xlu0 %5063, %v1385_v58   ;;  %1388 = vperm.xlu1 %5064, %v1384_v59  }
 0x2ab   : > { %1407 = vperm.xlu0 %5063, %v1399_v60   ;;  %1402 = vperm.xlu1 %5064, %v1398_v61  }
 0x2f9   : > { %v972_v19 = vpop.permute.xlu0 %971  ;;  %v970_v20 = vpop.permute.xlu1 %969 }
 0x2fa   : > { %v974_v25 = vsel %vm973_vm10, %v970_v20, %v972_v19  ;;  %v975_v26 = vsel %vm973_vm10, %v972_v19, %v970_v20  ;;  %vm1104_vm10 = vcmp.lt.s32.totalorder %v5825_v7, 96  ;;  %v1117_v19 = vrot.slane %v4566_v13, %v5831_v9  ;;  %v4567_v20 = vld [vmem:[%s7594_s21 + $0x10] ss:$8 sm:$0x3] }
 0x2fb   : > { %v988_v31 = vmul.f32 %v981_v21, %v975_v26  ;;  %v989_v34 = vmul.f32 %v985_v23, %v974_v25  ;;  %v1135_v25 = vrot.slane %v4567_v20, %v5828_v8  ;;  %v1139_v26 = vrot.slane %v4567_v20, %v5831_v9  ;;  %v5103_v13 = vld [vmem:[%s7534_s17 + $0x68] ss:$16 sps:$4 sm:$0xff]   ;;  %v5120_v20 = vld [vmem:[%s7534_s17 + $0xc4] ss:$16 sps:$4 sm:$0xff]  }
 0x2fd   : > { %v993_v27 = vpop.permute.xlu0 %992  ;;  %v991_v28 = vpop.permute.xlu1 %990 }
 0x2fe   : > { %v995_v29 = vsel %vm994_vm11, %v991_v28, %v993_v27  ;;  %v996_v30 = vsel %vm994_vm11, %v993_v27, %v991_v28  ;;  %vm1126_vm11 = vcmp.lt.s32.totalorder %v5825_v7, 94  ;;  %v4359_v7 = vld [vmem:[%s7529_s12] sm:$0x3] }
 0x2ff   : > { %v1010_v32 = vmul.f32 %v1003_v22, %v996_v30  ;;  %v1011_v35 = vmul.f32 %v1007_v24, %v995_v29 }
 0x301   : > { %v1015_v37 = vpop.permute.xlu0 %1014  ;;  %v1013_v38 = vpop.permute.xlu1 %1012  ;;  %v1145_v39 = vpack.c.bf16 %v1011_v35, %v989_v34  ;;  %v1144_v40 = vpack.c.bf16 %v1010_v32, %v988_v31 }
 0x302   : > { %v1017_v46 = vsel %vm1016_vm12, %v1013_v38, %v1015_v37  ;;  %v1018_v47 = vsel %vm1016_vm12, %v1015_v37, %v1013_v38  ;;  %vm1412_vm12 = vcmask 523264  }
 0x303   : > { %1170 = vmatprep.subr.bf16.mxu1 %v1145_v39  ;;  %v1032_v54 = vmul.f32 %v1025_v41, %v1018_v47  ;;  %v1033_v55 = vmul.f32 %v1029_v42, %v1017_v46  ;;  %v5065_v42 = vld [vmem:[%s7595_s2] sm:$0xff]   ;;  %s7607_s2 = sand.u32 1, %s5574_s28  }
 0x304   : > { %1171 = vmatpush1.bf16.msra.mxu1 %v1144_v40 }
 0x305   : > { %v1037_v48 = vpop.permute.xlu0 %1036  ;;  %v1035_v49 = vpop.permute.xlu1 %1034 }
 0x306   : > { %v1039_v50 = vsel %vm1038_vm13, %v1035_v49, %v1037_v48  ;;  %v1040_v51 = vsel %vm1038_vm13, %v1037_v48, %v1035_v49  ;;  %vm6227_vm13 = vcmp.lt.s32.totalorder %v701_v5, 64 }
 0x307   : > { %v1054_v58 = vmul.f32 %v1047_v43, %v1040_v51  ;;  %v1055_v59 = vmul.f32 %v1051_v44, %v1039_v50  ;;  %v5079_v43 = vld [vmem:[%s7592_s15 + $0x30] sm:$0xff]   ;;  %v5080_v44 = vld [vmem:[%s7592_s15 + $0x78] sm:$0xff]  }
 0x308   : > { %4924 = vmatpush3.bf16.msra.mxu0 %v5079_v43  ;;  %v5601_v43 = vmov 1966171168  }
 0x309   : > { %v1059_v60 = vpop.permute.xlu0 %1058  ;;  %v1057_v61 = vpop.permute.xlu1 %1056  ;;  %v1147_v62 = vpack.c.bf16 %v1055_v59, %v1033_v55  ;;  %v1146_v63 = vpack.c.bf16 %v1054_v58, %v1032_v54  ;;  %4925 = vmatprep.subr.bf16.mxu0 %v5080_v44  ;;  %v5085_v54 = vld [vmem:[%s7534_s17 + $0x8] ss:$16 sps:$4 sm:$0xff]   ;;  %v5087_v55 = vld [vmem:[%s7534_s17 + $0xc] ss:$16 sps:$4 sm:$0xff]   ;;  %v5090_v58 = vld [vmem:[%s7534_s17 + $0x24] ss:$16 sps:$4 sm:$0xff]   ;;  %v1431_v44 = vunpack.c.l.s4 %v5601_v43 }
 0x30a   : > { %v1061_v3 = vsel %vm1060_vm14, %v1057_v61, %v1059_v60  ;;  %v1062_v4 = vsel %vm1060_vm14, %v1059_v60, %v1057_v61  ;;  %v5093_v59 = vld [vmem:[%s7534_s17 + $0x2c] ss:$16 sps:$4 sm:$0xff]   ;;  %v5088_v60 = vld [vmem:[%s7534_s17 + $0x20] ss:$16 sps:$4 sm:$0xff]   ;;  %v5091_v61 = vld [vmem:[%s7534_s17 + $0x28] ss:$16 sps:$4 sm:$0xff]  }
 0x30b   : > { %v1076_v10 = vmul.f32 %v1069_v52, %v1061_v3  ;;  %v1077_v11 = vmul.f32 %v1073_v53, %v1062_v4  ;;  %1172 = vmatprep.subr.bf16.mxu1 %v1147_v62  ;;  %v5082_v52 = vld [vmem:[%s7534_s17] ss:$16 sps:$4 sm:$0xff]   ;;  %v5084_v53 = vld [vmem:[%s7534_s17 + $0x4] ss:$16 sps:$4 sm:$0xff]   ;;  %v5097_v4 = vld [vmem:[%s7534_s17 + $0x48] ss:$16 sps:$4 sm:$0xff]  }
 0x30c   : > { %1173 = vmatpush1.bf16.msra.mxu1 %v1146_v63  ;;  %4926 = vmatpush3.bf16.msra.mxu0 %v5081_v45  ;;  %v5096_v62 = vld [vmem:[%s7534_s17 + $0x44] ss:$16 sps:$4 sm:$0xff]   ;;  %v5099_v63 = vld [vmem:[%s7534_s17 + $0x4c] ss:$16 sps:$4 sm:$0xff]   ;;  %v5094_v3 = vld [vmem:[%s7534_s17 + $0x40] ss:$16 sps:$4 sm:$0xff]  }
 0x30d   : > { %v1081_v1 = vpop.permute.xlu0 %1080  ;;  %v1079_v0 = vpop.permute.xlu1 %1078  ;;  %v1149_v14 = vpack.c.bf16 %v1077_v11, %v5935_v57  ;;  %v1148_v15 = vpack.c.bf16 %v1076_v10, %v5933_v56  ;;  %3370 = vmatprep.subr.bf16.mxu0 %v5087_v55  ;;  %v5102_v10 = vld [vmem:[%s7534_s17 + $0x64] ss:$16 sps:$4 sm:$0xff]   ;;  %v5105_v11 = vld [vmem:[%s7534_s17 + $0x6c] ss:$16 sps:$4 sm:$0xff]   ;;  %v5175_v43 = vld [vmem:[%s7534_s17 + $0x1e8] ss:$16 sps:$4 sm:$0xff]  }
 0x30e   : > { %v1083_v21 = vsel %vm1082_vm15, %v1079_v0, %v1081_v1  ;;  %v1084_v22 = vsel %vm1082_vm15, %v1081_v1, %v1079_v0  ;;  %v5108_v1 = vld [vmem:[%s7534_s17 + $0x84] ss:$16 sps:$4 sm:$0xff]   ;;  %v5111_v0 = vld [vmem:[%s7534_s17 + $0x8c] ss:$16 sps:$4 sm:$0xff]   ;;  %vm1440_vm14 = vcmp.ge.s32.totalorder %v701_v5, 64  ;;  %vm1441_vm15 = vcmp.lt.s32.totalorder %v701_v5, 128 }
 0x30f   : > { %1174 = vmatprep.subr.bf16.mxu1 %v1149_v14  ;;  %v1098_v27 = vmul.f32 %v1091_v16, %v1083_v21  ;;  %v1099_v28 = vmul.f32 %v1095_v17, %v1084_v22  ;;  %v5106_v14 = vld [vmem:[%s7534_s17 + $0x80] ss:$16 sps:$4 sm:$0xff]   ;;  %v5114_v16 = vld [vmem:[%s7534_s17 + $0xa4] ss:$16 sps:$4 sm:$0xff]   ;;  %v5117_v17 = vld [vmem:[%s7534_s17 + $0xac] ss:$16 sps:$4 sm:$0xff]  }
 0x310   : > { %1175 = vmatpush1.bf16.msra.mxu1 %v1148_v15  ;;  %v5109_v15 = vld [vmem:[%s7534_s17 + $0x88] ss:$16 sps:$4 sm:$0xff]   ;;  %v5123_v21 = vld [vmem:[%s7534_s17 + $0xcc] ss:$16 sps:$4 sm:$0xff]   ;;  %v5118_v22 = vld [vmem:[%s7534_s17 + $0xc0] ss:$16 sps:$4 sm:$0xff]  }
 0x311   : > { %v1103_v57 = vpop.permute.xlu0 %1102  ;;  %v1101_v56 = vpop.permute.xlu1 %1100 }
 0x312   : > { %v1105_v23 = vsel %vm1104_vm10, %v1101_v56, %v1103_v57  ;;  %v1106_v24 = vsel %vm1104_vm10, %v1103_v57, %v1101_v56  ;;  %v5121_v57 = vld [vmem:[%s7534_s17 + $0xc8] ss:$16 sps:$4 sm:$0xff]   ;;  %v5126_v56 = vld [vmem:[%s7534_s17 + $0xe4] ss:$16 sps:$4 sm:$0xff]   ;;  %vm6319_vm10 = vmand %vm1440_vm14, %vm1441_vm15 }
 0x313   : > { %v1120_v29 = vmul.f32 %v1113_v18, %v1105_v23  ;;  %v1121_v30 = vmul.f32 %v1117_v19, %v1106_v24  ;;  %v5112_v18 = vld [vmem:[%s7534_s17 + $0xa0] ss:$16 sps:$4 sm:$0xff]   ;;  %v5115_v19 = vld [vmem:[%s7534_s17 + $0xa8] ss:$16 sps:$4 sm:$0xff]   ;;  %v5129_v23 = vld [vmem:[%s7534_s17 + $0xec] ss:$16 sps:$4 sm:$0xff]  }
 0x314   : > { %v5124_v24 = vld [vmem:[%s7534_s17 + $0xe0] ss:$16 sps:$4 sm:$0xff]  }
 0x315   : > { %v1125_v31 = vpop.permute.xlu0 %1124  ;;  %v1123_v32 = vpop.permute.xlu1 %1122  ;;  %v1151_v33 = vpack.c.bf16 %v1121_v30, %v1099_v28  ;;  %v1150_v34 = vpack.c.bf16 %v1120_v29, %v1098_v27  ;;  %v5135_v27 = vld [vmem:[%s7534_s17 + $0x10c] ss:$16 sps:$4 sm:$0xff]   ;;  %v5130_v28 = vld [vmem:[%s7534_s17 + $0x100] ss:$16 sps:$4 sm:$0xff]   ;;  %v5133_v29 = vld [vmem:[%s7534_s17 + $0x108] ss:$16 sps:$4 sm:$0xff]  }
 0x316   : > { %v1127_v35 = vsel %vm1126_vm11, %v1123_v32, %v1125_v31  ;;  %v1128_v36 = vsel %vm1126_vm11, %v1125_v31, %v1123_v32  ;;  %v5138_v30 = vld [vmem:[%s7534_s17 + $0x124] ss:$16 sps:$4 sm:$0xff]   ;;  %v5141_v31 = vld [vmem:[%s7534_s17 + $0x12c] ss:$16 sps:$4 sm:$0xff]   ;;  %v5136_v32 = vld [vmem:[%s7534_s17 + $0x120] ss:$16 sps:$4 sm:$0xff]  }
 0x317   : > { %v1142_v37 = vmul.f32 %v1135_v25, %v1127_v35  ;;  %v1143_v38 = vmul.f32 %v1139_v26, %v1128_v36  ;;  %1176 = vmatprep.subr.bf16.mxu1 %v1151_v33  ;;  %v5127_v25 = vld [vmem:[%s7534_s17 + $0xe8] ss:$16 sps:$4 sm:$0xff]   ;;  %v5132_v26 = vld [vmem:[%s7534_s17 + $0x104] ss:$16 sps:$4 sm:$0xff]   ;;  %vm4224_vm11 = vcmask 130048  }
 0x318   : > { %1177 = vmatpush1.bf16.msra.mxu1 %v1150_v34  ;;  %v5139_v33 = vld [vmem:[%s7534_s17 + $0x128] ss:$16 sps:$4 sm:$0xff]  }
 0x319   : > { %v1152_v39 = vpack.c.bf16 %v1142_v37, %v1142_v37  ;;  %v1153_v40 = vpack.c.bf16 %v1143_v38, %v1143_v38 }
 0x31b   : > { %4569 = vmatprep.subr.msk.bf16.mxu1 %vm889_vm8, %v1153_v40  ;;  %v1165_v41 = vsel %vm889_vm8, %v1152_v39, 0 }
 0x31c   : > { %1179 = vmatpush1.bf16.msra.mxu1 %v1165_v41 }
 0x31d   : > { %3206 = vmatprep.subr.bf16.mxu1 %v5084_v53 }
 0x31f   : > { %4570 = vmatmul.mubr.msk.bf16.vlgmr.msra.gmra.mrb[0].mxu1 %vm885_vm9, %v5065_v42 }
 0x320   : > { %3207 = vmatpush1.bf16.msra.mxu1 %v5082_v52  ;;  %v5147_v52 = vld [vmem:[%s7534_s17 + $0x14c] ss:$16 sps:$4 sm:$0xff]  }
 0x321   : > { %3208 = vmatprep.subr.bf16.mxu1 %v5090_v58  ;;  %v5148_v58 = vld [vmem:[%s7534_s17 + $0x160] ss:$16 sps:$4 sm:$0xff]  }
 0x324   : > { %3209 = vmatpush1.bf16.msra.mxu1 %v5088_v60  ;;  %v5151_v60 = vld [vmem:[%s7534_s17 + $0x168] ss:$16 sps:$4 sm:$0xff]  }
 0x325   : > { %3210 = vmatprep.subr.bf16.mxu1 %v5096_v62 }
 0x326   : > { %v1389_v34 = vpop.permute.xlu1 %1388  ;;  %v1394_v36 = vpop.permute.xlu0 %1393 }
 0x328   : > { %3211 = vmatpush1.bf16.msra.mxu1 %v5094_v3  ;;  %v5154_v3 = vld [vmem:[%s7534_s17 + $0x180] ss:$16 sps:$4 sm:$0xff]  }
 0x329   : > { %3212 = vmatprep.subr.bf16.mxu1 %v5102_v10 }
 0x32a   : > { %v1403_v45 = vpop.permute.xlu1 %1402 }
 0x32c   : > { %3213 = vmatpush1.bf16.msra.mxu1 %v5100_v12 }
 0x32d   : > { %3214 = vmatprep.subr.bf16.mxu1 %v5108_v1 }
 0x330   : > { %3215 = vmatpush1.bf16.msra.mxu1 %v5106_v14 }
 0x331   : > { %3216 = vmatprep.subr.bf16.mxu1 %v5114_v16 }
 0x334   : > { %3217 = vmatpush1.bf16.msra.mxu1 %v5112_v18 }
 0x335   : > { %3218 = vmatprep.subr.bf16.mxu1 %v5120_v20 }
 0x338   : > { %3219 = vmatpush1.bf16.msra.mxu1 %v5118_v22 }
 0x339   : > { %3220 = vmatprep.subr.bf16.mxu1 %v5126_v56  ;;  %v5159_v56 = vld [vmem:[%s7534_s17 + $0x18c] ss:$16 sps:$4 sm:$0xff]  }
 0x33c   : > { %3221 = vmatpush1.bf16.msra.mxu1 %v5124_v24 }
 0x33d   : > { %3222 = vmatprep.subr.bf16.mxu1 %v5132_v26 }
 0x340   : > { %3223 = vmatpush1.bf16.msra.mxu1 %v5130_v28  ;;  %v5162_v28 = vld [vmem:[%s7534_s17 + $0x1a4] ss:$16 sps:$4 sm:$0xff]  }
 0x341   : > { %3224 = vmatprep.subr.bf16.mxu1 %v5138_v30  ;;  %v5163_v30 = vld [vmem:[%s7534_s17 + $0x1a8] ss:$16 sps:$4 sm:$0xff]  }
 0x344   : > { %3225 = vmatpush1.bf16.msra.mxu1 %v5136_v32 }
 0x3f2   : > { %v1204_v46 = vpop.f32.mrb[0].mxu1 }
 0x3f3   : > { %v1206_v47 = vpop.f32.mrb[1].mxu1 }
 0x3f4   : > { %v1208_v48 = vpop.f32.mrb[2].mxu1 }
 0x3f5   : > { %v1213_v49 = vpack.c.bf16 %v1208_v48, %v1204_v46  ;;  %v1210_v50 = vpop.f32.mrb[3].mxu1  ;;  %v5142_v48 = vld [vmem:[%s7534_s17 + $0x140] ss:$16 sps:$4 sm:$0xff]  }
 0x3f6   : > { %v1214_v51 = vpack.c.bf16 %v1210_v50, %v1206_v47  ;;  %v5145_v50 = vld [vmem:[%s7534_s17 + $0x148] ss:$16 sps:$4 sm:$0xff]  }
 0x3f8   : > { %1375 = vmatprep.mubr.bf16.mxu0 %v1214_v51  ;;  %v1408_v51 = vpop.permute.xlu0 %1407 }
 0x3f9   : > { %1376 = vmatmul.mubr.bf16.vlgmr.msra.gmra.mrb[4].mxu0 %v1213_v49  ;;  %v5144_v49 = vld [vmem:[%s7534_s17 + $0x144] ss:$16 sps:$4 sm:$0xff]  }
 0x3fa   : > { %3371 = vmatpush1.bf16.msra.mxu0 %v5085_v54  ;;  %v1432_v54 = vunpack.c.0.s8 %v1431_v44  ;;  %3226 = vmatprep.subr.bf16.mxu1 %v5144_v49  ;;  %v5180_v44 = vld [vmem:[%s7534_s17 + $0x204] ss:$16 sps:$4 sm:$0xff]  }
 0x3fb   : > { %3372 = vmatprep.subr.bf16.mxu0 %v5093_v59  ;;  %3227 = vmatpush1.bf16.msra.mxu1 %v5142_v48  ;;  %v5150_v59 = vld [vmem:[%s7534_s17 + $0x164] ss:$16 sps:$4 sm:$0xff]  }
 0x3fc   : > { %v6224_v62 = vsub.s32 %v1432_v54, %v5822_v6  ;;  %3228 = vmatprep.subr.bf16.mxu1 %v5150_v59  ;;  %v1614_v59 = vsub.s32 3, %v5822_v6 }
 0x3fe   : > { %3373 = vmatpush1.bf16.msra.mxu0 %v5091_v61  ;;  %v5153_v61 = vld [vmem:[%s7534_s17 + $0x16c] ss:$16 sps:$4 sm:$0xff]  }
 0x3ff   : > { %3374 = vmatprep.subr.bf16.mxu0 %v5099_v63  ;;  %3229 = vmatpush1.bf16.msra.mxu1 %v5148_v58 }
 0x402   : > { %3375 = vmatpush1.bf16.msra.mxu0 %v5097_v4  ;;  %v5156_v4 = vld [vmem:[%s7534_s17 + $0x184] ss:$16 sps:$4 sm:$0xff]  }
 0x403   : > { %3376 = vmatprep.subr.bf16.mxu0 %v5105_v11  ;;  %3230 = vmatprep.subr.bf16.mxu1 %v5156_v4  ;;  %v5178_v4 = vld [vmem:[%s7534_s17 + $0x200] ss:$16 sps:$4 sm:$0xff]  }
 0x404   : > { %3231 = vmatpush1.bf16.msra.mxu1 %v5154_v3 }
 0x405   : > { %3232 = vmatprep.subr.bf16.mxu1 %v5162_v28  ;;  %v5211_v28 = vld [vmem:[%s7534_s17 + $0x2a8] ss:$16 sps:$4 sm:$0xff]  }
 0x406   : > { %3377 = vmatpush1.bf16.msra.mxu0 %v5103_v13 }
 0x407   : > { %3378 = vmatprep.subr.bf16.mxu0 %v5111_v0 }
 0x40a   : > { %3379 = vmatpush1.bf16.msra.mxu0 %v5109_v15 }
 0x40b   : > { %3380 = vmatprep.subr.bf16.mxu0 %v5117_v17 }
 0x40e   : > { %3381 = vmatpush1.bf16.msra.mxu0 %v5115_v19 }
 0x40f   : > { %3382 = vmatprep.subr.bf16.mxu0 %v5123_v21  ;;  %v5157_v21 = vld [vmem:[%s7534_s17 + $0x188] ss:$16 sps:$4 sm:$0xff]  }
 0x412   : > { %3383 = vmatpush1.bf16.msra.mxu0 %v5121_v57 }
 0x413   : > { %3384 = vmatprep.subr.bf16.mxu0 %v5129_v23 }
 0x416   : > { %3385 = vmatpush1.bf16.msra.mxu0 %v5127_v25 }
 0x417   : > { %3386 = vmatprep.subr.bf16.mxu0 %v5135_v27  ;;  %v5160_v27 = vld [vmem:[%s7534_s17 + $0x1a0] ss:$16 sps:$4 sm:$0xff]  }
 0x418   : > { %3233 = vmatpush1.bf16.msra.mxu1 %v5160_v27  ;;  %v5208_v27 = vld [vmem:[%s7534_s17 + $0x2a0] ss:$16 sps:$4 sm:$0xff]  }
 0x41a   : > { %3387 = vmatpush1.bf16.msra.mxu0 %v5133_v29 }
 0x41b   : > { %3388 = vmatprep.subr.bf16.mxu0 %v5141_v31  ;;  %v5165_v31 = vld [vmem:[%s7534_s17 + $0x1ac] ss:$16 sps:$4 sm:$0xff]  }
 0x41e   : > { %3389 = vmatpush1.bf16.msra.mxu0 %v5139_v33  ;;  %v5168_v33 = vld [vmem:[%s7534_s17 + $0x1c4] ss:$16 sps:$4 sm:$0xff]  }
 0x41f   : > { %3390 = vmatprep.subr.bf16.mxu0 %v5147_v52  ;;  %3234 = vmatprep.subr.bf16.mxu1 %v5168_v33  ;;  %v5222_v33 = vld [vmem:[%s7534_s17 + $0x2e4] ss:$16 sps:$4 sm:$0xff]  }
 0x422   : > { %3391 = vmatpush1.bf16.msra.mxu0 %v5145_v50 }
 0x423   : > { %3392 = vmatprep.subr.bf16.mxu0 %v5153_v61 }
 0x426   : > { %3393 = vmatpush1.bf16.msra.mxu0 %v5151_v60 }
 0x427   : > { %3394 = vmatprep.subr.bf16.mxu0 %v5159_v56  ;;  %v5207_v56 = vld [vmem:[%s7534_s17 + $0x28c] ss:$16 sps:$4 sm:$0xff]  }
 0x42a   : > { %3395 = vmatpush1.bf16.msra.mxu0 %v5157_v21  ;;  %v5196_v21 = vld [vmem:[%s7534_s17 + $0x260] ss:$16 sps:$4 sm:$0xff]  }
 0x42b   : > { %3396 = vmatprep.subr.bf16.mxu0 %v5165_v31  ;;  %v5214_v31 = vld [vmem:[%s7534_s17 + $0x2c0] ss:$16 sps:$4 sm:$0xff]  }
 0x42e   : > { %3397 = vmatpush1.bf16.msra.mxu0 %v5163_v30  ;;  %v5219_v30 = vld [vmem:[%s7534_s17 + $0x2cc] ss:$16 sps:$4 sm:$0xff]  }
 0x4cc   : > { %v4927_v35 = vpop.f32.mrb[4].mxu0 }
 0x4cd   : > { %v4928_v37 = vpop.f32.mrb[5].mxu0 }
 0x4ce   : > { %v4929_v38 = vadd.f32 %v4928_v37, %v4927_v35  ;;  %v4930_v39 = vpop.f32.mrb[6].mxu0 }
 0x4cf   : > { %v4931_v40 = vpop.f32.mrb[7].mxu0 }
 0x4d0   : > { %v1396_v41 = vmul.f32 %v4929_v38, %v1389_v34  ;;  %v4932_v42 = vadd.f32 %v4931_v40, %v4930_v39  ;;  %v5171_v34 = vld [vmem:[%s7534_s17 + $0x1cc] ss:$16 sps:$4 sm:$0xff]   ;;  %v5169_v38 = vld [vmem:[%s7534_s17 + $0x1c8] ss:$16 sps:$4 sm:$0xff]   ;;  %v5174_v39 = vld [vmem:[%s7534_s17 + $0x1e4] ss:$16 sps:$4 sm:$0xff]  }
 0x4d1   : > { %3398 = vmatprep.subr.bf16.mxu0 %v5171_v34  ;;  %v5225_v34 = vld [vmem:[%s7534_s17 + $0x2ec] ss:$16 sps:$4 sm:$0xff]  }
 0x4d2   : > { %v6189_v46 = vadd.f32 %v1403_v45, %v1396_v41  ;;  %v1397_v47 = vmul.f32 %v4932_v42, %v1394_v36  ;;  %v5166_v36 = vld [vmem:[%s7534_s17 + $0x1c0] ss:$16 sps:$4 sm:$0xff]   ;;  %v5177_v41 = vld [vmem:[%s7534_s17 + $0x1ec] ss:$16 sps:$4 sm:$0xff]   ;;  %3399 = vmatpush1.bf16.msra.mxu0 %v5169_v38 }
 0x4d3   : > { %3235 = vmatpush1.bf16.msra.mxu1 %v5166_v36  ;;  %v5172_v42 = vld [vmem:[%s7534_s17 + $0x1e0] ss:$16 sps:$4 sm:$0xff]   ;;  %3400 = vmatprep.subr.bf16.mxu0 %v5177_v41  ;;  %v5183_v45 = vld [vmem:[%s7534_s17 + $0x20c] ss:$16 sps:$4 sm:$0xff]   ;;  %v5223_v36 = vld [vmem:[%s7534_s17 + $0x2e8] ss:$16 sps:$4 sm:$0xff]  }
 0x4d4   : > { %1413 = vst.msk [vmem:[#allocation2] sm:$0xff] %vm1412_vm12, %v6189_v46  ;;  %v6205_v53 = vadd.f32 %v1408_v51, %v1397_v47  ;;  %3236 = vmatprep.subr.bf16.mxu1 %v5174_v39  ;;  %v5231_v38 = vld [vmem:[%s7534_s17 + $0x30c] ss:$16 sps:$4 sm:$0xff]   ;;  %v5226_v39 = vld [vmem:[%s7534_s17 + $0x300] ss:$16 sps:$4 sm:$0xff]  }
 0x4d5   : > { %v5234_v41 = vld [vmem:[%s7534_s17 + $0x324] ss:$16 sps:$4 sm:$0xff]   ;;  %v5243_v47 = vld [vmem:[%s7534_s17 + $0x34c] ss:$16 sps:$4 sm:$0xff]  }
 0x4d6   : > { %1414 = vst.msk [vmem:[#allocation2 + $0x8] sm:$0xff] %vm1412_vm12, %v6205_v53  ;;  %v3880_v55 = vpack.c.bf16 %v6205_v53, %v6189_v46  ;;  %3401 = vmatpush1.bf16.msra.mxu0 %v5175_v43  ;;  %v5232_v43 = vld [vmem:[%s7534_s17 + $0x320] ss:$16 sps:$4 sm:$0xff]  }
 0x4d7   : > { %3237 = vmatpush1.bf16.msra.mxu1 %v5172_v42  ;;  %3411 = vmatprep.subr.bf16.mxu0 %v5183_v45  ;;  %v5237_v42 = vld [vmem:[%s7534_s17 + $0x32c] ss:$16 sps:$4 sm:$0xff]   ;;  %v5240_v45 = vld [vmem:[%s7534_s17 + $0x344] ss:$16 sps:$4 sm:$0xff]  }
 0x4d8   : > { %3247 = vmatprep.subr.bf16.mxu1 %v5180_v44  ;;  %v5235_v44 = vld [vmem:[%s7534_s17 + $0x328] ss:$16 sps:$4 sm:$0xff]  }
 0x4db   : > { %v4588_v10 = vld.sshfl [vmem:[#allocation2 + $0x3] sm:$0x1 pattern:$0x75316420]  ;;  %v1444_v11 = vld [vmem:[#allocation2 + $0x2] sm:$0x1] }
 0x4dc   : > { %v1461_v12 = vrot.slane %v4588_v10, %v6224_v62  ;;  %v4587_v13 = vld.sshfl [vmem:[#allocation2 + $0x1] sm:$0x1 pattern:$0x75316420]  ;;  %1445 = vst.msk [vmem:[#allocation3 + $0x1] sm:$0x1] %vm6227_vm13, %v1444_v11 }
 0x4dd   : > { %v1415_v1 = vld [vmem:[#allocation2] sm:$0x1]  ;;  %v1436_v0 = vrot.slane %v4587_v13, %v6224_v62  ;;  %v4590_v14 = vld.sshfl [vmem:[#allocation2 + $0x7] sm:$0x1 pattern:$0x75316420] }
 0x4de   : > { %1420 = vst.msk [vmem:[#allocation3] sm:$0x1] %vm6227_vm13, %v1415_v1  ;;  %v1488_v15 = vld [vmem:[#allocation2 + $0x6] sm:$0x1]  ;;  %1462 = vrot.lane.b32.xlu0 %v1461_v12, %s5602_s7  ;;  %v1466_v17 = vld [vmem:[#allocation2 + $0x4] sm:$0x1]  ;;  %v1505_v19 = vrot.slane %v4590_v14, %v6224_v62 }
 0x4df   : > { %v4589_v16 = vld.sshfl [vmem:[#allocation2 + $0x5] sm:$0x1 pattern:$0x75316420]  ;;  %1489 = vst.msk [vmem:[#allocation3 + $0x3] sm:$0x1] %vm6227_vm13, %v1488_v15  ;;  %1437 = vrot.lane.b32.xlu1 %v1436_v0, %s5602_s7 }
 0x4e0   : > { %1467 = vst.msk [vmem:[#allocation3 + $0x2] sm:$0x1] %vm6227_vm13, %v1466_v17  ;;  %v1532_v18 = vld [vmem:[#allocation2 + $0xa] sm:$0x1]  ;;  %v1510_v20 = vld [vmem:[#allocation2 + $0x8] sm:$0x1]  ;;  %v1483_v22 = vrot.slane %v4589_v16, %v6224_v62 }
 0x4e1   : > { %1533 = vst.msk [vmem:[#allocation3 + $0x5] sm:$0x1] %vm6227_vm13, %v1532_v18  ;;  %v4592_v57 = vld.sshfl [vmem:[#allocation2 + $0xb] sm:$0x1 pattern:$0x75316420] }
 0x4e2   : > { %1511 = vst.msk [vmem:[#allocation3 + $0x4] sm:$0x1] %vm6227_vm13, %v1510_v20  ;;  %1506 = vrot.lane.b32.xlu0 %v1505_v19, %s5602_s7  ;;  %v4591_v23 = vld.sshfl [vmem:[#allocation2 + $0x9] sm:$0x1 pattern:$0x75316420]  ;;  %v1549_v29 = vrot.slane %v4592_v57, %v6224_v62 }
 0x4e3   : > { %v1576_v24 = vld [vmem:[#allocation2 + $0xe] sm:$0x1]  ;;  %1484 = vrot.lane.b32.xlu1 %v1483_v22, %s5602_s7  ;;  %v4594_v25 = vld.sshfl [vmem:[#allocation2 + $0xf] sm:$0x1 pattern:$0x75316420]  ;;  %v1527_v32 = vrot.slane %v4591_v23, %v6224_v62 }
 0x4e4   : > { %1577 = vst.msk [vmem:[#allocation3 + $0x7] sm:$0x1] %vm6227_vm13, %v1576_v24  ;;  %v1554_v26 = vld [vmem:[#allocation2 + $0xc] sm:$0x1]  ;;  %v1593_v37 = vrot.slane %v4594_v25, %v6224_v62  ;;  %v5181_v10 = vld [vmem:[%s7534_s17 + $0x208] ss:$16 sps:$4 sm:$0xff]  }
 0x4e5   : > { %1555 = vst.msk [vmem:[#allocation3 + $0x6] sm:$0x1] %vm6227_vm13, %v1554_v26  ;;  %v4593_v35 = vld.sshfl [vmem:[#allocation2 + $0xd] sm:$0x1 pattern:$0x75316420] }
 0x4e6   : > { %1550 = vrot.lane.b32.xlu0 %v1549_v29, %s5602_s7  ;;  %v1571_v40 = vrot.slane %v4593_v35, %v6224_v62  ;;  %v5186_v12 = vld [vmem:[%s7534_s17 + $0x224] ss:$16 sps:$4 sm:$0xff]   ;;  %v5189_v13 = vld [vmem:[%s7534_s17 + $0x22c] ss:$16 sps:$4 sm:$0xff]   ;;  %v5184_v0 = vld [vmem:[%s7534_s17 + $0x220] ss:$16 sps:$4 sm:$0xff]  }
 0x4e7   : > { %1528 = vrot.lane.b32.xlu1 %v1527_v32, %s5602_s7  ;;  %v5187_v14 = vld [vmem:[%s7534_s17 + $0x228] ss:$16 sps:$4 sm:$0xff]   ;;  %v5192_v15 = vld [vmem:[%s7534_s17 + $0x244] ss:$16 sps:$4 sm:$0xff]   ;;  %v5195_v16 = vld [vmem:[%s7534_s17 + $0x24c] ss:$16 sps:$4 sm:$0xff]  }
 0x4e8   : > { %v5190_v17 = vld [vmem:[%s7534_s17 + $0x240] ss:$16 sps:$4 sm:$0xff]   ;;  %v5193_v18 = vld [vmem:[%s7534_s17 + $0x248] ss:$16 sps:$4 sm:$0xff]   ;;  %v5198_v19 = vld [vmem:[%s7534_s17 + $0x264] ss:$16 sps:$4 sm:$0xff]  }
 0x4e9   : > { %v5201_v20 = vld [vmem:[%s7534_s17 + $0x26c] ss:$16 sps:$4 sm:$0xff]   ;;  %v5199_v22 = vld [vmem:[%s7534_s17 + $0x268] ss:$16 sps:$4 sm:$0xff]   ;;  %v5204_v57 = vld [vmem:[%s7534_s17 + $0x284] ss:$16 sps:$4 sm:$0xff]  }
 0x4ea   : > { %1594 = vrot.lane.b32.xlu0 %v1593_v37, %s5602_s7  ;;  %v5202_v23 = vld [vmem:[%s7534_s17 + $0x280] ss:$16 sps:$4 sm:$0xff]   ;;  %v5205_v24 = vld [vmem:[%s7534_s17 + $0x288] ss:$16 sps:$4 sm:$0xff]   ;;  %v5210_v25 = vld [vmem:[%s7534_s17 + $0x2a4] ss:$16 sps:$4 sm:$0xff]  }
 0x4eb   : > { %1572 = vrot.lane.b32.xlu1 %v1571_v40, %s5602_s7  ;;  %v5213_v26 = vld [vmem:[%s7534_s17 + $0x2ac] ss:$16 sps:$4 sm:$0xff]   ;;  %v5216_v29 = vld [vmem:[%s7534_s17 + $0x2c4] ss:$16 sps:$4 sm:$0xff]   ;;  %v5217_v32 = vld [vmem:[%s7534_s17 + $0x2c8] ss:$16 sps:$4 sm:$0xff]  }
 0x4ec   : > { %v5220_v35 = vld [vmem:[%s7534_s17 + $0x2e0] ss:$16 sps:$4 sm:$0xff]   ;;  %v5228_v37 = vld [vmem:[%s7534_s17 + $0x304] ss:$16 sps:$4 sm:$0xff]   ;;  %v5229_v40 = vld [vmem:[%s7534_s17 + $0x308] ss:$16 sps:$4 sm:$0xff]  }
 0x4ed   : > { %s4464_s7 = sshll.u32 %s7072_s0, 4  ;;  %s4465_s7 = int_to_ptr.vmem [resolvable:$true] %s4464_s7 }
 0x550   : > { %v1463_v48 = vpop.permute.xlu0 %1462 }
 0x551   : > { %1465 = vst.msk [vmem:[#allocation3 + $0x1] sm:$0x1] %vm6319_vm10, %v1463_v48  ;;  %v1438_v49 = vpop.permute.xlu1 %1437  ;;  %v5238_v48 = vld [vmem:[%s7534_s17 + $0x340] ss:$16 sps:$4 sm:$0xff]  }
 0x552   : > { %1443 = vst.msk [vmem:[#allocation3] sm:$0x1] %vm6319_vm10, %v1438_v49  ;;  %v5241_v49 = vld [vmem:[%s7534_s17 + $0x348] ss:$16 sps:$4 sm:$0xff]  }
 0x554   : > { %v1507_v50 = vpop.permute.xlu0 %1506 }
 0x555   : > { %1509 = vst.msk [vmem:[#allocation3 + $0x3] sm:$0x1] %vm6319_vm10, %v1507_v50  ;;  %v1485_v51 = vpop.permute.xlu1 %1484  ;;  %v5246_v50 = vld [vmem:[%s7534_s17 + $0x364] ss:$16 sps:$4 sm:$0xff]  }
 0x556   : > { %1487 = vst.msk [vmem:[#allocation3 + $0x2] sm:$0x1] %vm6319_vm10, %v1485_v51  ;;  %v5249_v51 = vld [vmem:[%s7534_s17 + $0x36c] ss:$16 sps:$4 sm:$0xff]  }
 0x558   : > { %v1551_v5 = vpop.permute.xlu0 %1550 }
 0x559   : > { %1553 = vst.msk [vmem:[#allocation3 + $0x5] sm:$0x1] %vm6319_vm10, %v1551_v5  ;;  %v1529_v52 = vpop.permute.xlu1 %1528  ;;  %v5244_v5 = vld [vmem:[%s7534_s17 + $0x360] ss:$16 sps:$4 sm:$0xff]  }
 0x55a   : > { %1531 = vst.msk [vmem:[#allocation3 + $0x4] sm:$0x1] %vm6319_vm10, %v1529_v52  ;;  %v5247_v52 = vld [vmem:[%s7534_s17 + $0x368] ss:$16 sps:$4 sm:$0xff]  }
 0x55c   : > { %v1595_v54 = vpop.permute.xlu0 %1594 }
 0x55d   : > { %1597 = vst.msk [vmem:[#allocation3 + $0x7] sm:$0x1] %vm6319_vm10, %v1595_v54  ;;  %v1573_v58 = vpop.permute.xlu1 %1572  ;;  %v5252_v54 = vld [vmem:[%s7534_s17 + $0x384] ss:$16 sps:$4 sm:$0xff]  }
 0x55e   : > { %1575 = vst.msk [vmem:[#allocation3 + $0x6] sm:$0x1] %vm6319_vm10, %v1573_v58  ;;  %v5255_v58 = vld [vmem:[%s7534_s17 + $0x38c] ss:$16 sps:$4 sm:$0xff]  }
 0x565   : > { %v6340_v60 = vld [vmem:[#allocation3] sm:$0xff] }
 0x566   : > { %v1607_v61 = vrot.slane %v6340_v60, %v5831_v9  ;;  %v1603_v62 = vrot.slane %v6340_v60, %v5828_v8  ;;  %v1615_v63 = vrot.slane %v6340_v60, %v1614_v59 }
 0x568   : > { %v1641_v3 = vpack.c.bf16 %v1607_v61, %v1607_v61  ;;  %v1640_v11 = vpack.c.bf16 %v1603_v62, %v1603_v62  ;;  %v1643_v1 = vpack.c.bf16 %v1615_v63, %v1615_v63  ;;  %v5250_v61 = vld [vmem:[%s7534_s17 + $0x380] ss:$16 sps:$4 sm:$0xff]   ;;  %v5253_v62 = vld [vmem:[%s7534_s17 + $0x388] ss:$16 sps:$4 sm:$0xff]   ;;  %v5258_v63 = vld [vmem:[%s7534_s17 + $0x3a4] ss:$16 sps:$4 sm:$0xff]  }
 0x56a   : > { %3238 = vmatprep.mubr.bf16.mxu1 %v1641_v3  ;;  %3402 = vmatprep.mubr.bf16.mxu0 %v1641_v3  ;;  %v5261_v3 = vld [vmem:[%s7534_s17 + $0x3ac] ss:$16 sps:$4 sm:$0xff]  }
 0x56b   : > { %3239 = vmatmul.mubr.bf16.vlgmr.msra.gmra.mrb[4].mxu1 %v1640_v11  ;;  %3403 = vmatmul.mubr.bf16.vlgmr.msra.gmra.mrb[8].mxu0 %v1640_v11  ;;  %v5264_v11 = vld [vmem:[%s7534_s17 + $0x3c4] ss:$16 sps:$4 sm:$0xff]  }
 0x56c   : > { %3248 = vmatpush1.bf16.msra.mxu1 %v5178_v4  ;;  %3412 = vmatpush1.bf16.msra.mxu0 %v5181_v10  ;;  %v5256_v4 = vld [vmem:[%s7534_s17 + $0x3a0] ss:$16 sps:$4 sm:$0xff]   ;;  %v5259_v10 = vld [vmem:[%s7534_s17 + $0x3a8] ss:$16 sps:$4 sm:$0xff]  }
 0x56d   : > { %3279 = vmatprep.mubr.bf16.mxu1 %v1643_v1  ;;  %3443 = vmatprep.mubr.bf16.mxu0 %v1643_v1  ;;  %v5265_v1 = vld [vmem:[%s7534_s17 + $0x3c8] ss:$16 sps:$4 sm:$0xff]  }
 0x56e   : > { %3249 = vmatprep.subr.bf16.mxu1 %v5186_v12  ;;  %3413 = vmatprep.subr.bf16.mxu0 %v5189_v13  ;;  %v5267_v12 = vld [vmem:[%s7534_s17 + $0x3cc] ss:$16 sps:$4 sm:$0xff]   ;;  %v5262_v13 = vld [vmem:[%s7534_s17 + $0x3c0] ss:$16 sps:$4 sm:$0xff]  }
 0x570   : > { %3250 = vmatpush1.bf16.msra.mxu1 %v5184_v0  ;;  %3414 = vmatpush1.bf16.msra.mxu0 %v5187_v14  ;;  %v5270_v0 = vld [vmem:[%s7534_s17 + $0x3e4] ss:$16 sps:$4 sm:$0xff]   ;;  %v5273_v14 = vld [vmem:[%s7534_s17 + $0x3ec] ss:$16 sps:$4 sm:$0xff]  }
 0x571   : > { %3251 = vmatprep.subr.bf16.mxu1 %v5192_v15  ;;  %3415 = vmatprep.subr.bf16.mxu0 %v5195_v16  ;;  %v1610_v15 = vsub.s32 2, %v5822_v6  ;;  %v1622_v16 = vsub.s32 5, %v5822_v6 }
 0x574   : > { %3252 = vmatpush1.bf16.msra.mxu1 %v5190_v17  ;;  %3416 = vmatpush1.bf16.msra.mxu0 %v5193_v18  ;;  %v5268_v17 = vld [vmem:[%s7534_s17 + $0x3e0] ss:$16 sps:$4 sm:$0xff]   ;;  %v5271_v18 = vld [vmem:[%s7534_s17 + $0x3e8] ss:$16 sps:$4 sm:$0xff]  }
 0x575   : > { %3253 = vmatprep.subr.bf16.mxu1 %v5198_v19  ;;  %3417 = vmatprep.subr.bf16.mxu0 %v5201_v20  ;;  %v1611_v19 = vrot.slane %v6340_v60, %v1610_v15  ;;  %v5276_v20 = vld [vmem:[%s7534_s17 + $0x404] ss:$16 sps:$4 sm:$0xff]  }
 0x578   : > { %3254 = vmatpush1.bf16.msra.mxu1 %v5196_v21  ;;  %3418 = vmatpush1.bf16.msra.mxu0 %v5199_v22  ;;  %v5279_v21 = vld [vmem:[%s7534_s17 + $0x40c] ss:$16 sps:$4 sm:$0xff]   ;;  %v1623_v22 = vrot.slane %v6340_v60, %v1622_v16  ;;  %v5340_v16 = vld [vmem:[%s7534_s17 + $0x560] ss:$16 sps:$4 sm:$0xff]  }
 0x579   : > { %3255 = vmatprep.subr.bf16.mxu1 %v5204_v57  ;;  %3419 = vmatprep.subr.bf16.mxu0 %v5207_v56  ;;  %v5274_v57 = vld [vmem:[%s7534_s17 + $0x400] ss:$16 sps:$4 sm:$0xff]   ;;  %v1642_v56 = vpack.c.bf16 %v1611_v19, %v1611_v19  ;;  %v5351_v19 = vld [vmem:[%s7534_s17 + $0x58c] ss:$16 sps:$4 sm:$0xff]  }
 0x57c   : > { %3256 = vmatpush1.bf16.msra.mxu1 %v5202_v23  ;;  %3420 = vmatpush1.bf16.msra.mxu0 %v5205_v24  ;;  %v5277_v23 = vld [vmem:[%s7534_s17 + $0x408] ss:$16 sps:$4 sm:$0xff]   ;;  %v1645_v24 = vpack.c.bf16 %v1623_v22, %v1623_v22  ;;  %v5354_v22 = vld [vmem:[%s7534_s17 + $0x5a4] ss:$16 sps:$4 sm:$0xff]  }
 0x57d   : > { %3257 = vmatprep.subr.bf16.mxu1 %v5210_v25  ;;  %3421 = vmatprep.subr.bf16.mxu0 %v5213_v26  ;;  %v5282_v25 = vld [vmem:[%s7534_s17 + $0x424] ss:$16 sps:$4 sm:$0xff]   ;;  %v5285_v26 = vld [vmem:[%s7534_s17 + $0x42c] ss:$16 sps:$4 sm:$0xff]  }
 0x580   : > { %3258 = vmatpush1.bf16.msra.mxu1 %v5208_v27  ;;  %3422 = vmatpush1.bf16.msra.mxu0 %v5211_v28  ;;  %v5280_v27 = vld [vmem:[%s7534_s17 + $0x420] ss:$16 sps:$4 sm:$0xff]   ;;  %v5283_v28 = vld [vmem:[%s7534_s17 + $0x428] ss:$16 sps:$4 sm:$0xff]  }
 0x581   : > { %3259 = vmatprep.subr.bf16.mxu1 %v5216_v29  ;;  %3423 = vmatprep.subr.bf16.mxu0 %v5219_v30  ;;  %v5288_v29 = vld [vmem:[%s7534_s17 + $0x444] ss:$16 sps:$4 sm:$0xff]   ;;  %v5291_v30 = vld [vmem:[%s7534_s17 + $0x44c] ss:$16 sps:$4 sm:$0xff]  }
 0x584   : > { %3260 = vmatpush1.bf16.msra.mxu1 %v5214_v31  ;;  %3424 = vmatpush1.bf16.msra.mxu0 %v5217_v32  ;;  %v5286_v31 = vld [vmem:[%s7534_s17 + $0x440] ss:$16 sps:$4 sm:$0xff]   ;;  %v5289_v32 = vld [vmem:[%s7534_s17 + $0x448] ss:$16 sps:$4 sm:$0xff]  }
 0x585   : > { %3261 = vmatprep.subr.bf16.mxu1 %v5222_v33  ;;  %3425 = vmatprep.subr.bf16.mxu0 %v5225_v34  ;;  %v5294_v33 = vld [vmem:[%s7534_s17 + $0x464] ss:$16 sps:$4 sm:$0xff]   ;;  %v5297_v34 = vld [vmem:[%s7534_s17 + $0x46c] ss:$16 sps:$4 sm:$0xff]  }
 0x588   : > { %3262 = vmatpush1.bf16.msra.mxu1 %v5220_v35  ;;  %3426 = vmatpush1.bf16.msra.mxu0 %v5223_v36  ;;  %v5292_v35 = vld [vmem:[%s7534_s17 + $0x460] ss:$16 sps:$4 sm:$0xff]   ;;  %v5295_v36 = vld [vmem:[%s7534_s17 + $0x468] ss:$16 sps:$4 sm:$0xff]  }
 0x589   : > { %3263 = vmatprep.subr.bf16.mxu1 %v5228_v37  ;;  %3427 = vmatprep.subr.bf16.mxu0 %v5231_v38  ;;  %v5300_v37 = vld [vmem:[%s7534_s17 + $0x484] ss:$16 sps:$4 sm:$0xff]   ;;  %v5303_v38 = vld [vmem:[%s7534_s17 + $0x48c] ss:$16 sps:$4 sm:$0xff]  }
 0x58c   : > { %3264 = vmatpush1.bf16.msra.mxu1 %v5226_v39  ;;  %3428 = vmatpush1.bf16.msra.mxu0 %v5229_v40  ;;  %v5298_v39 = vld [vmem:[%s7534_s17 + $0x480] ss:$16 sps:$4 sm:$0xff]   ;;  %v5301_v40 = vld [vmem:[%s7534_s17 + $0x488] ss:$16 sps:$4 sm:$0xff]  }
 0x58d   : > { %3265 = vmatprep.subr.bf16.mxu1 %v5234_v41  ;;  %3429 = vmatprep.subr.bf16.mxu0 %v5237_v42  ;;  %v5306_v41 = vld [vmem:[%s7534_s17 + $0x4a4] ss:$16 sps:$4 sm:$0xff]   ;;  %v5309_v42 = vld [vmem:[%s7534_s17 + $0x4ac] ss:$16 sps:$4 sm:$0xff]  }
 0x590   : > { %3266 = vmatpush1.bf16.msra.mxu1 %v5232_v43  ;;  %3430 = vmatpush1.bf16.msra.mxu0 %v5235_v44  ;;  %v5304_v43 = vld [vmem:[%s7534_s17 + $0x4a0] ss:$16 sps:$4 sm:$0xff]   ;;  %v5307_v44 = vld [vmem:[%s7534_s17 + $0x4a8] ss:$16 sps:$4 sm:$0xff]  }
 0x591   : > { %3267 = vmatprep.subr.bf16.mxu1 %v5240_v45  ;;  %3431 = vmatprep.subr.bf16.mxu0 %v5243_v47  ;;  %v5312_v45 = vld [vmem:[%s7534_s17 + $0x4c4] ss:$16 sps:$4 sm:$0xff]   ;;  %v5315_v47 = vld [vmem:[%s7534_s17 + $0x4cc] ss:$16 sps:$4 sm:$0xff]  }
 0x594   : > { %3268 = vmatpush1.bf16.msra.mxu1 %v5238_v48  ;;  %3432 = vmatpush1.bf16.msra.mxu0 %v5241_v49  ;;  %v5310_v48 = vld [vmem:[%s7534_s17 + $0x4c0] ss:$16 sps:$4 sm:$0xff]   ;;  %v5313_v49 = vld [vmem:[%s7534_s17 + $0x4c8] ss:$16 sps:$4 sm:$0xff]  }
 0x595   : > { %3269 = vmatprep.subr.bf16.mxu1 %v5246_v50  ;;  %3433 = vmatprep.subr.bf16.mxu0 %v5249_v51  ;;  %v5318_v50 = vld [vmem:[%s7534_s17 + $0x4e4] ss:$16 sps:$4 sm:$0xff]   ;;  %v5321_v51 = vld [vmem:[%s7534_s17 + $0x4ec] ss:$16 sps:$4 sm:$0xff]  }
 0x598   : > { %3270 = vmatpush1.bf16.msra.mxu1 %v5244_v5  ;;  %3434 = vmatpush1.bf16.msra.mxu0 %v5247_v52  ;;  %v5316_v5 = vld [vmem:[%s7534_s17 + $0x4e0] ss:$16 sps:$4 sm:$0xff]   ;;  %v5319_v52 = vld [vmem:[%s7534_s17 + $0x4e8] ss:$16 sps:$4 sm:$0xff]  }
 0x599   : > { %3271 = vmatprep.subr.bf16.mxu1 %v5252_v54  ;;  %3435 = vmatprep.subr.bf16.mxu0 %v5255_v58  ;;  %v5324_v54 = vld [vmem:[%s7534_s17 + $0x504] ss:$16 sps:$4 sm:$0xff]   ;;  %v5327_v58 = vld [vmem:[%s7534_s17 + $0x50c] ss:$16 sps:$4 sm:$0xff]  }
 0x59c   : > { %3272 = vmatpush1.bf16.msra.mxu1 %v5250_v61  ;;  %3436 = vmatpush1.bf16.msra.mxu0 %v5253_v62  ;;  %v5322_v61 = vld [vmem:[%s7534_s17 + $0x500] ss:$16 sps:$4 sm:$0xff]   ;;  %v5325_v62 = vld [vmem:[%s7534_s17 + $0x508] ss:$16 sps:$4 sm:$0xff]  }
 0x59d   : > { %3273 = vmatprep.subr.bf16.mxu1 %v5258_v63  ;;  %3437 = vmatprep.subr.bf16.mxu0 %v5261_v3  ;;  %v5330_v63 = vld [vmem:[%s7534_s17 + $0x524] ss:$16 sps:$4 sm:$0xff]   ;;  %v5333_v3 = vld [vmem:[%s7534_s17 + $0x52c] ss:$16 sps:$4 sm:$0xff]  }
 0x5a0   : > { %3274 = vmatpush1.bf16.msra.mxu1 %v5256_v4  ;;  %3438 = vmatpush1.bf16.msra.mxu0 %v5259_v10  ;;  %v5328_v4 = vld [vmem:[%s7534_s17 + $0x520] ss:$16 sps:$4 sm:$0xff]   ;;  %v5331_v10 = vld [vmem:[%s7534_s17 + $0x528] ss:$16 sps:$4 sm:$0xff]  }
 0x5a1   : > { %3275 = vmatprep.subr.bf16.mxu1 %v5264_v11  ;;  %3439 = vmatprep.subr.bf16.mxu0 %v5267_v12  ;;  %v5336_v11 = vld [vmem:[%s7534_s17 + $0x544] ss:$16 sps:$4 sm:$0xff]   ;;  %v5339_v12 = vld [vmem:[%s7534_s17 + $0x54c] ss:$16 sps:$4 sm:$0xff]  }
 0x5a4   : > { %3276 = vmatpush1.bf16.msra.mxu1 %v5262_v13  ;;  %3440 = vmatpush1.bf16.msra.mxu0 %v5265_v1  ;;  %v5334_v13 = vld [vmem:[%s7534_s17 + $0x540] ss:$16 sps:$4 sm:$0xff]   ;;  %v5337_v1 = vld [vmem:[%s7534_s17 + $0x548] ss:$16 sps:$4 sm:$0xff]  }
 0x5a5   : > { %3277 = vmatprep.subr.bf16.mxu1 %v5270_v0  ;;  %3441 = vmatprep.subr.bf16.mxu0 %v5273_v14  ;;  %v5342_v0 = vld [vmem:[%s7534_s17 + $0x564] ss:$16 sps:$4 sm:$0xff]   ;;  %v5345_v14 = vld [vmem:[%s7534_s17 + $0x56c] ss:$16 sps:$4 sm:$0xff]  }
 0x5a8   : > { %3278 = vmatpush1.bf16.msra.mxu1 %v5268_v17  ;;  %3442 = vmatpush1.bf16.msra.mxu0 %v5271_v18  ;;  %v5343_v17 = vld [vmem:[%s7534_s17 + $0x568] ss:$16 sps:$4 sm:$0xff]   ;;  %v5348_v18 = vld [vmem:[%s7534_s17 + $0x584] ss:$16 sps:$4 sm:$0xff]  }
 0x5a9   : > { %3288 = vmatprep.subr.bf16.mxu1 %v5276_v20  ;;  %3452 = vmatprep.subr.bf16.mxu0 %v5279_v21  ;;  %v5346_v20 = vld [vmem:[%s7534_s17 + $0x580] ss:$16 sps:$4 sm:$0xff]   ;;  %v5349_v21 = vld [vmem:[%s7534_s17 + $0x588] ss:$16 sps:$4 sm:$0xff]  }
 0x5ab   : > { %3280 = vmatmul.mubr.bf16.vlgmr.msra.gmra.mrb[4].mxu1 %v1642_v56  ;;  %3444 = vmatmul.mubr.bf16.vlgmr.msra.gmra.mrb[8].mxu0 %v1642_v56  ;;  %v5352_v56 = vld [vmem:[%s7534_s17 + $0x5a0] ss:$16 sps:$4 sm:$0xff]  }
 0x5ac   : > { %3289 = vmatpush1.bf16.msra.mxu1 %v5274_v57  ;;  %3320 = vmatprep.mubr.bf16.mxu1 %v1645_v24  ;;  %v5357_v57 = vld [vmem:[%s7534_s17 + $0x5ac] ss:$16 sps:$4 sm:$0xff]  }
 0x5ad   : > { %3453 = vmatpush1.bf16.msra.mxu0 %v5277_v23  ;;  %3484 = vmatprep.mubr.bf16.mxu0 %v1645_v24  ;;  %v5355_v23 = vld [vmem:[%s7534_s17 + $0x5a8] ss:$16 sps:$4 sm:$0xff]   ;;  %v5360_v24 = vld [vmem:[%s7534_s17 + $0x5c4] ss:$16 sps:$4 sm:$0xff]  }
 0x5ae   : > { %3290 = vmatprep.subr.bf16.mxu1 %v5282_v25  ;;  %3454 = vmatprep.subr.bf16.mxu0 %v5285_v26  ;;  %v5363_v25 = vld [vmem:[%s7534_s17 + $0x5cc] ss:$16 sps:$4 sm:$0xff]   ;;  %v5358_v26 = vld [vmem:[%s7534_s17 + $0x5c0] ss:$16 sps:$4 sm:$0xff]  }
 0x5b0   : > { %3291 = vmatpush1.bf16.msra.mxu1 %v5280_v27  ;;  %v5361_v27 = vld [vmem:[%s7534_s17 + $0x5c8] ss:$16 sps:$4 sm:$0xff]  }
 0x5b1   : > { %3455 = vmatpush1.bf16.msra.mxu0 %v5283_v28  ;;  %3292 = vmatprep.subr.bf16.mxu1 %v5288_v29  ;;  %v5366_v28 = vld [vmem:[%s7534_s17 + $0x5e4] ss:$16 sps:$4 sm:$0xff]   ;;  %v1618_v29 = vsub.s32 4, %v5822_v6 }
 0x5b2   : > { %3456 = vmatprep.subr.bf16.mxu0 %v5291_v30  ;;  %v5369_v30 = vld [vmem:[%s7534_s17 + $0x5ec] ss:$16 sps:$4 sm:$0xff]  }
 0x5b4   : > { %3293 = vmatpush1.bf16.msra.mxu1 %v5286_v31  ;;  %v1630_v31 = vsub.s32 7, %v5822_v6 }
 0x5b5   : > { %3457 = vmatpush1.bf16.msra.mxu0 %v5289_v32  ;;  %3294 = vmatprep.subr.bf16.mxu1 %v5294_v33  ;;  %v5364_v32 = vld [vmem:[%s7534_s17 + $0x5e0] ss:$16 sps:$4 sm:$0xff]   ;;  %v5367_v33 = vld [vmem:[%s7534_s17 + $0x5e8] ss:$16 sps:$4 sm:$0xff]  }
 0x5b6   : > { %3458 = vmatprep.subr.bf16.mxu0 %v5297_v34  ;;  %v1619_v34 = vrot.slane %v6340_v60, %v1618_v29  ;;  %v5438_v29 = vld [vmem:[%s7534_s17 + $0x764] ss:$16 sps:$4 sm:$0xff]  }
 0x5b8   : > { %3295 = vmatpush1.bf16.msra.mxu1 %v5292_v35  ;;  %v5372_v35 = vld [vmem:[%s7534_s17 + $0x604] ss:$16 sps:$4 sm:$0xff]  }
 0x5b9   : > { %3459 = vmatpush1.bf16.msra.mxu0 %v5295_v36  ;;  %3296 = vmatprep.subr.bf16.mxu1 %v5300_v37  ;;  %v5375_v36 = vld [vmem:[%s7534_s17 + $0x60c] ss:$16 sps:$4 sm:$0xff]   ;;  %v1631_v37 = vrot.slane %v6340_v60, %v1630_v31  ;;  %v5436_v31 = vld [vmem:[%s7534_s17 + $0x760] ss:$16 sps:$4 sm:$0xff]  }
 0x5ba   : > { %3460 = vmatprep.subr.bf16.mxu0 %v5303_v38  ;;  %v5370_v38 = vld [vmem:[%s7534_s17 + $0x600] ss:$16 sps:$4 sm:$0xff]  }
 0x5bc   : > { %3297 = vmatpush1.bf16.msra.mxu1 %v5298_v39  ;;  %v1644_v39 = vpack.c.bf16 %v1619_v34, %v1619_v34  ;;  %v5447_v34 = vld [vmem:[%s7534_s17 + $0x78c] ss:$16 sps:$4 sm:$0xff]  }
 0x5bd   : > { %3461 = vmatpush1.bf16.msra.mxu0 %v5301_v40  ;;  %3298 = vmatprep.subr.bf16.mxu1 %v5306_v41  ;;  %v5373_v40 = vld [vmem:[%s7534_s17 + $0x608] ss:$16 sps:$4 sm:$0xff]   ;;  %v5378_v41 = vld [vmem:[%s7534_s17 + $0x624] ss:$16 sps:$4 sm:$0xff]  }
 0x5be   : > { %3462 = vmatprep.subr.bf16.mxu0 %v5309_v42  ;;  %v1647_v42 = vpack.c.bf16 %v1631_v37, %v1631_v37  ;;  %v5450_v37 = vld [vmem:[%s7534_s17 + $0x7a4] ss:$16 sps:$4 sm:$0xff]  }
 0x5c0   : > { %3299 = vmatpush1.bf16.msra.mxu1 %v5304_v43  ;;  %v5381_v43 = vld [vmem:[%s7534_s17 + $0x62c] ss:$16 sps:$4 sm:$0xff]  }
 0x5c1   : > { %3463 = vmatpush1.bf16.msra.mxu0 %v5307_v44  ;;  %3300 = vmatprep.subr.bf16.mxu1 %v5312_v45  ;;  %v5376_v44 = vld [vmem:[%s7534_s17 + $0x620] ss:$16 sps:$4 sm:$0xff]   ;;  %v5379_v45 = vld [vmem:[%s7534_s17 + $0x628] ss:$16 sps:$4 sm:$0xff]  }
 0x5c2   : > { %3464 = vmatprep.subr.bf16.mxu0 %v5315_v47  ;;  %v5384_v47 = vld [vmem:[%s7534_s17 + $0x644] ss:$16 sps:$4 sm:$0xff]  }
 0x5c4   : > { %3301 = vmatpush1.bf16.msra.mxu1 %v5310_v48  ;;  %v5387_v48 = vld [vmem:[%s7534_s17 + $0x64c] ss:$16 sps:$4 sm:$0xff]  }
 0x5c5   : > { %3465 = vmatpush1.bf16.msra.mxu0 %v5313_v49  ;;  %3302 = vmatprep.subr.bf16.mxu1 %v5318_v50  ;;  %v5382_v49 = vld [vmem:[%s7534_s17 + $0x640] ss:$16 sps:$4 sm:$0xff]   ;;  %v5385_v50 = vld [vmem:[%s7534_s17 + $0x648] ss:$16 sps:$4 sm:$0xff]  }
 0x5c6   : > { %3466 = vmatprep.subr.bf16.mxu0 %v5321_v51  ;;  %v5390_v51 = vld [vmem:[%s7534_s17 + $0x664] ss:$16 sps:$4 sm:$0xff]  }
 0x5c8   : > { %3303 = vmatpush1.bf16.msra.mxu1 %v5316_v5  ;;  %v5393_v5 = vld [vmem:[%s7534_s17 + $0x66c] ss:$16 sps:$4 sm:$0xff]  }
 0x5c9   : > { %3467 = vmatpush1.bf16.msra.mxu0 %v5319_v52  ;;  %3304 = vmatprep.subr.bf16.mxu1 %v5324_v54  ;;  %v5388_v52 = vld [vmem:[%s7534_s17 + $0x660] ss:$16 sps:$4 sm:$0xff]   ;;  %v5391_v54 = vld [vmem:[%s7534_s17 + $0x668] ss:$16 sps:$4 sm:$0xff]  }
 0x5ca   : > { %3468 = vmatprep.subr.bf16.mxu0 %v5327_v58  ;;  %v5396_v58 = vld [vmem:[%s7534_s17 + $0x684] ss:$16 sps:$4 sm:$0xff]  }
 0x5cc   : > { %3305 = vmatpush1.bf16.msra.mxu1 %v5322_v61  ;;  %v5399_v61 = vld [vmem:[%s7534_s17 + $0x68c] ss:$16 sps:$4 sm:$0xff]  }
 0x5cd   : > { %3469 = vmatpush1.bf16.msra.mxu0 %v5325_v62  ;;  %3306 = vmatprep.subr.bf16.mxu1 %v5330_v63  ;;  %v5394_v62 = vld [vmem:[%s7534_s17 + $0x680] ss:$16 sps:$4 sm:$0xff]   ;;  %v5397_v63 = vld [vmem:[%s7534_s17 + $0x688] ss:$16 sps:$4 sm:$0xff]  }
 0x5ce   : > { %3470 = vmatprep.subr.bf16.mxu0 %v5333_v3  ;;  %v5402_v3 = vld [vmem:[%s7534_s17 + $0x6a4] ss:$16 sps:$4 sm:$0xff]  }
 0x5d0   : > { %3307 = vmatpush1.bf16.msra.mxu1 %v5328_v4  ;;  %v5405_v4 = vld [vmem:[%s7534_s17 + $0x6ac] ss:$16 sps:$4 sm:$0xff]  }
 0x5d1   : > { %3471 = vmatpush1.bf16.msra.mxu0 %v5331_v10  ;;  %3308 = vmatprep.subr.bf16.mxu1 %v5336_v11  ;;  %v5400_v10 = vld [vmem:[%s7534_s17 + $0x6a0] ss:$16 sps:$4 sm:$0xff]   ;;  %v5403_v11 = vld [vmem:[%s7534_s17 + $0x6a8] ss:$16 sps:$4 sm:$0xff]  }
 0x5d2   : > { %3472 = vmatprep.subr.bf16.mxu0 %v5339_v12  ;;  %v5408_v12 = vld [vmem:[%s7534_s17 + $0x6c4] ss:$16 sps:$4 sm:$0xff]  }
 0x5d4   : > { %3309 = vmatpush1.bf16.msra.mxu1 %v5334_v13  ;;  %v5411_v13 = vld [vmem:[%s7534_s17 + $0x6cc] ss:$16 sps:$4 sm:$0xff]  }
 0x5d5   : > { %3473 = vmatpush1.bf16.msra.mxu0 %v5337_v1  ;;  %3310 = vmatprep.subr.bf16.mxu1 %v5342_v0  ;;  %v5406_v1 = vld [vmem:[%s7534_s17 + $0x6c0] ss:$16 sps:$4 sm:$0xff]   ;;  %v5409_v0 = vld [vmem:[%s7534_s17 + $0x6c8] ss:$16 sps:$4 sm:$0xff]  }
 0x5d6   : > { %3474 = vmatprep.subr.bf16.mxu0 %v5345_v14  ;;  %v5414_v14 = vld [vmem:[%s7534_s17 + $0x6e4] ss:$16 sps:$4 sm:$0xff]  }
 0x5d8   : > { %3311 = vmatpush1.bf16.msra.mxu1 %v5340_v16  ;;  %v5417_v16 = vld [vmem:[%s7534_s17 + $0x6ec] ss:$16 sps:$4 sm:$0xff]  }
 0x5d9   : > { %3475 = vmatpush1.bf16.msra.mxu0 %v5343_v17  ;;  %3312 = vmatprep.subr.bf16.mxu1 %v5348_v18  ;;  %v5412_v17 = vld [vmem:[%s7534_s17 + $0x6e0] ss:$16 sps:$4 sm:$0xff]   ;;  %v5415_v18 = vld [vmem:[%s7534_s17 + $0x6e8] ss:$16 sps:$4 sm:$0xff]  }
 0x5da   : > { %3476 = vmatprep.subr.bf16.mxu0 %v5351_v19  ;;  %v5420_v19 = vld [vmem:[%s7534_s17 + $0x704] ss:$16 sps:$4 sm:$0xff]  }
 0x5dc   : > { %3313 = vmatpush1.bf16.msra.mxu1 %v5346_v20  ;;  %v5423_v20 = vld [vmem:[%s7534_s17 + $0x70c] ss:$16 sps:$4 sm:$0xff]  }
 0x5dd   : > { %3477 = vmatpush1.bf16.msra.mxu0 %v5349_v21  ;;  %3314 = vmatprep.subr.bf16.mxu1 %v5354_v22  ;;  %v5418_v21 = vld [vmem:[%s7534_s17 + $0x700] ss:$16 sps:$4 sm:$0xff]   ;;  %v5421_v22 = vld [vmem:[%s7534_s17 + $0x708] ss:$16 sps:$4 sm:$0xff]  }
 0x5de   : > { %3478 = vmatprep.subr.bf16.mxu0 %v5357_v57  ;;  %v5426_v57 = vld [vmem:[%s7534_s17 + $0x724] ss:$16 sps:$4 sm:$0xff]  }
 0x5e0   : > { %3315 = vmatpush1.bf16.msra.mxu1 %v5352_v56  ;;  %v5429_v56 = vld [vmem:[%s7534_s17 + $0x72c] ss:$16 sps:$4 sm:$0xff]  }
 0x5e1   : > { %3479 = vmatpush1.bf16.msra.mxu0 %v5355_v23  ;;  %3316 = vmatprep.subr.bf16.mxu1 %v5360_v24  ;;  %v5424_v23 = vld [vmem:[%s7534_s17 + $0x720] ss:$16 sps:$4 sm:$0xff]   ;;  %v5427_v24 = vld [vmem:[%s7534_s17 + $0x728] ss:$16 sps:$4 sm:$0xff]  }
 0x5e2   : > { %3480 = vmatprep.subr.bf16.mxu0 %v5363_v25  ;;  %v5432_v25 = vld [vmem:[%s7534_s17 + $0x744] ss:$16 sps:$4 sm:$0xff]  }
 0x5e4   : > { %3317 = vmatpush1.bf16.msra.mxu1 %v5358_v26  ;;  %v5435_v26 = vld [vmem:[%s7534_s17 + $0x74c] ss:$16 sps:$4 sm:$0xff]  }
 0x5e5   : > { %3481 = vmatpush1.bf16.msra.mxu0 %v5361_v27  ;;  %3318 = vmatprep.subr.bf16.mxu1 %v5366_v28  ;;  %v5430_v27 = vld [vmem:[%s7534_s17 + $0x740] ss:$16 sps:$4 sm:$0xff]   ;;  %v5433_v28 = vld [vmem:[%s7534_s17 + $0x748] ss:$16 sps:$4 sm:$0xff]  }
 0x5e6   : > { %3482 = vmatprep.subr.bf16.mxu0 %v5369_v30  ;;  %v5441_v30 = vld [vmem:[%s7534_s17 + $0x76c] ss:$16 sps:$4 sm:$0xff]  }
 0x5e8   : > { %3319 = vmatpush1.bf16.msra.mxu1 %v5364_v32  ;;  %v5439_v32 = vld [vmem:[%s7534_s17 + $0x768] ss:$16 sps:$4 sm:$0xff]  }
 0x5e9   : > { %3483 = vmatpush1.bf16.msra.mxu0 %v5367_v33  ;;  %3329 = vmatprep.subr.bf16.mxu1 %v5372_v35  ;;  %v5444_v33 = vld [vmem:[%s7534_s17 + $0x784] ss:$16 sps:$4 sm:$0xff]   ;;  %v5442_v35 = vld [vmem:[%s7534_s17 + $0x780] ss:$16 sps:$4 sm:$0xff]  }
 0x5ea   : > { %3493 = vmatprep.subr.bf16.mxu0 %v5375_v36  ;;  %v5445_v36 = vld [vmem:[%s7534_s17 + $0x788] ss:$16 sps:$4 sm:$0xff]  }
 0x5eb   : > { %3321 = vmatmul.mubr.bf16.vlgmr.msra.gmra.mrb[4].mxu1 %v1644_v39 }
 0x5ec   : > { %3485 = vmatmul.mubr.bf16.vlgmr.msra.gmra.mrb[8].mxu0 %v1644_v39  ;;  %3330 = vmatpush1.bf16.msra.mxu1 %v5370_v38  ;;  %v5453_v38 = vld [vmem:[%s7534_s17 + $0x7ac] ss:$16 sps:$4 sm:$0xff]   ;;  %v5448_v39 = vld [vmem:[%s7534_s17 + $0x7a0] ss:$16 sps:$4 sm:$0xff]  }
 0x5ed   : > { %3361 = vmatprep.mubr.bf16.mxu1 %v1647_v42  ;;  %3494 = vmatpush1.bf16.msra.mxu0 %v5373_v40  ;;  %v5451_v40 = vld [vmem:[%s7534_s17 + $0x7a8] ss:$16 sps:$4 sm:$0xff]  }
 0x5ee   : > { %3525 = vmatprep.mubr.bf16.mxu0 %v1647_v42  ;;  %3331 = vmatprep.subr.bf16.mxu1 %v5378_v41  ;;  %v5456_v41 = vld [vmem:[%s7534_s17 + $0x7c4] ss:$16 sps:$4 sm:$0xff]   ;;  %v5459_v42 = vld [vmem:[%s7534_s17 + $0x7cc] ss:$16 sps:$4 sm:$0xff]  }
 0x5ef   : > { %3495 = vmatprep.subr.bf16.mxu0 %v5381_v43  ;;  %v5454_v43 = vld [vmem:[%s7534_s17 + $0x7c0] ss:$16 sps:$4 sm:$0xff]  }
 0x5f0   : > { %3332 = vmatpush1.bf16.msra.mxu1 %v5376_v44  ;;  %v5457_v44 = vld [vmem:[%s7534_s17 + $0x7c8] ss:$16 sps:$4 sm:$0xff]  }
 0x5f1   : > { %3496 = vmatpush1.bf16.msra.mxu0 %v5379_v45  ;;  %3333 = vmatprep.subr.bf16.mxu1 %v5384_v47  ;;  %v5462_v45 = vld [vmem:[%s7534_s17 + $0x7e4] ss:$16 sps:$4 sm:$0xff]   ;;  %v1626_v47 = vsub.s32 6, %v5822_v6  ;;  %v5498_v6 = vld [vmem:[%s7533_s16] ss:$8 sps:$4 sm:$0xff]  }
 0x5f2   : > { %3497 = vmatprep.subr.bf16.mxu0 %v5387_v48  ;;  %v5465_v48 = vld [vmem:[%s7534_s17 + $0x7ec] ss:$16 sps:$4 sm:$0xff]  }
 0x5f4   : > { %3334 = vmatpush1.bf16.msra.mxu1 %v5382_v49  ;;  %v5460_v49 = vld [vmem:[%s7534_s17 + $0x7e0] ss:$16 sps:$4 sm:$0xff]  }
 0x5f5   : > { %3498 = vmatpush1.bf16.msra.mxu0 %v5385_v50  ;;  %3335 = vmatprep.subr.bf16.mxu1 %v5390_v51  ;;  %v5463_v50 = vld [vmem:[%s7534_s17 + $0x7e8] ss:$16 sps:$4 sm:$0xff]   ;;  %v1627_v51 = vrot.slane %v6340_v60, %v1626_v47  ;;  %v5469_v60 = vld [vmem:[%s7536_s19 + $0x80] sm:$0xff]  }
 0x5f6   : > { %3499 = vmatprep.subr.bf16.mxu0 %v5393_v5  ;;  %v5466_v5 = vld [vmem:[%s7536_s19 + $0x40] sm:$0xff]  }
 0x5f8   : > { %3336 = vmatpush1.bf16.msra.mxu1 %v5388_v52  ;;  %v5468_v52 = vld [vmem:[%s7536_s19 + $0xc0] sm:$0xff]  }
 0x5f9   : > { %3500 = vmatpush1.bf16.msra.mxu0 %v5391_v54  ;;  %3337 = vmatprep.subr.bf16.mxu1 %v5396_v58  ;;  %v5467_v54 = vld [vmem:[%s7536_s19] sm:$0xff]   ;;  %v1646_v58 = vpack.c.bf16 %v1627_v51, %v1627_v51 }
 0x5fa   : > { %3501 = vmatprep.subr.bf16.mxu0 %v5399_v61  ;;  %v5470_v61 = vld [vmem:[%s7536_s19 + $0x48] sm:$0xff]  }
 0x5fc   : > { %3338 = vmatpush1.bf16.msra.mxu1 %v5394_v62  ;;  %v5472_v62 = vld [vmem:[%s7536_s19 + $0xc8] sm:$0xff]  }
 0x5fd   : > { %3502 = vmatpush1.bf16.msra.mxu0 %v5397_v63  ;;  %3339 = vmatprep.subr.bf16.mxu1 %v5402_v3  ;;  %v5471_v63 = vld [vmem:[%s7536_s19 + $0x8] sm:$0xff]  }
 0x5fe   : > { %3503 = vmatprep.subr.bf16.mxu0 %v5405_v4  ;;  %v5473_v3 = vld [vmem:[%s7536_s19 + $0x88] sm:$0xff]   ;;  %v5474_v4 = vld [vmem:[%s7536_s19 + $0x50] sm:$0xff]  }
 0x600   : > { %3340 = vmatpush1.bf16.msra.mxu1 %v5400_v10  ;;  %v5476_v10 = vld [vmem:[%s7536_s19 + $0xd0] sm:$0xff]  }
 0x601   : > { %3504 = vmatpush1.bf16.msra.mxu0 %v5403_v11  ;;  %3341 = vmatprep.subr.bf16.mxu1 %v5408_v12  ;;  %v5475_v11 = vld [vmem:[%s7536_s19 + $0x10] sm:$0xff]  }
 0x602   : > { %3505 = vmatprep.subr.bf16.mxu0 %v5411_v13  ;;  %v5477_v12 = vld [vmem:[%s7536_s19 + $0x90] sm:$0xff]   ;;  %v5478_v13 = vld [vmem:[%s7536_s19 + $0x58] sm:$0xff]  }
 0x604   : > { %3342 = vmatpush1.bf16.msra.mxu1 %v5406_v1  ;;  %v5480_v1 = vld [vmem:[%s7536_s19 + $0xd8] sm:$0xff]  }
 0x605   : > { %3506 = vmatpush1.bf16.msra.mxu0 %v5409_v0  ;;  %3343 = vmatprep.subr.bf16.mxu1 %v5414_v14  ;;  %v5479_v0 = vld [vmem:[%s7536_s19 + $0x18] sm:$0xff]  }
 0x606   : > { %3507 = vmatprep.subr.bf16.mxu0 %v5417_v16  ;;  %v5481_v14 = vld [vmem:[%s7536_s19 + $0x98] sm:$0xff]   ;;  %v5482_v16 = vld [vmem:[%s7536_s19 + $0x60] sm:$0xff]  }
 0x608   : > { %3344 = vmatpush1.bf16.msra.mxu1 %v5412_v17  ;;  %v5484_v17 = vld [vmem:[%s7536_s19 + $0xe0] sm:$0xff]  }
 0x609   : > { %3508 = vmatpush1.bf16.msra.mxu0 %v5415_v18  ;;  %3345 = vmatprep.subr.bf16.mxu1 %v5420_v19  ;;  %v5483_v18 = vld [vmem:[%s7536_s19 + $0x20] sm:$0xff]  }
 0x60a   : > { %3509 = vmatprep.subr.bf16.mxu0 %v5423_v20  ;;  %v5485_v19 = vld [vmem:[%s7536_s19 + $0xa0] sm:$0xff]   ;;  %v5486_v20 = vld [vmem:[%s7536_s19 + $0x68] sm:$0xff]  }
 0x60c   : > { %3346 = vmatpush1.bf16.msra.mxu1 %v5418_v21  ;;  %v5488_v21 = vld [vmem:[%s7536_s19 + $0xe8] sm:$0xff]  }
 0x60d   : > { %3510 = vmatpush1.bf16.msra.mxu0 %v5421_v22  ;;  %3347 = vmatprep.subr.bf16.mxu1 %v5426_v57  ;;  %v5487_v22 = vld [vmem:[%s7536_s19 + $0x28] sm:$0xff]  }
 0x60e   : > { %3511 = vmatprep.subr.bf16.mxu0 %v5429_v56  ;;  %v5489_v57 = vld [vmem:[%s7536_s19 + $0xa8] sm:$0xff]   ;;  %v5490_v56 = vld [vmem:[%s7536_s19 + $0x70] sm:$0xff]  }
 0x610   : > { %3348 = vmatpush1.bf16.msra.mxu1 %v5424_v23  ;;  %v5491_v23 = vld [vmem:[%s7536_s19 + $0x30] sm:$0xff]  }
 0x611   : > { %3512 = vmatpush1.bf16.msra.mxu0 %v5427_v24  ;;  %3349 = vmatprep.subr.bf16.mxu1 %v5432_v25  ;;  %v5492_v24 = vld [vmem:[%s7536_s19 + $0xf0] sm:$0xff]  }
 0x612   : > { %3513 = vmatprep.subr.bf16.mxu0 %v5435_v26  ;;  %v5493_v25 = vld [vmem:[%s7536_s19 + $0xb0] sm:$0xff]   ;;  %v5494_v26 = vld [vmem:[%s7536_s19 + $0x78] sm:$0xff]  }
 0x614   : > { %3350 = vmatpush1.bf16.msra.mxu1 %v5430_v27  ;;  %v5495_v27 = vld [vmem:[%s7536_s19 + $0x38] sm:$0xff]  }
 0x615   : > { %3514 = vmatpush1.bf16.msra.mxu0 %v5433_v28  ;;  %3351 = vmatprep.subr.bf16.mxu1 %v5438_v29  ;;  %v5496_v28 = vld [vmem:[%s7536_s19 + $0xf8] sm:$0xff]  }
 0x616   : > { %3515 = vmatprep.subr.bf16.mxu0 %v5441_v30  ;;  %v5497_v29 = vld [vmem:[%s7536_s19 + $0xb8] sm:$0xff]   ;;  %v5500_v30 = vld [vmem:[%s7533_s16 + $0x4] ss:$8 sps:$4 sm:$0xff]  }
 0x618   : > { %3352 = vmatpush1.bf16.msra.mxu1 %v5436_v31  ;;  %v1904_v31 = vld [vmem:[%s7535_s18] sm:$0xf] }
 0x619   : > { %3516 = vmatpush1.bf16.msra.mxu0 %v5439_v32  ;;  %3353 = vmatprep.subr.bf16.mxu1 %v5444_v33  ;;  %v3189_v32 = vrot.slane %v1904_v31, %v5828_v8  ;;  %v3197_v33 = vrot.slane %v1904_v31, %v1610_v15 }
 0x61a   : > { %3517 = vmatprep.subr.bf16.mxu0 %v5447_v34  ;;  %v3193_v34 = vrot.slane %v1904_v31, %v5831_v9 }
 0x61c   : > { %3354 = vmatpush1.bf16.msra.mxu1 %v5442_v35  ;;  %v3201_v35 = vrot.slane %v1904_v31, %v1614_v59 }
 0x61d   : > { %3518 = vmatpush1.bf16.msra.mxu0 %v5445_v36  ;;  %3355 = vmatprep.subr.bf16.mxu1 %v5450_v37 }
 0x61e   : > { %3519 = vmatprep.subr.bf16.mxu0 %v5453_v38 }
 0x620   : > { %3356 = vmatpush1.bf16.msra.mxu1 %v5448_v39 }
 0x621   : > { %3520 = vmatpush1.bf16.msra.mxu0 %v5451_v40  ;;  %3357 = vmatprep.subr.bf16.mxu1 %v5456_v41 }
 0x622   : > { %3521 = vmatprep.subr.bf16.mxu0 %v5459_v42 }
 0x624   : > { %3358 = vmatpush1.bf16.msra.mxu1 %v5454_v43 }
 0x625   : > { %3522 = vmatpush1.bf16.msra.mxu0 %v5457_v44  ;;  %3359 = vmatprep.subr.bf16.mxu1 %v5462_v45 }
 0x626   : > { %3523 = vmatprep.subr.bf16.mxu0 %v5465_v48 }
 0x628   : > { %3360 = vmatpush1.bf16.msra.mxu1 %v5460_v49 }
 0x629   : > { %3524 = vmatpush1.bf16.msra.mxu0 %v5463_v50  ;;  %4933 = vmatprep.subr.bf16.mxu1 %v5466_v5 }
 0x62a   : > { %4955 = vmatprep.subr.bf16.mxu0 %v5468_v52 }
 0x62b   : > { %3362 = vmatmul.mubr.bf16.vlgmr.msra.gmra.mrb[4].mxu1 %v1646_v58 }
 0x62c   : > { %3526 = vmatmul.mubr.bf16.vlgmr.msra.gmra.mrb[8].mxu0 %v1646_v58  ;;  %4934 = vmatpush3.bf16.msra.mxu1 %v5467_v54  ;;  %v5503_v54 = vld [vmem:[%s7533_s16 + $0x14] ss:$8 sps:$4 sm:$0xff]  }
 0x62d   : > { %4956 = vmatpush3.bf16.msra.mxu0 %v5469_v60  ;;  %4935 = vmatprep.subr.bf16.mxu1 %v5470_v61  ;;  %v5501_v60 = vld [vmem:[%s7533_s16 + $0x10] ss:$8 sps:$4 sm:$0xff]   ;;  %v5506_v61 = vld [vmem:[%s7533_s16 + $0x24] ss:$8 sps:$4 sm:$0xff]  }
 0x62e   : > { %4957 = vmatprep.subr.bf16.mxu0 %v5472_v62  ;;  %v5504_v62 = vld [vmem:[%s7533_s16 + $0x20] ss:$8 sps:$4 sm:$0xff]  }
 0x630   : > { %4936 = vmatpush3.bf16.msra.mxu1 %v5471_v63  ;;  %v5509_v63 = vld [vmem:[%s7533_s16 + $0x34] ss:$8 sps:$4 sm:$0xff]  }
 0x631   : > { %4958 = vmatpush3.bf16.msra.mxu0 %v5473_v3  ;;  %4937 = vmatprep.subr.bf16.mxu1 %v5474_v4  ;;  %v5507_v3 = vld [vmem:[%s7533_s16 + $0x30] ss:$8 sps:$4 sm:$0xff]  }
 0x632   : > { %4959 = vmatprep.subr.bf16.mxu0 %v5476_v10  ;;  %v3606_v10 = vld [vmem:[%s7537_s20] sm:$0x1] }
 0x634   : > { %4938 = vmatpush3.bf16.msra.mxu1 %v5475_v11 }
 0x635   : > { %4960 = vmatpush3.bf16.msra.mxu0 %v5477_v12  ;;  %4939 = vmatprep.subr.bf16.mxu1 %v5478_v13 }
 0x636   : > { %4961 = vmatprep.subr.bf16.mxu0 %v5480_v1 }
 0x638   : > { %4940 = vmatpush3.bf16.msra.mxu1 %v5479_v0 }
 0x639   : > { %4962 = vmatpush3.bf16.msra.mxu0 %v5481_v14  ;;  %4941 = vmatprep.subr.bf16.mxu1 %v5482_v16 }
 0x63a   : > { %4963 = vmatprep.subr.bf16.mxu0 %v5484_v17 }
 0x63c   : > { %4942 = vmatpush3.bf16.msra.mxu1 %v5483_v18 }
 0x63d   : > { %4964 = vmatpush3.bf16.msra.mxu0 %v5485_v19  ;;  %4943 = vmatprep.subr.bf16.mxu1 %v5486_v20 }
 0x63e   : > { %4965 = vmatprep.subr.bf16.mxu0 %v5488_v21 }
 0x640   : > { %4944 = vmatpush3.bf16.msra.mxu1 %v5487_v22 }
 0x641   : > { %4966 = vmatpush3.bf16.msra.mxu0 %v5489_v57  ;;  %4945 = vmatprep.subr.bf16.mxu1 %v5490_v56  ;;  %v7146_v57 = vld [vmem:[%s7526_s9] sm:$0xff] }
 0x642   : > { %4967 = vmatprep.subr.bf16.mxu0 %v5492_v24  ;;  %v4900_v56 = vcombine.high %v7146_v57, %v7146_v57  ;;  %v4277_v24 = vld [vmem:[%s7528_s11] sm:$0xff] }
 0x644   : > { %4946 = vmatpush3.bf16.msra.mxu1 %v5491_v23  ;;  %v4269_v23 = vld [vmem:[%s7527_s10] sm:$0xff] }
 0x645   : > { %4968 = vmatpush3.bf16.msra.mxu0 %v5493_v25  ;;  %4947 = vmatprep.subr.bf16.mxu1 %v5494_v26 }
 0x646   : > { %4969 = vmatprep.subr.bf16.mxu0 %v5496_v28 }
 0x648   : > { %4948 = vmatpush3.bf16.msra.mxu1 %v5495_v27 }
 0x649   : > { %4970 = vmatpush3.bf16.msra.mxu0 %v5497_v29  ;;  %3932 = vmatprep.subr.bf16.mxu1 %v5500_v30 }
 0x6fe   : > { %v3363_v36 = vpop.f32.mrb[4].mxu1 }
 0x6ff   : > { %v4977_v37 = vadd.f32 %v3363_v36, %v3189_v32  ;;  %v3527_v38 = vpop.f32.mrb[8].mxu0  ;;  %v3365_v39 = vpop.f32.mrb[5].mxu1 }
 0x700   : > { %v4979_v40 = vadd.f32 %v3527_v38, %v3197_v33  ;;  %v4978_v41 = vadd.f32 %v3365_v39, %v3193_v34  ;;  %v3529_v42 = vpop.f32.mrb[9].mxu0  ;;  %v3367_v43 = vpop.f32.mrb[6].mxu1  ;;  %v3987_v38 = vld [vmem:[%s7587_s27] ss:$8 sm:$0x3] }
 0x701   : > { %v3534_v44 = vmax.f32 %v4977_v37, 0.0  ;;  %v4980_v45 = vadd.f32 %v3529_v42, %v3201_v35  ;;  %v3531_v47 = vpop.f32.mrb[10].mxu0  ;;  %v3368_v48 = vpop.f32.mrb[7].mxu1  ;;  %v4892_v43 = vld [vmem:[%s7587_s27 + $0x1] ss:$8 sm:$0x3] }
 0x702   : > { %v3536_v49 = vmax.f32 %v4979_v40, 0.0  ;;  %v3535_v50 = vmax.f32 %v4978_v41, 0.0  ;;  %v3532_v15 = vpop.f32.mrb[11].mxu0  ;;  %v7182_v40 = vrot.slane %v3987_v38, %v5828_v8  ;;  %v7185_v41 = vrot.slane %v3987_v38, %v5831_v9 }
 0x703   : > { %v3537_v51 = vmax.f32 %v4980_v45, 0.0  ;;  %v3538_v59 = vpack.c.bf16 %v3534_v44, %v3534_v44  ;;  %v7202_v15 = vrot.slane %v4892_v43, %v5831_v9 }
 0x704   : > { %v3539_v5 = vpack.c.bf16 %v3535_v50, %v3535_v50  ;;  %v3540_v58 = vpack.c.bf16 %v3536_v49, %v3536_v49  ;;  %v7199_v50 = vrot.slane %v4892_v43, %v5828_v8 }
 0x705   : > { %v3541_v52 = vpack.c.bf16 %v3537_v51, %v3537_v51 }
 0x706   : > { %3831 = vmatprep.mubr.bf16.mxu1 %v3539_v5 }
 0x707   : > { %3871 = vmatprep.mubr.bf16.mxu0 %v3541_v52  ;;  %3832 = vmatmul.mubr.bf16.vlgmr.msra.gmra.mrb[8].mxu1 %v3538_v59 }
 0x708   : > { %3872 = vmatmul.mubr.bf16.vlgmr.msra.gmra.mrb[12].mxu0 %v3540_v58  ;;  %3933 = vmatpush1.bf16.msra.mxu1 %v5498_v6 }
 0x709   : > { %3934 = vmatprep.subr.bf16.mxu1 %v5503_v54  ;;  %3964 = vmatprep.mubr.bf16.mxu1 %v5590_v2  ;;  %v4893_v54 = vld [vmem:[%s7587_s27 + $0x2] ss:$8 sm:$0x3] }
 0x70a   : > { %4401 = vmatprep.mubr.bf16.mxu0 %v5590_v2 }
 0x70c   : > { %3935 = vmatpush1.bf16.msra.mxu1 %v5501_v60 }
 0x70d   : > { %3936 = vmatprep.subr.bf16.mxu1 %v5506_v61 }
 0x710   : > { %3937 = vmatpush1.bf16.msra.mxu1 %v5504_v62 }
 0x711   : > { %3938 = vmatprep.subr.bf16.mxu1 %v5509_v63 }
 0x714   : > { %3939 = vmatpush1.bf16.msra.mxu1 %v5507_v3 }
 0x717   : > { %4891 = vmatmul.mubr.msk.bf16.vlgmr.msra.gmra.mrb[12].mxu1 %vm1412_vm12, %v3880_v55 }
 0x718   : > { %4901 = vmatprep.mubr.msk.bf16.mxu1 %vm4224_vm11, %v4900_v56 }
 0x7da   : > { %v4949_v2 = vpop.f32.mrb[8].mxu1 }
 0x7db   : > { %v4971_v4 = vpop.f32.mrb[12].mxu0  ;;  %v4950_v11 = vpop.f32.mrb[9].mxu1 }
 0x7dc   : > { %v4951_v12 = vadd.f32 %v4950_v11, %v4949_v2  ;;  %v4972_v13 = vpop.f32.mrb[13].mxu0  ;;  %v4952_v1 = vpop.f32.mrb[10].mxu1 }
 0x7dd   : > { %v4973_v0 = vadd.f32 %v4972_v13, %v4971_v4  ;;  %v4974_v14 = vpop.f32.mrb[14].mxu0  ;;  %v4953_v16 = vpop.f32.mrb[11].mxu1  ;;  %v7220_v4 = vrot.slane %v4893_v54, %v5828_v8 }
 0x7de   : > { %v3834_v17 = vadd.f32 %v4951_v12, %v3606_v10  ;;  %v4975_v18 = vpop.f32.mrb[15].mxu0  ;;  %v7223_v10 = vrot.slane %v4893_v54, %v5831_v9  ;;  %v4894_v14 = vld [vmem:[%s7587_s27 + $0x3] ss:$8 sm:$0x3] }
 0x7e0   : > { %v3874_v46 = vadd.f32 %v4973_v0, %v3834_v17 }
 0x7e2   : > { %3879 = vst [vmem:[%s7072_s0] sm:$0x1] %v3874_v46 }
 0x7ea   : > { %v7075_v53 = vpop.f32.mrb[12].mxu1 }
 0x7eb   : > { %3975 = vrot.lane.b32.xlu1 %v7075_v53, %s7600_s25  ;;  %v7079_v55 = vpop.f32.mrb[13].mxu1 }
 0x7ec   : > { %v7081_v19 = vpop.f32.mrb[14].mxu1 }
 0x7ed   : > { %3977 = vrot.lane.b32.xlu0 %v7081_v19, %s7600_s25  ;;  %v7085_v20 = vpop.f32.mrb[15].mxu1  ;;  %v4207_v21 = vpack.c.bf16 %v7081_v19, %v7075_v53 }
 0x7ee   : > { %v4208_v22 = vpack.c.bf16 %v7085_v20, %v7079_v55 }
 0x7ef   : > { %4003 = vrot.lane.b32.xlu1 %v7075_v53, %s7601_s23 }
 0x7f1   : > { %4005 = vrot.lane.b32.xlu0 %v7081_v19, %s7601_s23 }
 0x7f3   : > { %4031 = vrot.lane.b32.xlu1 %v7075_v53, %s7602_s3 }
 0x7f5   : > { %4033 = vrot.lane.b32.xlu0 %v7081_v19, %s7602_s3 }
 0x7f7   : > { %4059 = vrot.lane.b32.xlu1 %v7075_v53, %s7603_s29 }
 0x7f9   : > { %4061 = vrot.lane.b32.xlu0 %v7081_v19, %s7603_s29 }
 0x7fb   : > { %4087 = vrot.lane.b32.xlu1 %v7075_v53, %s7589_s1 }
 0x7fd   : > { %4089 = vrot.lane.b32.xlu0 %v7081_v19, %s7589_s1 }
 0x7ff   : > { %4115 = vrot.lane.b32.xlu1 %v7075_v53, %s7604_s30 }
 0x801   : > { %4117 = vrot.lane.b32.xlu0 %v7081_v19, %s7604_s30 }
 0x803   : > { %4143 = vrot.lane.b32.xlu1 %v7075_v53, %s7605_s8 }
 0x805   : > { %4145 = vrot.lane.b32.xlu0 %v7081_v19, %s7605_s8 }
 0x807   : > { %3979 = vrot.lane.b32.xlu1 %v7079_v55, %s7600_s25 }
 0x809   : > { %3981 = vrot.lane.b32.xlu0 %v7085_v20, %s7600_s25 }
 0x80b   : > { %4007 = vrot.lane.b32.xlu1 %v7079_v55, %s7601_s23 }
 0x80d   : > { %4009 = vrot.lane.b32.xlu0 %v7085_v20, %s7601_s23 }
 0x80f   : > { %4035 = vrot.lane.b32.xlu1 %v7079_v55, %s7602_s3 }
 0x811   : > { %4037 = vrot.lane.b32.xlu0 %v7085_v20, %s7602_s3 }
 0x813   : > { %4063 = vrot.lane.b32.xlu1 %v7079_v55, %s7603_s29 }
 0x815   : > { %4065 = vrot.lane.b32.xlu0 %v7085_v20, %s7603_s29 }
 0x817   : > { %4171 = vrot.lane.b32.xlu1 %v7075_v53, %s7606_s24 }
 0x819   : > { %4173 = vrot.lane.b32.xlu0 %v7081_v19, %s7606_s24 }
 0x81b   : > { %4091 = vrot.lane.b32.xlu1 %v7079_v55, %s7589_s1 }
 0x81d   : > { %4093 = vrot.lane.b32.xlu0 %v7085_v20, %s7589_s1 }
 0x81f   : > { %4119 = vrot.lane.b32.xlu1 %v7079_v55, %s7604_s30 }
 0x821   : > { %4121 = vrot.lane.b32.xlu0 %v7085_v20, %s7604_s30 }
 0x823   : > { %4147 = vrot.lane.b32.xlu1 %v7079_v55, %s7605_s8 }
 0x825   : > { %4149 = vrot.lane.b32.xlu0 %v7085_v20, %s7605_s8 }
 0x827   : > { %4175 = vrot.lane.b32.xlu1 %v7079_v55, %s7606_s24 }
 0x829   : > { %4177 = vrot.lane.b32.xlu0 %v7085_v20, %s7606_s24 }
 0x82b   : > { %4272 = vperm.xlu1 %5064, %v4269_v23  }
 0x82d   : > { %4280 = vperm.xlu0 %5063, %v4277_v24  }
 0x85d   : > { %v3976_v25 = vpop.permute.xlu1 %3975 }
 0x85f   : > { %v3978_v26 = vpop.permute.xlu0 %3977 }
 0x861   : > { %v4004_v27 = vpop.permute.xlu1 %4003 }
 0x863   : > { %v4006_v28 = vpop.permute.xlu0 %4005 }
 0x865   : > { %v4032_v29 = vpop.permute.xlu1 %4031 }
 0x867   : > { %v4034_v30 = vpop.permute.xlu0 %4033 }
 0x869   : > { %v4060_v31 = vpop.permute.xlu1 %4059 }
 0x86b   : > { %v7164_v32 = vpop.permute.xlu0 %4061 }
 0x86d   : > { %v7166_v33 = vpop.permute.xlu1 %4087 }
 0x86f   : > { %v7168_v34 = vpop.permute.xlu0 %4089 }
 0x871   : > { %v7170_v35 = vpop.permute.xlu1 %4115 }
 0x873   : > { %v7172_v36 = vpop.permute.xlu0 %4117 }
 0x875   : > { %v7174_v37 = vpop.permute.xlu1 %4143 }
 0x877   : > { %v7179_v39 = vpop.permute.xlu0 %4145 }
 0x879   : > { %v3980_v42 = vpop.permute.xlu1 %3979 }
 0x87a   : > { %v3983_v44 = vsel %vm703_vm1, %v3976_v25, %v3980_v42  ;;  %v3985_v45 = vsel %vm703_vm1, %v3980_v42, %v3976_v25  ;;  %v7241_v25 = vrot.slane %v4894_v14, %v5828_v8 }
 0x87b   : > { %v3982_v47 = vpop.permute.xlu0 %3981  ;;  %v3999_v51 = vmul.f32 %v7182_v40, %v3985_v45  ;;  %v4000_v5 = vmul.f32 %v7185_v41, %v3983_v44 }
 0x87c   : > { %v3984_v48 = vsel %vm703_vm1, %v3978_v26, %v3982_v47  ;;  %v3986_v49 = vsel %vm703_vm1, %v3982_v47, %v3978_v26  ;;  %v7244_v26 = vrot.slane %v4894_v14, %v5831_v9 }
 0x87d   : > { %v4001_v6 = vmul.f32 %v7182_v40, %v3986_v49  ;;  %v4002_v59 = vmul.f32 %v7185_v41, %v3984_v48  ;;  %v4008_v52 = vpop.permute.xlu1 %4007 }
 0x87e   : > { %v4011_v58 = vsel %vm724_vm0, %v4004_v27, %v4008_v52  ;;  %v4013_v60 = vsel %vm724_vm0, %v4008_v52, %v4004_v27  ;;  %v4895_v52 = vld [vmem:[%s7587_s27 + $0x5] ss:$8 sm:$0x3] }
 0x87f   : > { %v4199_v61 = vpack.c.bf16 %v4001_v6, %v3999_v51  ;;  %v4010_v62 = vpop.permute.xlu0 %4009  ;;  %v4200_v63 = vpack.c.bf16 %v4002_v59, %v4000_v5  ;;  %v4027_v11 = vmul.f32 %v7199_v50, %v4013_v60  ;;  %v4028_v12 = vmul.f32 %v7202_v15, %v4011_v58 }
 0x880   : > { %v4012_v3 = vsel %vm724_vm0, %v4006_v28, %v4010_v62  ;;  %v4014_v2 = vsel %vm724_vm0, %v4010_v62, %v4006_v28 }
 0x881   : > { %v4029_v13 = vmul.f32 %v7199_v50, %v4014_v2  ;;  %v4030_v1 = vmul.f32 %v7202_v15, %v4012_v3  ;;  %v4036_v0 = vpop.permute.xlu1 %4035  ;;  %4228 = vmatprep.subr.bf16.mxu1 %v4200_v63  ;;  %v4896_v63 = vld [vmem:[%s7587_s27 + $0x6] ss:$8 sm:$0x3] }
 0x882   : > { %v4039_v16 = vsel %vm746_vm2, %v4032_v29, %v4036_v0  ;;  %v4041_v17 = vsel %vm746_vm2, %v4036_v0, %v4032_v29  ;;  %4229 = vmatpush1.bf16.msra.mxu1 %v4199_v61  ;;  %v7273_v61 = vrot.slane %v4895_v52, %v5831_v9  ;;  %v7297_v0 = vrot.slane %v4896_v63, %v5831_v9 }
 0x883   : > { %v4201_v18 = vpack.c.bf16 %v4029_v13, %v4027_v11  ;;  %v4038_v46 = vpop.permute.xlu0 %4037  ;;  %v4202_v56 = vpack.c.bf16 %v4030_v1, %v4028_v12  ;;  %v4055_v27 = vmul.f32 %v7220_v4, %v4041_v17  ;;  %v4056_v28 = vmul.f32 %v7223_v10, %v4039_v16  ;;  %v4897_v16 = vld [vmem:[%s7587_s27 + $0x7] ss:$8 sm:$0x3] }
 0x884   : > { %v4040_v23 = vsel %vm746_vm2, %v4034_v30, %v4038_v46  ;;  %v4042_v24 = vsel %vm746_vm2, %v4038_v46, %v4034_v30  ;;  %v7294_v1 = vrot.slane %v4896_v63, %v5828_v8 }
 0x885   : > { %v4057_v29 = vmul.f32 %v7220_v4, %v4042_v24  ;;  %v4058_v38 = vmul.f32 %v7223_v10, %v4040_v23  ;;  %v4064_v42 = vpop.permute.xlu1 %4063  ;;  %4230 = vmatprep.subr.bf16.mxu1 %v4202_v56 }
 0x886   : > { %v4067_v43 = vsel %vm768_vm3, %v4060_v31, %v4064_v42  ;;  %v4069_v30 = vsel %vm768_vm3, %v4064_v42, %v4060_v31  ;;  %4231 = vmatpush1.bf16.msra.mxu1 %v4201_v18 }
 0x887   : > { %v4203_v44 = vpack.c.bf16 %v4057_v29, %v4055_v27  ;;  %v4066_v45 = vpop.permute.xlu0 %4065  ;;  %v4204_v47 = vpack.c.bf16 %v4058_v38, %v4056_v28  ;;  %v4083_v51 = vmul.f32 %v7241_v25, %v4069_v30  ;;  %v4084_v5 = vmul.f32 %v7244_v26, %v4067_v43 }
 0x888   : > { %v4068_v48 = vsel %vm768_vm3, %v7164_v32, %v4066_v45  ;;  %v4070_v49 = vsel %vm768_vm3, %v4066_v45, %v7164_v32  ;;  %v7270_v32 = vrot.slane %v4895_v52, %v5828_v8  ;;  %v7322_v27 = vrot.slane %v4897_v16, %v5828_v8 }
 0x889   : > { %v4085_v6 = vmul.f32 %v7241_v25, %v4070_v49  ;;  %v4086_v31 = vmul.f32 %v7244_v26, %v4068_v48  ;;  %v4172_v59 = vpop.permute.xlu1 %4171  ;;  %4232 = vmatprep.subr.bf16.mxu1 %v4204_v47 }
 0x88a   : > { %4233 = vmatpush1.bf16.msra.mxu1 %v4203_v44 }
 0x88b   : > { %v4205_v54 = vpack.c.bf16 %v4085_v6, %v4083_v51  ;;  %v7267_v58 = vpop.permute.xlu0 %4173  ;;  %v4206_v60 = vpack.c.bf16 %v4086_v31, %v4084_v5 }
 0x88d   : > { %v4092_v62 = vpop.permute.xlu1 %4091  ;;  %4234 = vmatprep.subr.bf16.mxu1 %v4206_v60 }
 0x88e   : > { %v4095_v3 = vsel %vm790_vm4, %v7166_v33, %v4092_v62  ;;  %v4097_v2 = vsel %vm790_vm4, %v4092_v62, %v7166_v33  ;;  %4235 = vmatpush1.bf16.msra.mxu1 %v4205_v54 }
 0x88f   : > { %v4094_v11 = vpop.permute.xlu0 %4093  ;;  %4236 = vmatprep.subr.bf16.mxu1 %v4208_v22  ;;  %v4111_v33 = vmul.f32 %v7270_v32, %v4095_v3  ;;  %v4112_v14 = vmul.f32 %v7273_v61, %v4097_v2 }
 0x890   : > { %v4096_v12 = vsel %vm790_vm4, %v7168_v34, %v4094_v11  ;;  %v4098_v13 = vsel %vm790_vm4, %v4094_v11, %v7168_v34 }
 0x891   : > { %v4113_v55 = vmul.f32 %v7270_v32, %v4096_v12  ;;  %v4114_v20 = vmul.f32 %v7273_v61, %v4098_v13  ;;  %v4120_v22 = vpop.permute.xlu1 %4119  ;;  %v4899_v13 = vcombine.low %v7146_v57, %v7146_v57  ;;  %v4410_v57 = vld [vmem:[%s7530_s13] sm:$0xf] }
 0x892   : > { %v4123_v34 = vsel %vm812_vm5, %v7170_v35, %v4120_v22  ;;  %v4125_v17 = vsel %vm812_vm5, %v4120_v22, %v7170_v35  ;;  %4237 = vmatpush1.bf16.msra.mxu1 %v4207_v21  ;;  %v7325_v35 = vrot.slane %v4897_v16, %v5831_v9 }
 0x893   : > { %v4209_v18 = vpack.c.bf16 %v4113_v55, %v4111_v33  ;;  %v4122_v46 = vpop.permute.xlu0 %4121  ;;  %v4210_v56 = vpack.c.bf16 %v4114_v20, %v4112_v14  ;;  %v4139_v53 = vmul.f32 %v7294_v1, %v4123_v34  ;;  %v4140_v19 = vmul.f32 %v7297_v0, %v4125_v17 }
 0x894   : > { %v4124_v23 = vsel %vm812_vm5, %v7172_v36, %v4122_v46  ;;  %v4126_v24 = vsel %vm812_vm5, %v4122_v46, %v7172_v36  ;;  %v4898_v36 = vld [vmem:[%s7587_s27 + $0x10] ss:$8 sm:$0x3]  ;;  %v4418_v46 = vld [vmem:[%s7531_s14] sm:$0xf] }
 0x895   : > { %v4141_v21 = vmul.f32 %v7294_v1, %v4124_v23  ;;  %v4142_v28 = vmul.f32 %v7297_v0, %v4126_v24  ;;  %v4148_v29 = vpop.permute.xlu1 %4147  ;;  %4238 = vmatprep.subr.bf16.mxu1 %v4210_v56  ;;  %v7347_v48 = vrot.slane %v4898_v36, %v5828_v8  ;;  %v7350_v49 = vrot.slane %v4898_v36, %v5831_v9 }
 0x896   : > { %v4151_v38 = vsel %vm834_vm6, %v7174_v37, %v4148_v29  ;;  %v4153_v42 = vsel %vm834_vm6, %v4148_v29, %v7174_v37  ;;  %4239 = vmatpush1.bf16.msra.mxu1 %v4209_v18 }
 0x897   : > { %v4211_v43 = vpack.c.bf16 %v4141_v21, %v4139_v53  ;;  %v4150_v30 = vpop.permute.xlu0 %4149  ;;  %v4212_v44 = vpack.c.bf16 %v4142_v28, %v4140_v19  ;;  %v4167_v37 = vmul.f32 %v7322_v27, %v4151_v38  ;;  %v4168_v51 = vmul.f32 %v7325_v35, %v4153_v42 }
 0x898   : > { %v4152_v45 = vsel %vm834_vm6, %v7179_v39, %v4150_v30  ;;  %v4154_v47 = vsel %vm834_vm6, %v4150_v30, %v7179_v39 }
 0x899   : > { %v4169_v5 = vmul.f32 %v7322_v27, %v4152_v45  ;;  %v4170_v6 = vmul.f32 %v7325_v35, %v4154_v47  ;;  %v4176_v31 = vpop.permute.xlu1 %4175  ;;  %4240 = vmatprep.subr.bf16.mxu1 %v4212_v44 }
 0x89a   : > { %v4179_v52 = vsel %vm856_vm7, %v4172_v59, %v4176_v31  ;;  %v4181_v8 = vsel %vm856_vm7, %v4176_v31, %v4172_v59  ;;  %4241 = vmatpush1.bf16.msra.mxu1 %v4211_v43 }
 0x89b   : > { %v4213_v39 = vpack.c.bf16 %v4169_v5, %v4167_v37  ;;  %v4178_v9 = vpop.permute.xlu0 %4177  ;;  %v4214_v54 = vpack.c.bf16 %v4170_v6, %v4168_v51  ;;  %v4195_v63 = vmul.f32 %v7347_v48, %v4179_v52  ;;  %v4196_v3 = vmul.f32 %v7350_v49, %v4181_v8 }
 0x89c   : > { %v4180_v60 = vsel %vm856_vm7, %v7267_v58, %v4178_v9  ;;  %v4182_v62 = vsel %vm856_vm7, %v4178_v9, %v7267_v58 }
 0x89d   : > { %v4197_v2 = vmul.f32 %v7347_v48, %v4180_v60  ;;  %v4198_v59 = vmul.f32 %v7350_v49, %v4182_v62  ;;  %4242 = vmatprep.subr.bf16.mxu1 %v4214_v54 }
 0x89e   : > { %4243 = vmatpush1.bf16.msra.mxu1 %v4213_v39 }
 0x89f   : > { %v4215_v11 = vpack.c.bf16 %v4197_v2, %v4195_v63  ;;  %v4216_v12 = vpack.c.bf16 %v4198_v59, %v4196_v3 }
 0x8a1   : > { %4244 = vmatprep.subr.bf16.mxu1 %v4216_v12 }
 0x8a2   : > { %4245 = vmatpush1.bf16.msra.mxu1 %v4215_v11 }
 0x8a5   : > { %4261 = vmatmul.mubr.bf16.vlgmr.msra.gmra.mrb[16].mxu1 %v4899_v13 }
 0x8aa   : > { %v4273_v33 = vpop.permute.xlu1 %4272 }
 0x8ac   : > { %v4281_v20 = vpop.permute.xlu0 %4280 }
 0x978   : > { %v4262_v58 = vpop.f32.mrb[16].mxu1 }
 0x979   : > { %v4275_v14 = vmul.f32 %v4273_v33, %v4262_v58  ;;  %v4264_v55 = vpop.f32.mrb[17].mxu1 }
 0x97a   : > { %v4276_v22 = vmul.f32 %v4273_v33, %v4264_v55  ;;  %v4266_v16 = vpop.f32.mrb[18].mxu1 }
 0x97b   : > { %v7372_v34 = vadd.f32 %v4281_v20, %v4275_v14  ;;  %v4267_v17 = vpop.f32.mrb[19].mxu1 }
 0x97c   : > { %v7374_v18 = vadd.f32 %v4281_v20, %v4276_v22 }
 0x97d   : > { %4285 = vrot.lane.b32.xlu1 %v7372_v34, %s7600_s25 }
 0x97e   : > { %4287 = vrot.lane.b32.xlu0 %v7374_v18, %s7600_s25  ;;  %s4449_s25 = scalar_lea.sflag [#allocation5], %s7607_s2 }
 0x981   : > { %4293 = vrot.lane.b32.xlu1 %v7372_v34, %s7601_s23 }
 0x982   : > { %4295 = vrot.lane.b32.xlu0 %v7374_v18, %s7601_s23  ;;  %s5603_s23 = smov [#allocation4]  }
 0x985   : > { %4301 = vrot.lane.b32.xlu1 %v7372_v34, %s7602_s3 }
 0x986   : > { %4303 = vrot.lane.b32.xlu0 %v7374_v18, %s7602_s3  ;;  %s5524_s3 = sshll.u32 %s5603_s23, 4  ;;  %s5525_s3 = int_to_ptr.vmem [resolvable:$false] %s5524_s3 }
 0x987   : > { %p5527_p0 = scmp.lt.s32.totalorder %s4465_s7, %s5525_s3 }
 0x989   : > { %4309 = vrot.lane.b32.xlu1 %v7372_v34, %s7603_s29 }
 0x98a   : > { %4311 = vrot.lane.b32.xlu0 %v7374_v18, %s7603_s29  ;;  %s5526_s29 = scalar_lea.vmem %s5525_s3, 32 }
 0x98d   : > { %4317 = vrot.lane.b32.xlu1 %v7372_v34, %s7589_s1 }
 0x98e   : > { %4319 = vrot.lane.b32.xlu0 %v7374_v18, %s7589_s1  ;;  %s5520_s1 = scalar_lea.vmem %s4465_s7, 16 }
 0x98f   : > { %p5521_p11 = scmp.ne.s32.totalorder %s4465_s7, %s5520_s1  ;;  %p5528_p1 = scmp.lt.s32.totalorder %s5526_s29, %s5520_s1 }
 0x991   : > { %4325 = vrot.lane.b32.xlu1 %v7372_v34, %s7604_s30  ;;  %p5522_p12 = pnand %p5521_p11, %p5757_p5  ;;  %p5529_p2 = por %p5528_p1, %p5527_p0 }
 0x992   : > { %4327 = vrot.lane.b32.xlu0 %v7374_v18, %s7604_s30 }
 0x993   : > { %p5523_p13 = pneg %p5522_p12 }
 0x995   : > { %4333 = vrot.lane.b32.xlu1 %v7372_v34, %s7605_s8  ;;  %p5530_p3 = pnand %p5529_p2, %p5523_p13 }
 0x996   : > { %4335 = vrot.lane.b32.xlu0 %v7374_v18, %s7605_s8  ;;  %s4906_s8 = sshll.u32 %s5740_s4, 4 }
 0x997   : > { %s7474_s5 = scalar_lea.hbm %s7539_s22, %s4906_s8 }
 0x999   : > { %4341 = vrot.lane.b32.xlu1 %v7372_v34, %s7606_s24 }
 0x99a   : > { %4343 = vrot.lane.b32.xlu0 %v7374_v18, %s7606_s24 }
 0x99d   : > { %4413 = vperm.xlu1 %5064, %v4410_v57  }
 0x99e   : > { %4421 = vperm.xlu0 %5063, %v4418_v46  }
 0x9ef   : > { %v4286_v56 = vpop.permute.xlu1 %4285 }
 0x9f0   : > { %v4288_v23 = vpop.permute.xlu0 %4287 }
 0x9f1   : > { %v4289_v24 = vsel %vm703_vm1, %v4286_v56, %v4288_v23  ;;  %v4290_v53 = vsel %vm703_vm1, %v4288_v23, %v4286_v56 }
 0x9f2   : > { %v4291_v36 = vmul.f32 %v4290_v53, %v7182_v40  ;;  %v4292_v38 = vmul.f32 %v4289_v24, %v7185_v41 }
 0x9f3   : > { %v4294_v19 = vpop.permute.xlu1 %4293 }
 0x9f4   : > { %v4296_v21 = vpop.permute.xlu0 %4295 }
 0x9f5   : > { %v4297_v28 = vsel %vm724_vm0, %v4294_v19, %v4296_v21  ;;  %v4298_v29 = vsel %vm724_vm0, %v4296_v21, %v4294_v19 }
 0x9f6   : > { %v4299_v42 = vmul.f32 %v4298_v29, %v7199_v50  ;;  %v4300_v43 = vmul.f32 %v4297_v28, %v7202_v15 }
 0x9f7   : > { %v4302_v30 = vpop.permute.xlu1 %4301 }
 0x9f8   : > { %v4349_v44 = vpack.c.bf16 %v4299_v42, %v4291_v36  ;;  %v4304_v45 = vpop.permute.xlu0 %4303  ;;  %v4350_v47 = vpack.c.bf16 %v4300_v43, %v4292_v38 }
 0x9f9   : > { %v4305_v37 = vsel %vm746_vm2, %v4302_v30, %v4304_v45  ;;  %v4306_v51 = vsel %vm746_vm2, %v4304_v45, %v4302_v30 }
 0x9fa   : > { %4369 = vmatprep.subr.bf16.mxu0 %v4350_v47  ;;  %v4307_v15 = vmul.f32 %v4306_v51, %v7220_v4  ;;  %v4308_v6 = vmul.f32 %v4305_v37, %v7223_v10 }
 0x9fb   : > { %v4310_v5 = vpop.permute.xlu1 %4309  ;;  %4370 = vmatpush1.bf16.msra.mxu0 %v4349_v44 }
 0x9fc   : > { %v4312_v40 = vpop.permute.xlu0 %4311 }
 0x9fd   : > { %v4313_v41 = vsel %vm768_vm3, %v4310_v5, %v4312_v40  ;;  %v4314_v50 = vsel %vm768_vm3, %v4312_v40, %v4310_v5 }
 0x9fe   : > { %v4315_v31 = vmul.f32 %v4314_v50, %v7241_v25  ;;  %v4316_v52 = vmul.f32 %v4313_v41, %v7244_v26 }
 0x9ff   : > { %v4318_v8 = vpop.permute.xlu1 %4317 }
 0xa00   : > { %v4351_v39 = vpack.c.bf16 %v4315_v31, %v4307_v15  ;;  %v4320_v9 = vpop.permute.xlu0 %4319  ;;  %v4352_v54 = vpack.c.bf16 %v4316_v52, %v4308_v6 }
 0xa01   : > { %v4321_v60 = vsel %vm790_vm4, %v4318_v8, %v4320_v9  ;;  %v4322_v62 = vsel %vm790_vm4, %v4320_v9, %v4318_v8 }
 0xa02   : > { %v4323_v63 = vmul.f32 %v4321_v60, %v7270_v32  ;;  %v4324_v4 = vmul.f32 %v4322_v62, %v7273_v61  ;;  %4371 = vmatprep.subr.bf16.mxu0 %v4352_v54 }
 0xa03   : > { %v4326_v10 = vpop.permute.xlu1 %4325  ;;  %4372 = vmatpush1.bf16.msra.mxu0 %v4351_v39 }
 0xa04   : > { %v4353_v25 = vpack.c.bf16 %v4323_v63, %v7372_v34  ;;  %v4328_v26 = vpop.permute.xlu0 %4327  ;;  %v4354_v3 = vpack.c.bf16 %v4324_v4, %v7374_v18 }
 0xa05   : > { %v4329_v2 = vsel %vm812_vm5, %v4326_v10, %v4328_v26  ;;  %v4330_v59 = vsel %vm812_vm5, %v4328_v26, %v4326_v10 }
 0xa06   : > { %4373 = vmatprep.subr.bf16.mxu0 %v4354_v3  ;;  %v4331_v13 = vmul.f32 %v4329_v2, %v7294_v1  ;;  %v4332_v33 = vmul.f32 %v4330_v59, %v7297_v0 }
 0xa07   : > { %v4334_v11 = vpop.permute.xlu1 %4333  ;;  %4374 = vmatpush1.bf16.msra.mxu0 %v4353_v25 }
 0xa08   : > { %v4336_v32 = vpop.permute.xlu0 %4335 }
 0xa09   : > { %v4337_v61 = vsel %vm834_vm6, %v4334_v11, %v4336_v32  ;;  %v4338_v12 = vsel %vm834_vm6, %v4336_v32, %v4334_v11 }
 0xa0a   : > { %v4339_v58 = vmul.f32 %v4337_v61, %v7322_v27  ;;  %v4340_v14 = vmul.f32 %v4338_v12, %v7325_v35 }
 0xa0b   : > { %v4342_v55 = vpop.permute.xlu1 %4341 }
 0xa0c   : > { %v4355_v20 = vpack.c.bf16 %v4339_v58, %v4331_v13  ;;  %v4344_v22 = vpop.permute.xlu0 %4343  ;;  %v4356_v16 = vpack.c.bf16 %v4340_v14, %v4332_v33 }
 0xa0d   : > { %v4345_v34 = vsel %vm856_vm7, %v4342_v55, %v4344_v22  ;;  %v4346_v17 = vsel %vm856_vm7, %v4344_v22, %v4342_v55 }
 0xa0e   : > { %v4347_v1 = vmul.f32 %v4345_v34, %v7347_v48  ;;  %v4348_v0 = vmul.f32 %v4346_v17, %v7350_v49  ;;  %4375 = vmatprep.subr.bf16.mxu0 %v4356_v16 }
 0xa0f   : > { %4376 = vmatpush1.bf16.msra.mxu0 %v4355_v20 }
 0xa10   : > { %v4357_v27 = vpack.c.bf16 %v4347_v1, %v4347_v1  ;;  %v4358_v35 = vpack.c.bf16 %v4348_v0, %v4348_v0 }
 0xa12   : > { %4902 = vmatprep.subr.msk.bf16.mxu0 %vm889_vm8, %v4358_v35  ;;  %v4364_v18 = vsel %vm889_vm8, %v4357_v27, 0 }
 0xa13   : > { %4378 = vmatpush1.bf16.msra.mxu0 %v4364_v18 }
 0xa16   : > { %4903 = vmatmul.mubr.msk.bf16.vlgmr.msra.gmra.mrb[16].mxu0 %vm885_vm9, %v4359_v7 }
 0xa17   : > { %5533 = shalt.err (!%p5530_p3)
}
 0xa18   : > { %s5534_s4 = scalar_lea.hbm %s7474_s5, 16  ;;  %s5538_s8 = scalar_lea.hbm %s7539_s22, 32 }
 0xa19   : > { %p5535_p4 = scmp.ne.s32.totalorder %s7474_s5, %s5534_s4  ;;  %p5539_p9 = scmp.lt.u32.totalorder %s7474_s5, %s7539_s22 }
 0xa1a   : > { %p5540_p10 = scmp.lt.u32.totalorder %s5538_s8, %s5534_s4  ;;  %p5542_p12 = scmp.lt.u32.totalorder %s5534_s4, %s7474_s5 }
 0xa1b   : > { %p5536_p7 = pnand %p5535_p4, %p5757_p5 }
 0xa1c   : > { %p5541_p11 = por %p5540_p10, %p5539_p9 }
 0xa1d   : > { %p5537_p8 = pneg %p5536_p7 }
 0xa1e   : > { %p5543_p13 = por %p5542_p12, %p5541_p11 }
 0xa20   : > { %p5544_p0 = pnand %p5543_p13, %p5537_p8 }
 0xa22   : > { %5547 = shalt.err (!%p5544_p0)
}
 0xa23   : > { %5005 = dma.vmem_to_hbm [thread:$0]  (%p5757_p5), %s4465_s7, 16, %s7474_s5, %s4449_s25   ;;  %v4414_v48 = vpop.permute.xlu1 %4413  ;;  %v4422_v56 = vpop.permute.xlu0 %4421 }
 0xa24   : > { %s4910_s6 = sshll.u32 %s5769_s26, 3  ;;  %s7608_s2 = sld [smem:[#allocation23_spill]] }
 0xa2a   : > { %s693_s25 = scalar_lea.vmem %s7608_s2, %s4910_s6 }
 0xae9   : > { %v4403_v49 = vpop.f32.mrb[16].mxu0 }
 0xaea   : > { %v4416_v57 = vmul.f32 %v4414_v48, %v4403_v49  ;;  %v4405_v46 = vpop.f32.mrb[17].mxu0 }
 0xaeb   : > { %v4417_v23 = vmul.f32 %v4414_v48, %v4405_v46  ;;  %v4407_v24 = vpop.f32.mrb[18].mxu0 }
 0xaec   : > { %v4424_v53 = vadd.f32 %v4422_v56, %v4416_v57  ;;  %v4408_v19 = vpop.f32.mrb[19].mxu0 }
 0xaed   : > { %v4425_v21 = vadd.f32 %v4422_v56, %v4417_v23 }
 0xaee   : > { %v4904_v28 = vmul.f32 -1.442695, %v4424_v53 }
 0xaef   : > { %v4905_v29 = vmul.f32 -1.442695, %v4425_v21 }
 0xaf0   : > { %5512 = vpow2.f32 %v4904_v28 }
 0xaf1   : > { %5514 = vpow2.f32 %v4905_v29 }
 0xafa   : > { %v5513_v36 = vpop.eup %5512 }
 0xafb   : > { %v5515_v38 = vpop.eup %5514  ;;  %v4432_v42 = vadd.f32 1.0, %v5513_v36 }
 0xafc   : > { %v4433_v43 = vadd.f32 1.0, %v5515_v38 }
 0xafd   : > { %5516 = vrcp.f32 %v4432_v42 }
 0xafe   : > { %5518 = vrcp.f32 %v4433_v43 }
 0xb07   : > { %v5517_v30 = vpop.eup %5516 }
 0xb08   : > { %v5519_v44 = vpop.eup %5518 }
 0xb09   : > { %v4440_v45 = vcombine.low %v5517_v30, %v5519_v44 }
 0xb0b   : > { %4442 = vst [vmem:[%s693_s25] sm:$0xff] %v4440_v45 }
 0xb0c PF: > { %s7609_s1 = sld [smem:[#allocation9_spill]]  ;;  %s7610_s23 = sld [smem:[#allocation7_spill]] }
 0xb12   : > { %p5011_p5 = scmp.ge.s32.totalorder %s7609_s1, 2  ;;  %s4484_s29 = sand.u32 1, %s7610_s23  }
 0xb13   : > { %s4485_s4 = scalar_lea.sflag [#allocation5], %s4484_s29 }
 0xb14   : > { %p5008_p1 = pnand %p5011_p5, %p5761_p6 }
 0xb16   : > { %5565 = dma.done.wait (!%p5008_p1), %s4485_s4, 16  }
 0xb17   : > { %5567 = vsyncadd (!%p5008_p1), %s4485_s4, 4294967280  ;;  %s7612_s30 = sld [smem:[#allocation10_spill]]  ;;  %s7613_s26 = sld [smem:[#allocation8_spill]] }
 0xb18   : > { %s7614_s29 = sld [smem:[#allocation11_spill]]  ;;  %s7615_s3 = smov %s5574_s28 }
 0xb1d   : > { %p33_p2 = scmp.ge.s32.totalorder %s7612_s30, 4   ;;  %s7616_s28 = smov %s7613_s26 }
 0xb1f   :  { %35 = sbr.rel (!%p33_p2) target bundleno = 15 (0xf), region = 165 }
 0xb26   :  { %4489 = vsyncpa [#allocation5], 1 }
 0xb27   :  { %4491 = vsyncpa [#allocation5 + $0x1], 1 }

</bundles_post_ra>
